<compile_context>
chip_gen: v7x
topology: tpu7x:2x2x1
jax: 0.10.0
libtpu: 0.0.40
codegen_flags: <defaults>
</compile_context>

<pallas_src>
import functools

import jax
import jax.numpy as jnp
from jax import lax
from jax.experimental import pallas as pl
from jax.experimental.pallas import tpu as pltpu

BN_EPS = 1e-5
VMEM_LIMIT = 48 * 1024 * 1024      # < 64 MiB physical on v7x, well under v5e/v6e


def _elu(x):
    # ELU(alpha=1):  x if x > 0 else exp(x) - 1   (f32 epilogue everywhere)
    return jnp.where(x > 0, x, jnp.exp(jnp.minimum(x, 0.0)) - 1.0)


# ---------------------------------------------------------------------------
# Kernel 1: ConvTranspose3d(k=2, s=2) + folded BatchNorm + ELU.
#   * whole (Ncol, Cin) weight resident; grid only over (batch, spatial tiles)
#   * x block (Cin, ts): spatial positions on lanes (lane-dense), Cin on sublanes
#   * bf16 operands / output, f32 accumulate + epilogue
# ---------------------------------------------------------------------------
def _upconv_kernel(x_ref, w_ref, scale_ref, bias_ref, o_ref):
    y = lax.dot_general(w_ref[...], x_ref[0],
                        (((1,), (0,)), ((), ())),
                        preferred_element_type=jnp.float32)        # (Ncol, ts)
    y = y * scale_ref[...] + bias_ref[...]                          # f32 BN
    o_ref[0, :, :] = _elu(y).astype(o_ref.dtype)                    # bf16 store


def upconv_bn_elu(x_ncs_bf16, w_t_bf16, scale_col, bias_col):
    """x_ncs_bf16: (N, Cin, S) bf16 (NCDHW with flattened spatial, no transpose).
    w_t_bf16: (Ncol, Cin) bf16, rows ordered (co, kd, kh, kw).
    scale_col/bias_col: (Ncol, 1) f32.  Returns (N, Ncol, S) bf16."""
    N, Cin, S = x_ncs_bf16.shape
    Ncol = w_t_bf16.shape[0]

    # large lane-dense spatial tile (per-step overhead amortization)
    ts = S
    for cand in (4096, 2048, 1024, 512, 256, 128):
        if S % cand == 0:
            ts = cand
            break

    return pl.pallas_call(
        _upconv_kernel,
        out_shape=jax.ShapeDtypeStruct((N, Ncol, S), jnp.bfloat16),
        grid=(N, S // ts),
        in_specs=[
            pl.BlockSpec((1, Cin, ts), lambda n, j: (n, 0, j)),
            pl.BlockSpec((Ncol, Cin), lambda n, j: (0, 0)),     # resident weight
            pl.BlockSpec((Ncol, 1), lambda n, j: (0, 0)),
            pl.BlockSpec((Ncol, 1), lambda n, j: (0, 0)),
        ],
        out_specs=pl.BlockSpec((1, Ncol, ts), lambda n, j: (n, 0, j)),
        compiler_params=pltpu.CompilerParams(
            dimension_semantics=("parallel", "parallel"),
            vmem_limit_bytes=VMEM_LIMIT),
    )(x_ncs_bf16, w_t_bf16, scale_col, bias_col)


# ---------------------------------------------------------------------------
# Kernel 2: LUConv = Conv3d(k=5, pad=2) + folded BatchNorm + ELU, optionally
#           fused with the block's residual add + final ELU.
#   * only the kw taps are folded in the wrapper (K = 5*Ci, 5x expansion
#     instead of 25x); kd and kh slide in-kernel on untiled leading axes
#   * input is D-halo-tiled: block = (1, dt+4, H+4, W, K)  (VMEM = O(dt))
#   * output layout (N, Co, D*H*W) == NCDHW flat, lane-dense stores
# ---------------------------------------------------------------------------
def _luconv_kernel(*refs, fuse_res):
    if fuse_res:
        x_ref, w_ref, scale_ref, bias_ref, res_ref, o_ref = refs
    else:
        x_ref, w_ref, scale_ref, bias_ref, o_ref = refs

    _, dtp4, hp4, W, K = x_ref.shape
    dt, H = dtp4 - 4, hp4 - 4
    Co = o_ref.shape[1]
    M = dt * H * W

    acc = jnp.zeros((Co, M), jnp.float32)
    for kd in range(5):                  # static slides on untiled leading axes
        for kh in range(5):
            patch = x_ref[0, kd:kd + dt, kh:kh + H, :, :]          # (dt, H, W, K)
            patch = patch.reshape(M, K)                            # leading merge only
            acc = acc + lax.dot_general(
                w_ref[kd, kh, :, :], patch, (((1,), (1,)), ((), ())),
                preferred_element_type=jnp.float32)                # (Co, M)

    y = _elu(acc * scale_ref[...] + bias_ref[...])                 # f32 epilogue
    if fuse_res:
        y = _elu(y + res_ref[0, :, :].astype(jnp.float32))         # residual + final ELU
    o_ref[0, :, :] = y.astype(o_ref.dtype)


def _pick_dt(D, H, W, Co, K):
    """Largest d-tile that keeps the f32 accumulator and the halo block bounded,
    preferring >=2 d-tiles so the input pipeline has something to overlap."""
    HW = H * W
    k_lanes = ((K + 127) // 128) * 128
    acc_bytes = lambda dt: Co * dt * HW * 4
    blk_bytes = lambda dt: (dt + 4) * (H + 4) * W * k_lanes * 2
    cands = [dt for dt in range(1, D + 1)
             if D % dt == 0 and (dt == D or (dt * HW) % 128 == 0)]
    sub = [dt for dt in cands if dt < D]
    pool = sub if sub else cands
    good = [dt for dt in pool
            if acc_bytes(dt) <= 256 * 1024 and blk_bytes(dt) <= 6 * 1024 * 1024]
    return max(good) if good else min(pool)


def luconv(x_ndhwc, w_slab, scale, bias, residual_ncs=None, out_dtype=jnp.float32):
    """x_ndhwc: (N, D, H, W, Ci) bf16.  w_slab: (5, 5, Co, 5*Ci) bf16, columns
    ordered (kw, ci).  scale/bias: (Co,) f32.  residual_ncs: optional
    (N, Co, D*H*W) bf16 added (then ELU'd).  Returns (N, Co, D*H*W) out_dtype."""
    N, D, H, W, Ci = x_ndhwc.shape
    Co, K = w_slab.shape[2], w_slab.shape[3]
    HW = H * W

    dt = _pick_dt(D, H, W, Co, K)
    n_db = D // dt

    # zero-pad contraction dim to a lane multiple only when overhead is small
    K_pad = ((K + 127) // 128) * 128
    if K_pad - K > K // 4:
        K_pad = K

    # D-halo-tiled, kw-only im2col (5x expansion); pad + shifted slices + stack
    # fuse into a single XLA pass producing the bf16 slab.
    # TODO(synk): a manual-DMA halo (pl.ANY + make_async_copy) would avoid the
    #             (dt+4)/dt duplication in HBM entirely.
    xpad = jnp.pad(x_ndhwc, ((0, 0), (2, 2), (2, 2), (2, 2), (0, 0)))
    tiles = []
    for db in range(n_db):
        cols = [xpad[:, db * dt: db * dt + dt + 4, :, kw:kw + W, :]
                for kw in range(5)]
        tiles.append(jnp.stack(cols, axis=4))          # (N, dt+4, H+4, W, 5, Ci)
    xcol = jnp.stack(tiles, axis=1)                     # (N, n_db, dt+4, H+4, W, 5, Ci)
    xcol = xcol.reshape(N * n_db, dt + 4, H + 4, W, 5 * Ci).astype(jnp.bfloat16)

    w_use = w_slab
    if K_pad != K:
        xcol = jnp.pad(xcol, ((0, 0), (0, 0), (0, 0), (0, 0), (0, K_pad - K)))
        w_use = jnp.pad(w_slab, ((0, 0), (0, 0), (0, 0), (0, K_pad - K)))

    in_specs = [
        pl.BlockSpec((1, dt + 4, H + 4, W, K_pad),
                     lambda n, db: (n * n_db + db, 0, 0, 0, 0)),
        pl.BlockSpec((5, 5, Co, K_pad), lambda n, db: (0, 0, 0, 0)),
        pl.BlockSpec((Co, 1), lambda n, db: (0, 0)),
        pl.BlockSpec((Co, 1), lambda n, db: (0, 0)),
    ]
    args = [xcol, w_use, scale.reshape(Co, 1), bias.reshape(Co, 1)]
    fuse_res = residual_ncs is not None
    if fuse_res:
        in_specs.append(pl.BlockSpec((1, Co, dt * HW), lambda n, db: (n, 0, db)))
        args.append(residual_ncs)

    kernel = functools.partial(_luconv_kernel, fuse_res=fuse_res)
    return pl.pallas_call(
        kernel,
        out_shape=jax.ShapeDtypeStruct((N, Co, D * HW), out_dtype),
        grid=(N, n_db),
        in_specs=in_specs,
        out_specs=pl.BlockSpec((1, Co, dt * HW), lambda n, db: (n, 0, db)),
        compiler_params=pltpu.CompilerParams(
            dimension_semantics=("parallel", "parallel"),
            vmem_limit_bytes=VMEM_LIMIT),
    )(*args)


# ---------------------------------------------------------------------------
# Parameters (deterministic init) and forward pass.
# ---------------------------------------------------------------------------
def init_params(key, in_chans, out_chans, n_convs):
    up_chans = out_chans // 2
    ks = iter(jax.random.split(key, 8 + 8 * n_convs))

    def bn(c):
        g = 1.0 + 0.1 * jax.random.normal(next(ks), (c,), jnp.float32)
        b = 0.1 * jax.random.normal(next(ks), (c,), jnp.float32)
        m = 0.1 * jax.random.normal(next(ks), (c,), jnp.float32)
        v = 0.5 + jnp.abs(jax.random.normal(next(ks), (c,), jnp.float32)) * 0.5
        return g, b, m, v

    params = {
        # PyTorch ConvTranspose3d weight layout: (Cin, Cout, kd, kh, kw)
        "up_w": 0.1 * jax.random.normal(next(ks), (in_chans, up_chans, 2, 2, 2), jnp.float32),
        "up_b": 0.1 * jax.random.normal(next(ks), (up_chans,), jnp.float32),
        "bn1": bn(up_chans),
        "convs": [],
    }
    for _ in range(n_convs):
        # PyTorch Conv3d weight layout: (Cout, Cin, kd, kh, kw)
        cw = 0.05 * jax.random.normal(next(ks), (out_chans, out_chans, 5, 5, 5), jnp.float32)
        cb = 0.1 * jax.random.normal(next(ks), (out_chans,), jnp.float32)
        params["convs"].append((cw, cb) + bn(out_chans))
    return params


def up_transition_forward(params, x_ncdhw, skip_ncdhw):
    x = x_ncdhw.astype(jnp.float32)
    N, Cin, D, H, W = x.shape
    S = D * H * W

    # do1 = passthrough ; do2 = Dropout3d(0.25) -> identity (inference mode)

    # --- out = relu1(bn1(up_conv(x))) ---
    up_w = params["up_w"]                                   # (Cin, CoH, 2, 2, 2)
    CoH = up_w.shape[1]
    Ncol = CoH * 8
    w_t = jnp.transpose(up_w, (1, 2, 3, 4, 0)).reshape(Ncol, Cin)   # rows (co,kd,kh,kw)
    g, b, m, v = params["bn1"]
    scale = g / jnp.sqrt(v + BN_EPS)
    shift = b - m * scale
    bias_eff = params["up_b"] * scale + shift
    scale_col = jnp.repeat(scale, 8).reshape(Ncol, 1)
    bias_col = jnp.repeat(bias_eff, 8).reshape(Ncol, 1)

    x_ncs = x.reshape(N, Cin, S).astype(jnp.bfloat16)       # NCDHW flat: no transpose
    up_t = upconv_bn_elu(x_ncs, w_t.astype(jnp.bfloat16), scale_col, bias_col)  # (N,Ncol,S) bf16

    # interleave (kd, kh, kw) offsets into the 2x-upsampled spatial dims (bf16 pass)
    # TODO(synk): emit the interleaved NDHWC order directly from the kernel
    #             (needs a strided/element out index_map) to drop this pass.
    D2, H2, W2 = 2 * D, 2 * H, 2 * W
    up = up_t.reshape(N, CoH, 2, 2, 2, D, H, W)
    up = up.transpose(0, 5, 2, 6, 3, 7, 4, 1).reshape(N, D2, H2, W2, CoH)

    # --- xcat = cat((out, skipxdo), channel) ---
    skip = jnp.transpose(skip_ncdhw, (0, 2, 3, 4, 1)).astype(jnp.bfloat16)
    xcat = jnp.concatenate([up, skip], axis=-1)             # (N, D2, H2, W2, C) bf16
    C = xcat.shape[-1]
    S2 = D2 * H2 * W2
    # channels-first flat view (== NCDHW): residual operand and final output layout
    xcat_ncs = jnp.transpose(xcat, (0, 4, 1, 2, 3)).reshape(N, C, S2)

    convs = params["convs"]
    if not convs:                       # nConvs == 0: ops is identity
        y = _elu(2.0 * xcat_ncs.astype(jnp.float32))
        return y.reshape(N, C, D2, H2, W2)

    # --- out = relu2(ops(xcat) + xcat) ---  (residual fused into the last conv)
    h = xcat
    h_ncs = None
    for li, (cw, cbias, g, b, m, v) in enumerate(convs):
        # (Co, Ci, kd, kh, kw) -> (kd, kh, Co, (kw, ci)) weight slab, bf16 for the MXU
        w_slab = jnp.transpose(cw, (2, 3, 0, 4, 1)).reshape(5, 5, C, 5 * C)
        w_slab = w_slab.astype(jnp.bfloat16)
        scale = g / jnp.sqrt(v + BN_EPS)
        shift = b - m * scale
        bias_eff = cbias * scale + shift
        last = li == len(convs) - 1
        h_ncs = luconv(h, w_slab, scale, bias_eff,
                       residual_ncs=xcat_ncs if last else None,
                       out_dtype=jnp.float32 if last else jnp.bfloat16)
        if not last:
            # TODO(synk): emit NDHWC directly from non-final layers (or switch to
            #             patch @ w^T orientation when Co >= 128) to drop this pass.
            h = jnp.transpose(h_ncs.reshape(N, C, D2, H2, W2), (0, 2, 3, 4, 1))

    # already channels-first: just unflatten the spatial dims -> NCDHW
    return h_ncs.reshape(N, C, D2, H2, W2)


if __name__ == "__main__":
    in_chans, out_chans, n_convs = 4, 4, 1
    N, S = 2, 4                      # x spatial 4 -> upsampled / skip spatial 8

    key = jax.random.PRNGKey(0)
    kp, kx, ks = jax.random.split(key, 3)
    params = init_params(kp, in_chans, out_chans, n_convs)

    x = jax.random.normal(kx, (N, in_chans, S, S, S), jnp.float32)
    skipx = jax.random.normal(ks, (N, out_chans // 2, 2 * S, 2 * S, 2 * S), jnp.float32)

    fwd = jax.jit(functools.partial(up_transition_forward, params))
    out = fwd(x, skipx)
    jax.block_until_ready(out)

    assert out.shape == (N, out_chans, 2 * S, 2 * S, 2 * S), out.shape
    assert bool(jnp.all(jnp.isfinite(out)))
    print("KERNEL_OK")
</pallas_src>

<mosaic_0001>
module attributes {stable_mosaic.version = 11 : i64} {
  func.func @_upconv_kernel(%arg0: i32, %arg1: i32, %arg2: memref<1x4x64xbf16, #tpu.memory_space<vmem>>, %arg3: memref<16x4xbf16, #tpu.memory_space<vmem>>, %arg4: memref<16x1xf32, #tpu.memory_space<vmem>>, %arg5: memref<16x1xf32, #tpu.memory_space<vmem>>, %arg6: memref<1x16x64xbf16, #tpu.memory_space<vmem>>) attributes {dimension_semantics = [#tpu.dimension_semantics<parallel>, #tpu.dimension_semantics<parallel>], iteration_bounds = array<i64: 2, 1>, scalar_prefetch = 0 : i64, scratch_operands = 0 : i64, tpu.core_type = #tpu.core_type<tc>, window_params = [{transform_indices = @transform_0, window_bounds = array<i64: 1, 4, 64>}, {pipeline_mode = #tpu.pipeline_mode<synchronous>, transform_indices = @transform_1, window_bounds = array<i64: 16, 4>}, {pipeline_mode = #tpu.pipeline_mode<synchronous>, transform_indices = @transform_2, window_bounds = array<i64: 16, 1>}, {pipeline_mode = #tpu.pipeline_mode<synchronous>, transform_indices = @transform_3, window_bounds = array<i64: 16, 1>}, {transform_indices = @transform_4, window_bounds = array<i64: 1, 16, 64>}]} {
    %c0 = arith.constant 0 : index
    %c0_0 = arith.constant 0 : index
    %0 = vector.load %arg3[%c0, %c0_0] : memref<16x4xbf16, #tpu.memory_space<vmem>>, vector<16x4xbf16>
    %c0_1 = arith.constant 0 : index
    %c0_2 = arith.constant 0 : index
    %c0_3 = arith.constant 0 : index
    %1 = vector.load %arg2[%c0_1, %c0_2, %c0_3] : memref<1x4x64xbf16, #tpu.memory_space<vmem>>, vector<1x4x64xbf16>
    %2 = vector.shape_cast %1 : vector<1x4x64xbf16> to vector<4x64xbf16>
    %cst = arith.constant dense<0.000000e+00> : vector<16x64xf32>
    %3 = tpu.matmul %0, %2, %cst {dimension_numbers = #tpu.dot_dimension_numbers<[1], [0], [0], [1], [0, 0, 1, 1], [], []>} : vector<16x4xbf16>, vector<4x64xbf16>, vector<16x64xf32> -> vector<16x64xf32>
    %c0_4 = arith.constant 0 : index
    %c0_5 = arith.constant 0 : index
    %4 = vector.load %arg4[%c0_4, %c0_5] : memref<16x1xf32, #tpu.memory_space<vmem>>, vector<16x1xf32>
    %5 = vector.broadcast %4 : vector<16x1xf32> to vector<16x64xf32>
    %6 = arith.mulf %3, %5 : vector<16x64xf32>
    %c0_6 = arith.constant 0 : index
    %c0_7 = arith.constant 0 : index
    %7 = vector.load %arg5[%c0_6, %c0_7] : memref<16x1xf32, #tpu.memory_space<vmem>>, vector<16x1xf32>
    %8 = vector.broadcast %7 : vector<16x1xf32> to vector<16x64xf32>
    %9 = arith.addf %6, %8 : vector<16x64xf32>
    %cst_8 = arith.constant 0.000000e+00 : f32
    %10 = vector.broadcast %cst_8 : f32 to vector<16x64xf32>
    %11 = arith.cmpf ogt, %9, %10 : vector<16x64xf32>
    %cst_9 = arith.constant 0.000000e+00 : f32
    %12 = vector.broadcast %cst_9 : f32 to vector<16x64xf32>
    %13 = arith.minimumf %9, %12 : vector<16x64xf32>
    %14 = math.exp %13 : vector<16x64xf32>
    %cst_10 = arith.constant 1.000000e+00 : f32
    %15 = vector.broadcast %cst_10 : f32 to vector<16x64xf32>
    %16 = arith.subf %14, %15 : vector<16x64xf32>
    %17 = arith.select %11, %9, %16 : vector<16x64xi1>, vector<16x64xf32>
    %18 = arith.truncf %17 : vector<16x64xf32> to vector<16x64xbf16>
    %c0_11 = arith.constant 0 : index
    %c0_12 = arith.constant 0 : index
    %c0_13 = arith.constant 0 : index
    %19 = vector.load %arg6[%c0_11, %c0_12, %c0_13] : memref<1x16x64xbf16, #tpu.memory_space<vmem>>, vector<1x16x64xbf16>
    %20 = vector.shape_cast %19 : vector<1x16x64xbf16> to vector<16x64xbf16>
    %21 = vector.shape_cast %18 : vector<16x64xbf16> to vector<1x16x64xbf16>
    tpu.vector_store %arg6[%c0_11, %c0_12, %c0_13], %21 {strides = array<i32>} : memref<1x16x64xbf16, #tpu.memory_space<vmem>>, vector<1x16x64xbf16>,
    return
  }
  func.func @transform_0(%arg0: i32, %arg1: i32) -> (i32, i32, i32) {
    %c0_i32 = arith.constant 0 : i32
    %c0_i32_0 = arith.constant 0 : i32
    return %arg0, %c0_i32, %arg1 : i32, i32, i32
  }
  func.func @transform_1(%arg0: i32, %arg1: i32) -> (i32, i32) {
    %c0_i32 = arith.constant 0 : i32
    %c0_i32_0 = arith.constant 0 : i32
    %c0_i32_1 = arith.constant 0 : i32
    return %c0_i32, %c0_i32_0 : i32, i32
  }
  func.func @transform_2(%arg0: i32, %arg1: i32) -> (i32, i32) {
    %c0_i32 = arith.constant 0 : i32
    %c0_i32_0 = arith.constant 0 : i32
    %c0_i32_1 = arith.constant 0 : i32
    return %c0_i32, %c0_i32_0 : i32, i32
  }
  func.func @transform_3(%arg0: i32, %arg1: i32) -> (i32, i32) {
    %c0_i32 = arith.constant 0 : i32
    %c0_i32_0 = arith.constant 0 : i32
    %c0_i32_1 = arith.constant 0 : i32
    return %c0_i32, %c0_i32_0 : i32, i32
  }
  func.func @transform_4(%arg0: i32, %arg1: i32) -> (i32, i32, i32) {
    %c0_i32 = arith.constant 0 : i32
    %c0_i32_0 = arith.constant 0 : i32
    return %arg0, %c0_i32, %arg1 : i32, i32, i32
  }
}

module attributes {stable_mosaic.version = 11 : i64} {
  func.func @_luconv_kernel(%arg0: i32, %arg1: i32, %arg2: memref<1x8x12x8x20xbf16, #tpu.memory_space<vmem>>, %arg3: memref<5x5x4x20xbf16, #tpu.memory_space<vmem>>, %arg4: memref<4x1xf32, #tpu.memory_space<vmem>>, %arg5: memref<4x1xf32, #tpu.memory_space<vmem>>, %arg6: memref<1x4x256xbf16, #tpu.memory_space<vmem>>, %arg7: memref<1x4x256xf32, #tpu.memory_space<vmem>>) attributes {dimension_semantics = [#tpu.dimension_semantics<parallel>, #tpu.dimension_semantics<parallel>], iteration_bounds = array<i64: 2, 2>, scalar_prefetch = 0 : i64, scratch_operands = 0 : i64, tpu.core_type = #tpu.core_type<tc>, window_params = [{transform_indices = @transform_0, window_bounds = array<i64: 1, 8, 12, 8, 20>}, {pipeline_mode = #tpu.pipeline_mode<synchronous>, transform_indices = @transform_1, window_bounds = array<i64: 5, 5, 4, 20>}, {pipeline_mode = #tpu.pipeline_mode<synchronous>, transform_indices = @transform_2, window_bounds = array<i64: 4, 1>}, {pipeline_mode = #tpu.pipeline_mode<synchronous>, transform_indices = @transform_3, window_bounds = array<i64: 4, 1>}, {transform_indices = @transform_4, window_bounds = array<i64: 1, 4, 256>}, {transform_indices = @transform_5, window_bounds = array<i64: 1, 4, 256>}]} {
    %cst = arith.constant 0.000000e+00 : f32
    %0 = vector.broadcast %cst : f32 to vector<4x256xf32>
    %c0 = arith.constant 0 : index
    %c0_0 = arith.constant 0 : index
    %c0_1 = arith.constant 0 : index
    %c0_2 = arith.constant 0 : index
    %c0_3 = arith.constant 0 : index
    %1 = vector.load %arg2[%c0, %c0_0, %c0_1, %c0_2, %c0_3] : memref<1x8x12x8x20xbf16, #tpu.memory_space<vmem>>, vector<1x4x8x8x20xbf16>
    %2 = vector.shape_cast %1 : vector<1x4x8x8x20xbf16> to vector<4x8x8x20xbf16>
    %3 = vector.shape_cast %2 : vector<4x8x8x20xbf16> to vector<256x20xbf16>
    %c0_4 = arith.constant 0 : index
    %c0_5 = arith.constant 0 : index
    %c0_6 = arith.constant 0 : index
    %c0_7 = arith.constant 0 : index
    %4 = vector.load %arg3[%c0_4, %c0_5, %c0_6, %c0_7] : memref<5x5x4x20xbf16, #tpu.memory_space<vmem>>, vector<1x1x4x20xbf16>
    %5 = vector.shape_cast %4 : vector<1x1x4x20xbf16> to vector<4x20xbf16>
    %cst_8 = arith.constant dense<0.000000e+00> : vector<4x256xf32>
    %6 = tpu.matmul %5, %3, %cst_8 {dimension_numbers = #tpu.dot_dimension_numbers<[1], [1], [0], [0], [0, 0, 1, 0], [], []>} : vector<4x20xbf16>, vector<256x20xbf16>, vector<4x256xf32> -> vector<4x256xf32>
    %7 = arith.addf %0, %6 : vector<4x256xf32>
    %c0_9 = arith.constant 0 : index
    %c0_10 = arith.constant 0 : index
    %c1 = arith.constant 1 : index
    %c0_11 = arith.constant 0 : index
    %c0_12 = arith.constant 0 : index
    %8 = vector.load %arg2[%c0_9, %c0_10, %c1, %c0_11, %c0_12] : memref<1x8x12x8x20xbf16, #tpu.memory_space<vmem>>, vector<1x4x8x8x20xbf16>
    %9 = vector.shape_cast %8 : vector<1x4x8x8x20xbf16> to vector<4x8x8x20xbf16>
    %10 = vector.shape_cast %9 : vector<4x8x8x20xbf16> to vector<256x20xbf16>
    %c0_13 = arith.constant 0 : index
    %c1_14 = arith.constant 1 : index
    %c0_15 = arith.constant 0 : index
    %c0_16 = arith.constant 0 : index
    %11 = vector.load %arg3[%c0_13, %c1_14, %c0_15, %c0_16] : memref<5x5x4x20xbf16, #tpu.memory_space<vmem>>, vector<1x1x4x20xbf16>
    %12 = vector.shape_cast %11 : vector<1x1x4x20xbf16> to vector<4x20xbf16>
    %cst_17 = arith.constant dense<0.000000e+00> : vector<4x256xf32>
    %13 = tpu.matmul %12, %10, %cst_17 {dimension_numbers = #tpu.dot_dimension_numbers<[1], [1], [0], [0], [0, 0, 1, 0], [], []>} : vector<4x20xbf16>, vector<256x20xbf16>, vector<4x256xf32> -> vector<4x256xf32>
    %14 = arith.addf %7, %13 : vector<4x256xf32>
    %c0_18 = arith.constant 0 : index
    %c0_19 = arith.constant 0 : index
    %c2 = arith.constant 2 : index
    %c0_20 = arith.constant 0 : index
    %c0_21 = arith.constant 0 : index
    %15 = vector.load %arg2[%c0_18, %c0_19, %c2, %c0_20, %c0_21] : memref<1x8x12x8x20xbf16, #tpu.memory_space<vmem>>, vector<1x4x8x8x20xbf16>
    %16 = vector.shape_cast %15 : vector<1x4x8x8x20xbf16> to vector<4x8x8x20xbf16>
    %17 = vector.shape_cast %16 : vector<4x8x8x20xbf16> to vector<256x20xbf16>
    %c0_22 = arith.constant 0 : index
    %c2_23 = arith.constant 2 : index
    %c0_24 = arith.constant 0 : index
    %c0_25 = arith.constant 0 : index
    %18 = vector.load %arg3[%c0_22, %c2_23, %c0_24, %c0_25] : memref<5x5x4x20xbf16, #tpu.memory_space<vmem>>, vector<1x1x4x20xbf16>
    %19 = vector.shape_cast %18 : vector<1x1x4x20xbf16> to vector<4x20xbf16>
    %cst_26 = arith.constant dense<0.000000e+00> : vector<4x256xf32>
    %20 = tpu.matmul %19, %17, %cst_26 {dimension_numbers = #tpu.dot_dimension_numbers<[1], [1], [0], [0], [0, 0, 1, 0], [], []>} : vector<4x20xbf16>, vector<256x20xbf16>, vector<4x256xf32> -> vector<4x256xf32>
    %21 = arith.addf %14, %20 : vector<4x256xf32>
    %c0_27 = arith.constant 0 : index
    %c0_28 = arith.constant 0 : index
    %c3 = arith.constant 3 : index
    %c0_29 = arith.constant 0 : index
    %c0_30 = arith.constant 0 : index
    %22 = vector.load %arg2[%c0_27, %c0_28, %c3, %c0_29, %c0_30] : memref<1x8x12x8x20xbf16, #tpu.memory_space<vmem>>, vector<1x4x8x8x20xbf16>
    %23 = vector.shape_cast %22 : vector<1x4x8x8x20xbf16> to vector<4x8x8x20xbf16>
    %24 = vector.shape_cast %23 : vector<4x8x8x20xbf16> to vector<256x20xbf16>
    %c0_31 = arith.constant 0 : index
    %c3_32 = arith.constant 3 : index
    %c0_33 = arith.constant 0 : index
    %c0_34 = arith.constant 0 : index
    %25 = vector.load %arg3[%c0_31, %c3_32, %c0_33, %c0_34] : memref<5x5x4x20xbf16, #tpu.memory_space<vmem>>, vector<1x1x4x20xbf16>
    %26 = vector.shape_cast %25 : vector<1x1x4x20xbf16> to vector<4x20xbf16>
    %cst_35 = arith.constant dense<0.000000e+00> : vector<4x256xf32>
    %27 = tpu.matmul %26, %24, %cst_35 {dimension_numbers = #tpu.dot_dimension_numbers<[1], [1], [0], [0], [0, 0, 1, 0], [], []>} : vector<4x20xbf16>, vector<256x20xbf16>, vector<4x256xf32> -> vector<4x256xf32>
    %28 = arith.addf %21, %27 : vector<4x256xf32>
    %c0_36 = arith.constant 0 : index
    %c0_37 = arith.constant 0 : index
    %c4 = arith.constant 4 : index
    %c0_38 = arith.constant 0 : index
    %c0_39 = arith.constant 0 : index
    %29 = vector.load %arg2[%c0_36, %c0_37, %c4, %c0_38, %c0_39] : memref<1x8x12x8x20xbf16, #tpu.memory_space<vmem>>, vector<1x4x8x8x20xbf16>
    %30 = vector.shape_cast %29 : vector<1x4x8x8x20xbf16> to vector<4x8x8x20xbf16>
    %31 = vector.shape_cast %30 : vector<4x8x8x20xbf16> to vector<256x20xbf16>
    %c0_40 = arith.constant 0 : index
    %c4_41 = arith.constant 4 : index
    %c0_42 = arith.constant 0 : index
    %c0_43 = arith.constant 0 : index
    %32 = vector.load %arg3[%c0_40, %c4_41, %c0_42, %c0_43] : memref<5x5x4x20xbf16, #tpu.memory_space<vmem>>, vector<1x1x4x20xbf16>
    %33 = vector.shape_cast %32 : vector<1x1x4x20xbf16> to vector<4x20xbf16>
    %cst_44 = arith.constant dense<0.000000e+00> : vector<4x256xf32>
    %34 = tpu.matmul %33, %31, %cst_44 {dimension_numbers = #tpu.dot_dimension_numbers<[1], [1], [0], [0], [0, 0, 1, 0], [], []>} : vector<4x20xbf16>, vector<256x20xbf16>, vector<4x256xf32> -> vector<4x256xf32>
    %35 = arith.addf %28, %34 : vector<4x256xf32>
    %c0_45 = arith.constant 0 : index
    %c1_46 = arith.constant 1 : index
    %c0_47 = arith.constant 0 : index
    %c0_48 = arith.constant 0 : index
    %c0_49 = arith.constant 0 : index
    %36 = vector.load %arg2[%c0_45, %c1_46, %c0_47, %c0_48, %c0_49] : memref<1x8x12x8x20xbf16, #tpu.memory_space<vmem>>, vector<1x4x8x8x20xbf16>
    %37 = vector.shape_cast %36 : vector<1x4x8x8x20xbf16> to vector<4x8x8x20xbf16>
    %38 = vector.shape_cast %37 : vector<4x8x8x20xbf16> to vector<256x20xbf16>
    %c1_50 = arith.constant 1 : index
    %c0_51 = arith.constant 0 : index
    %c0_52 = arith.constant 0 : index
    %c0_53 = arith.constant 0 : index
    %39 = vector.load %arg3[%c1_50, %c0_51, %c0_52, %c0_53] : memref<5x5x4x20xbf16, #tpu.memory_space<vmem>>, vector<1x1x4x20xbf16>
    %40 = vector.shape_cast %39 : vector<1x1x4x20xbf16> to vector<4x20xbf16>
    %cst_54 = arith.constant dense<0.000000e+00> : vector<4x256xf32>
    %41 = tpu.matmul %40, %38, %cst_54 {dimension_numbers = #tpu.dot_dimension_numbers<[1], [1], [0], [0], [0, 0, 1, 0], [], []>} : vector<4x20xbf16>, vector<256x20xbf16>, vector<4x256xf32> -> vector<4x256xf32>
    %42 = arith.addf %35, %41 : vector<4x256xf32>
    %c0_55 = arith.constant 0 : index
    %c1_56 = arith.constant 1 : index
    %c1_57 = arith.constant 1 : index
    %c0_58 = arith.constant 0 : index
    %c0_59 = arith.constant 0 : index
    %43 = vector.load %arg2[%c0_55, %c1_56, %c1_57, %c0_58, %c0_59] : memref<1x8x12x8x20xbf16, #tpu.memory_space<vmem>>, vector<1x4x8x8x20xbf16>
    %44 = vector.shape_cast %43 : vector<1x4x8x8x20xbf16> to vector<4x8x8x20xbf16>
    %45 = vector.shape_cast %44 : vector<4x8x8x20xbf16> to vector<256x20xbf16>
    %c1_60 = arith.constant 1 : index
    %c1_61 = arith.constant 1 : index
    %c0_62 = arith.constant 0 : index
    %c0_63 = arith.constant 0 : index
    %46 = vector.load %arg3[%c1_60, %c1_61, %c0_62, %c0_63] : memref<5x5x4x20xbf16, #tpu.memory_space<vmem>>, vector<1x1x4x20xbf16>
    %47 = vector.shape_cast %46 : vector<1x1x4x20xbf16> to vector<4x20xbf16>
    %cst_64 = arith.constant dense<0.000000e+00> : vector<4x256xf32>
    %48 = tpu.matmul %47, %45, %cst_64 {dimension_numbers = #tpu.dot_dimension_numbers<[1], [1], [0], [0], [0, 0, 1, 0], [], []>} : vector<4x20xbf16>, vector<256x20xbf16>, vector<4x256xf32> -> vector<4x256xf32>
    %49 = arith.addf %42, %48 : vector<4x256xf32>
    %c0_65 = arith.constant 0 : index
    %c1_66 = arith.constant 1 : index
    %c2_67 = arith.constant 2 : index
    %c0_68 = arith.constant 0 : index
    %c0_69 = arith.constant 0 : index
    %50 = vector.load %arg2[%c0_65, %c1_66, %c2_67, %c0_68, %c0_69] : memref<1x8x12x8x20xbf16, #tpu.memory_space<vmem>>, vector<1x4x8x8x20xbf16>
    %51 = vector.shape_cast %50 : vector<1x4x8x8x20xbf16> to vector<4x8x8x20xbf16>
    %52 = vector.shape_cast %51 : vector<4x8x8x20xbf16> to vector<256x20xbf16>
    %c1_70 = arith.constant 1 : index
    %c2_71 = arith.constant 2 : index
    %c0_72 = arith.constant 0 : index
    %c0_73 = arith.constant 0 : index
    %53 = vector.load %arg3[%c1_70, %c2_71, %c0_72, %c0_73] : memref<5x5x4x20xbf16, #tpu.memory_space<vmem>>, vector<1x1x4x20xbf16>
    %54 = vector.shape_cast %53 : vector<1x1x4x20xbf16> to vector<4x20xbf16>
    %cst_74 = arith.constant dense<0.000000e+00> : vector<4x256xf32>
    %55 = tpu.matmul %54, %52, %cst_74 {dimension_numbers = #tpu.dot_dimension_numbers<[1], [1], [0], [0], [0, 0, 1, 0], [], []>} : vector<4x20xbf16>, vector<256x20xbf16>, vector<4x256xf32> -> vector<4x256xf32>
    %56 = arith.addf %49, %55 : vector<4x256xf32>
    %c0_75 = arith.constant 0 : index
    %c1_76 = arith.constant 1 : index
    %c3_77 = arith.constant 3 : index
    %c0_78 = arith.constant 0 : index
    %c0_79 = arith.constant 0 : index
    %57 = vector.load %arg2[%c0_75, %c1_76, %c3_77, %c0_78, %c0_79] : memref<1x8x12x8x20xbf16, #tpu.memory_space<vmem>>, vector<1x4x8x8x20xbf16>
    %58 = vector.shape_cast %57 : vector<1x4x8x8x20xbf16> to vector<4x8x8x20xbf16>
    %59 = vector.shape_cast %58 : vector<4x8x8x20xbf16> to vector<256x20xbf16>
    %c1_80 = arith.constant 1 : index
    %c3_81 = arith.constant 3 : index
    %c0_82 = arith.constant 0 : index
    %c0_83 = arith.constant 0 : index
    %60 = vector.load %arg3[%c1_80, %c3_81, %c0_82, %c0_83] : memref<5x5x4x20xbf16, #tpu.memory_space<vmem>>, vector<1x1x4x20xbf16>
    %61 = vector.shape_cast %60 : vector<1x1x4x20xbf16> to vector<4x20xbf16>
    %cst_84 = arith.constant dense<0.000000e+00> : vector<4x256xf32>
    %62 = tpu.matmul %61, %59, %cst_84 {dimension_numbers = #tpu.dot_dimension_numbers<[1], [1], [0], [0], [0, 0, 1, 0], [], []>} : vector<4x20xbf16>, vector<256x20xbf16>, vector<4x256xf32> -> vector<4x256xf32>
    %63 = arith.addf %56, %62 : vector<4x256xf32>
    %c0_85 = arith.constant 0 : index
    %c1_86 = arith.constant 1 : index
    %c4_87 = arith.constant 4 : index
    %c0_88 = arith.constant 0 : index
    %c0_89 = arith.constant 0 : index
    %64 = vector.load %arg2[%c0_85, %c1_86, %c4_87, %c0_88, %c0_89] : memref<1x8x12x8x20xbf16, #tpu.memory_space<vmem>>, vector<1x4x8x8x20xbf16>
    %65 = vector.shape_cast %64 : vector<1x4x8x8x20xbf16> to vector<4x8x8x20xbf16>
    %66 = vector.shape_cast %65 : vector<4x8x8x20xbf16> to vector<256x20xbf16>
    %c1_90 = arith.constant 1 : index
    %c4_91 = arith.constant 4 : index
    %c0_92 = arith.constant 0 : index
    %c0_93 = arith.constant 0 : index
    %67 = vector.load %arg3[%c1_90, %c4_91, %c0_92, %c0_93] : memref<5x5x4x20xbf16, #tpu.memory_space<vmem>>, vector<1x1x4x20xbf16>
    %68 = vector.shape_cast %67 : vector<1x1x4x20xbf16> to vector<4x20xbf16>
    %cst_94 = arith.constant dense<0.000000e+00> : vector<4x256xf32>
    %69 = tpu.matmul %68, %66, %cst_94 {dimension_numbers = #tpu.dot_dimension_numbers<[1], [1], [0], [0], [0, 0, 1, 0], [], []>} : vector<4x20xbf16>, vector<256x20xbf16>, vector<4x256xf32> -> vector<4x256xf32>
    %70 = arith.addf %63, %69 : vector<4x256xf32>
    %c0_95 = arith.constant 0 : index
    %c2_96 = arith.constant 2 : index
    %c0_97 = arith.constant 0 : index
    %c0_98 = arith.constant 0 : index
    %c0_99 = arith.constant 0 : index
    %71 = vector.load %arg2[%c0_95, %c2_96, %c0_97, %c0_98, %c0_99] : memref<1x8x12x8x20xbf16, #tpu.memory_space<vmem>>, vector<1x4x8x8x20xbf16>
    %72 = vector.shape_cast %71 : vector<1x4x8x8x20xbf16> to vector<4x8x8x20xbf16>
    %73 = vector.shape_cast %72 : vector<4x8x8x20xbf16> to vector<256x20xbf16>
    %c2_100 = arith.constant 2 : index
    %c0_101 = arith.constant 0 : index
    %c0_102 = arith.constant 0 : index
    %c0_103 = arith.constant 0 : index
    %74 = vector.load %arg3[%c2_100, %c0_101, %c0_102, %c0_103] : memref<5x5x4x20xbf16, #tpu.memory_space<vmem>>, vector<1x1x4x20xbf16>
    %75 = vector.shape_cast %74 : vector<1x1x4x20xbf16> to vector<4x20xbf16>
    %cst_104 = arith.constant dense<0.000000e+00> : vector<4x256xf32>
    %76 = tpu.matmul %75, %73, %cst_104 {dimension_numbers = #tpu.dot_dimension_numbers<[1], [1], [0], [0], [0, 0, 1, 0], [], []>} : vector<4x20xbf16>, vector<256x20xbf16>, vector<4x256xf32> -> vector<4x256xf32>
    %77 = arith.addf %70, %76 : vector<4x256xf32>
    %c0_105 = arith.constant 0 : index
    %c2_106 = arith.constant 2 : index
    %c1_107 = arith.constant 1 : index
    %c0_108 = arith.constant 0 : index
    %c0_109 = arith.constant 0 : index
    %78 = vector.load %arg2[%c0_105, %c2_106, %c1_107, %c0_108, %c0_109] : memref<1x8x12x8x20xbf16, #tpu.memory_space<vmem>>, vector<1x4x8x8x20xbf16>
    %79 = vector.shape_cast %78 : vector<1x4x8x8x20xbf16> to vector<4x8x8x20xbf16>
    %80 = vector.shape_cast %79 : vector<4x8x8x20xbf16> to vector<256x20xbf16>
    %c2_110 = arith.constant 2 : index
    %c1_111 = arith.constant 1 : index
    %c0_112 = arith.constant 0 : index
    %c0_113 = arith.constant 0 : index
    %81 = vector.load %arg3[%c2_110, %c1_111, %c0_112, %c0_113] : memref<5x5x4x20xbf16, #tpu.memory_space<vmem>>, vector<1x1x4x20xbf16>
    %82 = vector.shape_cast %81 : vector<1x1x4x20xbf16> to vector<4x20xbf16>
    %cst_114 = arith.constant dense<0.000000e+00> : vector<4x256xf32>
    %83 = tpu.matmul %82, %80, %cst_114 {dimension_numbers = #tpu.dot_dimension_numbers<[1], [1], [0], [0], [0, 0, 1, 0], [], []>} : vector<4x20xbf16>, vector<256x20xbf16>, vector<4x256xf32> -> vector<4x256xf32>
    %84 = arith.addf %77, %83 : vector<4x256xf32>
    %c0_115 = arith.constant 0 : index
    %c2_116 = arith.constant 2 : index
    %c2_117 = arith.constant 2 : index
    %c0_118 = arith.constant 0 : index
    %c0_119 = arith.constant 0 : index
    %85 = vector.load %arg2[%c0_115, %c2_116, %c2_117, %c0_118, %c0_119] : memref<1x8x12x8x20xbf16, #tpu.memory_space<vmem>>, vector<1x4x8x8x20xbf16>
    %86 = vector.shape_cast %85 : vector<1x4x8x8x20xbf16> to vector<4x8x8x20xbf16>
    %87 = vector.shape_cast %86 : vector<4x8x8x20xbf16> to vector<256x20xbf16>
    %c2_120 = arith.constant 2 : index
    %c2_121 = arith.constant 2 : index
    %c0_122 = arith.constant 0 : index
    %c0_123 = arith.constant 0 : index
    %88 = vector.load %arg3[%c2_120, %c2_121, %c0_122, %c0_123] : memref<5x5x4x20xbf16, #tpu.memory_space<vmem>>, vector<1x1x4x20xbf16>
    %89 = vector.shape_cast %88 : vector<1x1x4x20xbf16> to vector<4x20xbf16>
    %cst_124 = arith.constant dense<0.000000e+00> : vector<4x256xf32>
    %90 = tpu.matmul %89, %87, %cst_124 {dimension_numbers = #tpu.dot_dimension_numbers<[1], [1], [0], [0], [0, 0, 1, 0], [], []>} : vector<4x20xbf16>, vector<256x20xbf16>, vector<4x256xf32> -> vector<4x256xf32>
    %91 = arith.addf %84, %90 : vector<4x256xf32>
    %c0_125 = arith.constant 0 : index
    %c2_126 = arith.constant 2 : index
    %c3_127 = arith.constant 3 : index
    %c0_128 = arith.constant 0 : index
    %c0_129 = arith.constant 0 : index
    %92 = vector.load %arg2[%c0_125, %c2_126, %c3_127, %c0_128, %c0_129] : memref<1x8x12x8x20xbf16, #tpu.memory_space<vmem>>, vector<1x4x8x8x20xbf16>
    %93 = vector.shape_cast %92 : vector<1x4x8x8x20xbf16> to vector<4x8x8x20xbf16>
    %94 = vector.shape_cast %93 : vector<4x8x8x20xbf16> to vector<256x20xbf16>
    %c2_130 = arith.constant 2 : index
    %c3_131 = arith.constant 3 : index
    %c0_132 = arith.constant 0 : index
    %c0_133 = arith.constant 0 : index
    %95 = vector.load %arg3[%c2_130, %c3_131, %c0_132, %c0_133] : memref<5x5x4x20xbf16, #tpu.memory_space<vmem>>, vector<1x1x4x20xbf16>
    %96 = vector.shape_cast %95 : vector<1x1x4x20xbf16> to vector<4x20xbf16>
    %cst_134 = arith.constant dense<0.000000e+00> : vector<4x256xf32>
    %97 = tpu.matmul %96, %94, %cst_134 {dimension_numbers = #tpu.dot_dimension_numbers<[1], [1], [0], [0], [0, 0, 1, 0], [], []>} : vector<4x20xbf16>, vector<256x20xbf16>, vector<4x256xf32> -> vector<4x256xf32>
    %98 = arith.addf %91, %97 : vector<4x256xf32>
    %c0_135 = arith.constant 0 : index
    %c2_136 = arith.constant 2 : index
    %c4_137 = arith.constant 4 : index
    %c0_138 = arith.constant 0 : index
    %c0_139 = arith.constant 0 : index
    %99 = vector.load %arg2[%c0_135, %c2_136, %c4_137, %c0_138, %c0_139] : memref<1x8x12x8x20xbf16, #tpu.memory_space<vmem>>, vector<1x4x8x8x20xbf16>
    %100 = vector.shape_cast %99 : vector<1x4x8x8x20xbf16> to vector<4x8x8x20xbf16>
    %101 = vector.shape_cast %100 : vector<4x8x8x20xbf16> to vector<256x20xbf16>
    %c2_140 = arith.constant 2 : index
    %c4_141 = arith.constant 4 : index
    %c0_142 = arith.constant 0 : index
    %c0_143 = arith.constant 0 : index
    %102 = vector.load %arg3[%c2_140, %c4_141, %c0_142, %c0_143] : memref<5x5x4x20xbf16, #tpu.memory_space<vmem>>, vector<1x1x4x20xbf16>
    %103 = vector.shape_cast %102 : vector<1x1x4x20xbf16> to vector<4x20xbf16>
    %cst_144 = arith.constant dense<0.000000e+00> : vector<4x256xf32>
    %104 = tpu.matmul %103, %101, %cst_144 {dimension_numbers = #tpu.dot_dimension_numbers<[1], [1], [0], [0], [0, 0, 1, 0], [], []>} : vector<4x20xbf16>, vector<256x20xbf16>, vector<4x256xf32> -> vector<4x256xf32>
    %105 = arith.addf %98, %104 : vector<4x256xf32>
    %c0_145 = arith.constant 0 : index
    %c3_146 = arith.constant 3 : index
    %c0_147 = arith.constant 0 : index
    %c0_148 = arith.constant 0 : index
    %c0_149 = arith.constant 0 : index
    %106 = vector.load %arg2[%c0_145, %c3_146, %c0_147, %c0_148, %c0_149] : memref<1x8x12x8x20xbf16, #tpu.memory_space<vmem>>, vector<1x4x8x8x20xbf16>
    %107 = vector.shape_cast %106 : vector<1x4x8x8x20xbf16> to vector<4x8x8x20xbf16>
    %108 = vector.shape_cast %107 : vector<4x8x8x20xbf16> to vector<256x20xbf16>
    %c3_150 = arith.constant 3 : index
    %c0_151 = arith.constant 0 : index
    %c0_152 = arith.constant 0 : index
    %c0_153 = arith.constant 0 : index
    %109 = vector.load %arg3[%c3_150, %c0_151, %c0_152, %c0_153] : memref<5x5x4x20xbf16, #tpu.memory_space<vmem>>, vector<1x1x4x20xbf16>
    %110 = vector.shape_cast %109 : vector<1x1x4x20xbf16> to vector<4x20xbf16>
    %cst_154 = arith.constant dense<0.000000e+00> : vector<4x256xf32>
    %111 = tpu.matmul %110, %108, %cst_154 {dimension_numbers = #tpu.dot_dimension_numbers<[1], [1], [0], [0], [0, 0, 1, 0], [], []>} : vector<4x20xbf16>, vector<256x20xbf16>, vector<4x256xf32> -> vector<4x256xf32>
    %112 = arith.addf %105, %111 : vector<4x256xf32>
    %c0_155 = arith.constant 0 : index
    %c3_156 = arith.constant 3 : index
    %c1_157 = arith.constant 1 : index
    %c0_158 = arith.constant 0 : index
    %c0_159 = arith.constant 0 : index
    %113 = vector.load %arg2[%c0_155, %c3_156, %c1_157, %c0_158, %c0_159] : memref<1x8x12x8x20xbf16, #tpu.memory_space<vmem>>, vector<1x4x8x8x20xbf16>
    %114 = vector.shape_cast %113 : vector<1x4x8x8x20xbf16> to vector<4x8x8x20xbf16>
    %115 = vector.shape_cast %114 : vector<4x8x8x20xbf16> to vector<256x20xbf16>
    %c3_160 = arith.constant 3 : index
    %c1_161 = arith.constant 1 : index
    %c0_162 = arith.constant 0 : index
    %c0_163 = arith.constant 0 : index
    %116 = vector.load %arg3[%c3_160, %c1_161, %c0_162, %c0_163] : memref<5x5x4x20xbf16, #tpu.memory_space<vmem>>, vector<1x1x4x20xbf16>
    %117 = vector.shape_cast %116 : vector<1x1x4x20xbf16> to vector<4x20xbf16>
    %cst_164 = arith.constant dense<0.000000e+00> : vector<4x256xf32>
    %118 = tpu.matmul %117, %115, %cst_164 {dimension_numbers = #tpu.dot_dimension_numbers<[1], [1], [0], [0], [0, 0, 1, 0], [], []>} : vector<4x20xbf16>, vector<256x20xbf16>, vector<4x256xf32> -> vector<4x256xf32>
    %119 = arith.addf %112, %118 : vector<4x256xf32>
    %c0_165 = arith.constant 0 : index
    %c3_166 = arith.constant 3 : index
    %c2_167 = arith.constant 2 : index
    %c0_168 = arith.constant 0 : index
    %c0_169 = arith.constant 0 : index
    %120 = vector.load %arg2[%c0_165, %c3_166, %c2_167, %c0_168, %c0_169] : memref<1x8x12x8x20xbf16, #tpu.memory_space<vmem>>, vector<1x4x8x8x20xbf16>
    %121 = vector.shape_cast %120 : vector<1x4x8x8x20xbf16> to vector<4x8x8x20xbf16>
    %122 = vector.shape_cast %121 : vector<4x8x8x20xbf16> to vector<256x20xbf16>
    %c3_170 = arith.constant 3 : index
    %c2_171 = arith.constant 2 : index
    %c0_172 = arith.constant 0 : index
    %c0_173 = arith.constant 0 : index
    %123 = vector.load %arg3[%c3_170, %c2_171, %c0_172, %c0_173] : memref<5x5x4x20xbf16, #tpu.memory_space<vmem>>, vector<1x1x4x20xbf16>
    %124 = vector.shape_cast %123 : vector<1x1x4x20xbf16> to vector<4x20xbf16>
    %cst_174 = arith.constant dense<0.000000e+00> : vector<4x256xf32>
    %125 = tpu.matmul %124, %122, %cst_174 {dimension_numbers = #tpu.dot_dimension_numbers<[1], [1], [0], [0], [0, 0, 1, 0], [], []>} : vector<4x20xbf16>, vector<256x20xbf16>, vector<4x256xf32> -> vector<4x256xf32>
    %126 = arith.addf %119, %125 : vector<4x256xf32>
    %c0_175 = arith.constant 0 : index
    %c3_176 = arith.constant 3 : index
    %c3_177 = arith.constant 3 : index
    %c0_178 = arith.constant 0 : index
    %c0_179 = arith.constant 0 : index
    %127 = vector.load %arg2[%c0_175, %c3_176, %c3_177, %c0_178, %c0_179] : memref<1x8x12x8x20xbf16, #tpu.memory_space<vmem>>, vector<1x4x8x8x20xbf16>
    %128 = vector.shape_cast %127 : vector<1x4x8x8x20xbf16> to vector<4x8x8x20xbf16>
    %129 = vector.shape_cast %128 : vector<4x8x8x20xbf16> to vector<256x20xbf16>
    %c3_180 = arith.constant 3 : index
    %c3_181 = arith.constant 3 : index
    %c0_182 = arith.constant 0 : index
    %c0_183 = arith.constant 0 : index
    %130 = vector.load %arg3[%c3_180, %c3_181, %c0_182, %c0_183] : memref<5x5x4x20xbf16, #tpu.memory_space<vmem>>, vector<1x1x4x20xbf16>
    %131 = vector.shape_cast %130 : vector<1x1x4x20xbf16> to vector<4x20xbf16>
    %cst_184 = arith.constant dense<0.000000e+00> : vector<4x256xf32>
    %132 = tpu.matmul %131, %129, %cst_184 {dimension_numbers = #tpu.dot_dimension_numbers<[1], [1], [0], [0], [0, 0, 1, 0], [], []>} : vector<4x20xbf16>, vector<256x20xbf16>, vector<4x256xf32> -> vector<4x256xf32>
    %133 = arith.addf %126, %132 : vector<4x256xf32>
    %c0_185 = arith.constant 0 : index
    %c3_186 = arith.constant 3 : index
    %c4_187 = arith.constant 4 : index
    %c0_188 = arith.constant 0 : index
    %c0_189 = arith.constant 0 : index
    %134 = vector.load %arg2[%c0_185, %c3_186, %c4_187, %c0_188, %c0_189] : memref<1x8x12x8x20xbf16, #tpu.memory_space<vmem>>, vector<1x4x8x8x20xbf16>
    %135 = vector.shape_cast %134 : vector<1x4x8x8x20xbf16> to vector<4x8x8x20xbf16>
    %136 = vector.shape_cast %135 : vector<4x8x8x20xbf16> to vector<256x20xbf16>
    %c3_190 = arith.constant 3 : index
    %c4_191 = arith.constant 4 : index
    %c0_192 = arith.constant 0 : index
    %c0_193 = arith.constant 0 : index
    %137 = vector.load %arg3[%c3_190, %c4_191, %c0_192, %c0_193] : memref<5x5x4x20xbf16, #tpu.memory_space<vmem>>, vector<1x1x4x20xbf16>
    %138 = vector.shape_cast %137 : vector<1x1x4x20xbf16> to vector<4x20xbf16>
    %cst_194 = arith.constant dense<0.000000e+00> : vector<4x256xf32>
    %139 = tpu.matmul %138, %136, %cst_194 {dimension_numbers = #tpu.dot_dimension_numbers<[1], [1], [0], [0], [0, 0, 1, 0], [], []>} : vector<4x20xbf16>, vector<256x20xbf16>, vector<4x256xf32> -> vector<4x256xf32>
    %140 = arith.addf %133, %139 : vector<4x256xf32>
    %c0_195 = arith.constant 0 : index
    %c4_196 = arith.constant 4 : index
    %c0_197 = arith.constant 0 : index
    %c0_198 = arith.constant 0 : index
    %c0_199 = arith.constant 0 : index
    %141 = vector.load %arg2[%c0_195, %c4_196, %c0_197, %c0_198, %c0_199] : memref<1x8x12x8x20xbf16, #tpu.memory_space<vmem>>, vector<1x4x8x8x20xbf16>
    %142 = vector.shape_cast %141 : vector<1x4x8x8x20xbf16> to vector<4x8x8x20xbf16>
    %143 = vector.shape_cast %142 : vector<4x8x8x20xbf16> to vector<256x20xbf16>
    %c4_200 = arith.constant 4 : index
    %c0_201 = arith.constant 0 : index
    %c0_202 = arith.constant 0 : index
    %c0_203 = arith.constant 0 : index
    %144 = vector.load %arg3[%c4_200, %c0_201, %c0_202, %c0_203] : memref<5x5x4x20xbf16, #tpu.memory_space<vmem>>, vector<1x1x4x20xbf16>
    %145 = vector.shape_cast %144 : vector<1x1x4x20xbf16> to vector<4x20xbf16>
    %cst_204 = arith.constant dense<0.000000e+00> : vector<4x256xf32>
    %146 = tpu.matmul %145, %143, %cst_204 {dimension_numbers = #tpu.dot_dimension_numbers<[1], [1], [0], [0], [0, 0, 1, 0], [], []>} : vector<4x20xbf16>, vector<256x20xbf16>, vector<4x256xf32> -> vector<4x256xf32>
    %147 = arith.addf %140, %146 : vector<4x256xf32>
    %c0_205 = arith.constant 0 : index
    %c4_206 = arith.constant 4 : index
    %c1_207 = arith.constant 1 : index
    %c0_208 = arith.constant 0 : index
    %c0_209 = arith.constant 0 : index
    %148 = vector.load %arg2[%c0_205, %c4_206, %c1_207, %c0_208, %c0_209] : memref<1x8x12x8x20xbf16, #tpu.memory_space<vmem>>, vector<1x4x8x8x20xbf16>
    %149 = vector.shape_cast %148 : vector<1x4x8x8x20xbf16> to vector<4x8x8x20xbf16>
    %150 = vector.shape_cast %149 : vector<4x8x8x20xbf16> to vector<256x20xbf16>
    %c4_210 = arith.constant 4 : index
    %c1_211 = arith.constant 1 : index
    %c0_212 = arith.constant 0 : index
    %c0_213 = arith.constant 0 : index
    %151 = vector.load %arg3[%c4_210, %c1_211, %c0_212, %c0_213] : memref<5x5x4x20xbf16, #tpu.memory_space<vmem>>, vector<1x1x4x20xbf16>
    %152 = vector.shape_cast %151 : vector<1x1x4x20xbf16> to vector<4x20xbf16>
    %cst_214 = arith.constant dense<0.000000e+00> : vector<4x256xf32>
    %153 = tpu.matmul %152, %150, %cst_214 {dimension_numbers = #tpu.dot_dimension_numbers<[1], [1], [0], [0], [0, 0, 1, 0], [], []>} : vector<4x20xbf16>, vector<256x20xbf16>, vector<4x256xf32> -> vector<4x256xf32>
    %154 = arith.addf %147, %153 : vector<4x256xf32>
    %c0_215 = arith.constant 0 : index
    %c4_216 = arith.constant 4 : index
    %c2_217 = arith.constant 2 : index
    %c0_218 = arith.constant 0 : index
    %c0_219 = arith.constant 0 : index
    %155 = vector.load %arg2[%c0_215, %c4_216, %c2_217, %c0_218, %c0_219] : memref<1x8x12x8x20xbf16, #tpu.memory_space<vmem>>, vector<1x4x8x8x20xbf16>
    %156 = vector.shape_cast %155 : vector<1x4x8x8x20xbf16> to vector<4x8x8x20xbf16>
    %157 = vector.shape_cast %156 : vector<4x8x8x20xbf16> to vector<256x20xbf16>
    %c4_220 = arith.constant 4 : index
    %c2_221 = arith.constant 2 : index
    %c0_222 = arith.constant 0 : index
    %c0_223 = arith.constant 0 : index
    %158 = vector.load %arg3[%c4_220, %c2_221, %c0_222, %c0_223] : memref<5x5x4x20xbf16, #tpu.memory_space<vmem>>, vector<1x1x4x20xbf16>
    %159 = vector.shape_cast %158 : vector<1x1x4x20xbf16> to vector<4x20xbf16>
    %cst_224 = arith.constant dense<0.000000e+00> : vector<4x256xf32>
    %160 = tpu.matmul %159, %157, %cst_224 {dimension_numbers = #tpu.dot_dimension_numbers<[1], [1], [0], [0], [0, 0, 1, 0], [], []>} : vector<4x20xbf16>, vector<256x20xbf16>, vector<4x256xf32> -> vector<4x256xf32>
    %161 = arith.addf %154, %160 : vector<4x256xf32>
    %c0_225 = arith.constant 0 : index
    %c4_226 = arith.constant 4 : index
    %c3_227 = arith.constant 3 : index
    %c0_228 = arith.constant 0 : index
    %c0_229 = arith.constant 0 : index
    %162 = vector.load %arg2[%c0_225, %c4_226, %c3_227, %c0_228, %c0_229] : memref<1x8x12x8x20xbf16, #tpu.memory_space<vmem>>, vector<1x4x8x8x20xbf16>
    %163 = vector.shape_cast %162 : vector<1x4x8x8x20xbf16> to vector<4x8x8x20xbf16>
    %164 = vector.shape_cast %163 : vector<4x8x8x20xbf16> to vector<256x20xbf16>
    %c4_230 = arith.constant 4 : index
    %c3_231 = arith.constant 3 : index
    %c0_232 = arith.constant 0 : index
    %c0_233 = arith.constant 0 : index
    %165 = vector.load %arg3[%c4_230, %c3_231, %c0_232, %c0_233] : memref<5x5x4x20xbf16, #tpu.memory_space<vmem>>, vector<1x1x4x20xbf16>
    %166 = vector.shape_cast %165 : vector<1x1x4x20xbf16> to vector<4x20xbf16>
    %cst_234 = arith.constant dense<0.000000e+00> : vector<4x256xf32>
    %167 = tpu.matmul %166, %164, %cst_234 {dimension_numbers = #tpu.dot_dimension_numbers<[1], [1], [0], [0], [0, 0, 1, 0], [], []>} : vector<4x20xbf16>, vector<256x20xbf16>, vector<4x256xf32> -> vector<4x256xf32>
    %168 = arith.addf %161, %167 : vector<4x256xf32>
    %c0_235 = arith.constant 0 : index
    %c4_236 = arith.constant 4 : index
    %c4_237 = arith.constant 4 : index
    %c0_238 = arith.constant 0 : index
    %c0_239 = arith.constant 0 : index
    %169 = vector.load %arg2[%c0_235, %c4_236, %c4_237, %c0_238, %c0_239] : memref<1x8x12x8x20xbf16, #tpu.memory_space<vmem>>, vector<1x4x8x8x20xbf16>
    %170 = vector.shape_cast %169 : vector<1x4x8x8x20xbf16> to vector<4x8x8x20xbf16>
    %171 = vector.shape_cast %170 : vector<4x8x8x20xbf16> to vector<256x20xbf16>
    %c4_240 = arith.constant 4 : index
    %c4_241 = arith.constant 4 : index
    %c0_242 = arith.constant 0 : index
    %c0_243 = arith.constant 0 : index
    %172 = vector.load %arg3[%c4_240, %c4_241, %c0_242, %c0_243] : memref<5x5x4x20xbf16, #tpu.memory_space<vmem>>, vector<1x1x4x20xbf16>
    %173 = vector.shape_cast %172 : vector<1x1x4x20xbf16> to vector<4x20xbf16>
    %cst_244 = arith.constant dense<0.000000e+00> : vector<4x256xf32>
    %174 = tpu.matmul %173, %171, %cst_244 {dimension_numbers = #tpu.dot_dimension_numbers<[1], [1], [0], [0], [0, 0, 1, 0], [], []>} : vector<4x20xbf16>, vector<256x20xbf16>, vector<4x256xf32> -> vector<4x256xf32>
    %175 = arith.addf %168, %174 : vector<4x256xf32>
    %c0_245 = arith.constant 0 : index
    %c0_246 = arith.constant 0 : index
    %176 = vector.load %arg4[%c0_245, %c0_246] : memref<4x1xf32, #tpu.memory_space<vmem>>, vector<4x1xf32>
    %177 = vector.broadcast %176 : vector<4x1xf32> to vector<4x256xf32>
    %178 = arith.mulf %175, %177 : vector<4x256xf32>
    %c0_247 = arith.constant 0 : index
    %c0_248 = arith.constant 0 : index
    %179 = vector.load %arg5[%c0_247, %c0_248] : memref<4x1xf32, #tpu.memory_space<vmem>>, vector<4x1xf32>
    %180 = vector.broadcast %179 : vector<4x1xf32> to vector<4x256xf32>
    %181 = arith.addf %178, %180 : vector<4x256xf32>
    %cst_249 = arith.constant 0.000000e+00 : f32
    %182 = vector.broadcast %cst_249 : f32 to vector<4x256xf32>
    %183 = arith.cmpf ogt, %181, %182 : vector<4x256xf32>
    %cst_250 = arith.constant 0.000000e+00 : f32
    %184 = vector.broadcast %cst_250 : f32 to vector<4x256xf32>
    %185 = arith.minimumf %181, %184 : vector<4x256xf32>
    %186 = math.exp %185 : vector<4x256xf32>
    %cst_251 = arith.constant 1.000000e+00 : f32
    %187 = vector.broadcast %cst_251 : f32 to vector<4x256xf32>
    %188 = arith.subf %186, %187 : vector<4x256xf32>
    %189 = arith.select %183, %181, %188 : vector<4x256xi1>, vector<4x256xf32>
    %c0_252 = arith.constant 0 : index
    %c0_253 = arith.constant 0 : index
    %c0_254 = arith.constant 0 : index
    %190 = vector.load %arg6[%c0_252, %c0_253, %c0_254] : memref<1x4x256xbf16, #tpu.memory_space<vmem>>, vector<1x4x256xbf16>
    %191 = vector.shape_cast %190 : vector<1x4x256xbf16> to vector<4x256xbf16>
    %192 = arith.extf %191 : vector<4x256xbf16> to vector<4x256xf32>
    %193 = arith.addf %189, %192 : vector<4x256xf32>
    %cst_255 = arith.constant 0.000000e+00 : f32
    %194 = vector.broadcast %cst_255 : f32 to vector<4x256xf32>
    %195 = arith.cmpf ogt, %193, %194 : vector<4x256xf32>
    %cst_256 = arith.constant 0.000000e+00 : f32
    %196 = vector.broadcast %cst_256 : f32 to vector<4x256xf32>
    %197 = arith.minimumf %193, %196 : vector<4x256xf32>
    %198 = math.exp %197 : vector<4x256xf32>
    %cst_257 = arith.constant 1.000000e+00 : f32
    %199 = vector.broadcast %cst_257 : f32 to vector<4x256xf32>
    %200 = arith.subf %198, %199 : vector<4x256xf32>
    %201 = arith.select %195, %193, %200 : vector<4x256xi1>, vector<4x256xf32>
    %c0_258 = arith.constant 0 : index
    %c0_259 = arith.constant 0 : index
    %c0_260 = arith.constant 0 : index
    %202 = vector.load %arg7[%c0_258, %c0_259, %c0_260] : memref<1x4x256xf32, #tpu.memory_space<vmem>>, vector<1x4x256xf32>
    %203 = vector.shape_cast %202 : vector<1x4x256xf32> to vector<4x256xf32>
    %204 = vector.shape_cast %201 : vector<4x256xf32> to vector<1x4x256xf32>
    tpu.vector_store %arg7[%c0_258, %c0_259, %c0_260], %204 {strides = array<i32>} : memref<1x4x256xf32, #tpu.memory_space<vmem>>, vector<1x4x256xf32>,
    return
  }
  func.func @transform_0(%arg0: i32, %arg1: i32) -> (i32, i32, i32, i32, i32) {
    %c2_i32 = arith.constant 2 : i32
    %0 = arith.muli %arg0, %c2_i32 : i32
    %1 = arith.addi %0, %arg1 : i32
    %c0_i32 = arith.constant 0 : i32
    %c0_i32_0 = arith.constant 0 : i32
    %c0_i32_1 = arith.constant 0 : i32
    %c0_i32_2 = arith.constant 0 : i32
    %c0_i32_3 = arith.constant 0 : i32
    return %1, %c0_i32, %c0_i32_0, %c0_i32_1, %c0_i32_2 : i32, i32, i32, i32, i32
  }
  func.func @transform_1(%arg0: i32, %arg1: i32) -> (i32, i32, i32, i32) {
    %c0_i32 = arith.constant 0 : i32
    %c0_i32_0 = arith.constant 0 : i32
    %c0_i32_1 = arith.constant 0 : i32
    %c0_i32_2 = arith.constant 0 : i32
    %c0_i32_3 = arith.constant 0 : i32
    return %c0_i32, %c0_i32_0, %c0_i32_1, %c0_i32_2 : i32, i32, i32, i32
  }
  func.func @transform_2(%arg0: i32, %arg1: i32) -> (i32, i32) {
    %c0_i32 = arith.constant 0 : i32
    %c0_i32_0 = arith.constant 0 : i32
    %c0_i32_1 = arith.constant 0 : i32
    return %c0_i32, %c0_i32_0 : i32, i32
  }
  func.func @transform_3(%arg0: i32, %arg1: i32) -> (i32, i32) {
    %c0_i32 = arith.constant 0 : i32
    %c0_i32_0 = arith.constant 0 : i32
    %c0_i32_1 = arith.constant 0 : i32
    return %c0_i32, %c0_i32_0 : i32, i32
  }
  func.func @transform_4(%arg0: i32, %arg1: i32) -> (i32, i32, i32) {
    %c0_i32 = arith.constant 0 : i32
    %c0_i32_0 = arith.constant 0 : i32
    return %arg0, %c0_i32, %arg1 : i32, i32, i32
  }
  func.func @transform_5(%arg0: i32, %arg1: i32) -> (i32, i32, i32) {
    %c0_i32 = arith.constant 0 : i32
    %c0_i32_0 = arith.constant 0 : i32
    return %arg0, %c0_i32, %arg1 : i32, i32, i32
  }
}

</mosaic_0001>

<bundles_post_ra>
// kernel: up_transition_forward.2
= control target key start
LH: loop header
LB: loop body
LE: loop exit
PB: predicated region body
PF: predicated region fallthrough
CT: control target
= control target key end

     0   :  { %9 = vsyncpa [#allocation3], 0  ;;  %s606_s15 = smov 0   ;;  %s608_s16 = smov 0   ;;  %s698_s0 = inlined_call_operand.vmem [shape: bf16[2,4,64], index: 0, kind: input, shape index: {}]   ;;  %s699_s1 = inlined_call_operand.hbm [shape: bf16[16,4], index: 1, kind: input, shape index: {}]   ;;  %s700_s2 = inlined_call_operand.vmem [shape: f32[16,1], index: 2, kind: input, shape index: {}]   ;;  %s701_s3 = inlined_call_operand.vmem [shape: f32[16,1], index: 3, kind: input, shape index: {}]   ;;  %s702_s4 = inlined_call_operand.vmem [shape: bf16[2,16,64], index: 4, kind: output, shape index: {}]  }
   0x1   :  { %s610_s17 = smov 0  }
   0x2 LB: > { %s443_s18 = sadd.s32 4294967295, %s573_s17   ;;  %s27_s19 = sadd.s32 1, %s569_s16  ;;  %s573_s17 = sphi %s610_s17, %s15_s17   ;;  %s569_s16 = sphi %s608_s16, %s712_s16   ;;  %s565_s15 = sphi %s606_s15, %s711_s15  }
   0x3   : > { %p29_p0 = scmp.ge.s32.totalorder %s27_s19, 2  ;;  %p445_p1 = scmp.ge.s32.totalorder %s573_s17, 1 }
   0x4   : > { %p151_p2 = scmp.lt.s32.totalorder %s573_s17, 3  ;;  %p631_p4 = scmp.eq.s32.totalorder %s443_s18, 0 }
   0x5   : > { %s714_s19 = smov (%p29_p0, %s27_s19), 0  ;;  %s575_s22 = smov [#allocation2]  }
   0x6   : > { %p627_p3 = pnand %p445_p1, %p151_p2  ;;  %s163_s23 = sshll.u32 %s575_s22, 4  ;;  %s164_s23 = int_to_ptr.vmem [resolvable:$true] %s163_s23 }
   0x7   : > { %s707_s21 = scalar_select %p631_p4, 1, 0 }
   0x8   : > { %s706_s20 = scalar_select %p627_p3, 1, 0 }
   0x9   : > { %p476_p5 = pneg %p627_p3  ;;  %s519_s27 = scalar_lea.hbm %s699_s1, 128 }
   0xa   : > { %p520_p7 = scmp.ne.s32.totalorder %s699_s1, %s519_s27  ;;  %p526_p11 = scmp.lt.u32.totalorder %s519_s27, %s699_s1 }
   0xb   : > { %p639_p6 = pnand %p631_p4, %p476_p5 }
   0xd   : > { %p521_p8 = pneg %p639_p6 }
   0xf   : > { %p522_p9 = pnand %p521_p8, %p520_p7 }
  0x11   : > { %p523_p10 = pneg %p522_p9 }
  0x13   : > { %p528_p12 = pnand %p526_p11, %p523_p10 }
  0x15   : > { %531 = shalt.err (!%p528_p12)
}
  0x16   : > { %s532_s6 = scalar_lea.vmem %s164_s23, 128  ;;  %p540_p2 = scmp.lt.s32.totalorder %s164_s23, %s164_s23 }
  0x17   : > { %p533_p13 = scmp.ne.s32.totalorder %s164_s23, %s532_s6  ;;  %p541_p5 = scmp.lt.s32.totalorder %s532_s6, %s532_s6 }
  0x19   : > { %p535_p0 = pnand %p533_p13, %p521_p8  ;;  %p542_p4 = por %p541_p5, %p540_p2 }
  0x1b   : > { %p536_p1 = pneg %p535_p0 }
  0x1d   : > { %p543_p3 = pnand %p542_p4, %p536_p1 }
  0x1f   : > { %546 = shalt.err (!%p543_p3)
}
  0x20   : > { %s576_s7 = smov 64   ;;  %s577_s8 = smov 4  }
  0x21   : > { %479 = dma.hbm_to_vmem [thread:$0]  (!%p639_p6), %s699_s1, 128, %s164_s23, [#allocation3], %s576_s7, %s576_s7, %s577_s8  }
  0x22   : > { %p709_p7 = scmp.ne.s32.totalorder %s706_s20, 0 }
  0x23   : > { %p710_p9 = scmp.ne.s32.totalorder (!%p709_p7), %s707_s21, 0 }
  0x24   : > { %195 = sbr.rel (%p709_p7) target bundleno = 293 (0x125), region = 36 }
  0x2b   : > { %560 = dma.done.wait (%p710_p9), [#allocation3], 128  }
  0x2c   : > { %562 = vsyncadd (%p710_p9), [#allocation3], 4294967168  ;;  %p226_p3 = scmp.lt.s32.totalorder %s565_s15, 1  ;;  %v578_v0 = vmov 0.0   ;;  %vm579_vm0 = vmmov 0   ;;  %v580_v1 = vmov 0  }
  0x2d   : > { %466 = vmatprep.subr.bf16.mxu0 %v578_v0  ;;  %468 = vmatprep.mubr.msk.bf16.mxu0 %vm579_vm0, %v578_v0  ;;  %vm254_vm1 = vcmask 1041408   ;;  %v514_v4 = vld [vmem:[#allocation2] sm:$0xff]   ;;  %vm250_vm2 = vcmask 31744   ;;  %v300_v7 = vld [vmem:[%s700_s2 + $0x8] sm:$0xff]  ;;  %vm347_vm4 = vcmask 519168  }
  0x2e   : > { %s716_s15 = smov (!%p226_p3, %s565_s15), 1  ;;  %512 = vset.pattern.permute.xlu0 %v580_v1  ;;  %513 = vset.pattern.permute.xlu1 %v580_v1  ;;  %v299_v5 = vld [vmem:[%s700_s2] sm:$0xff]  ;;  %v314_v8 = vld [vmem:[%s701_s3 + $0x8] sm:$0xff] }
  0x2f   : > { %s450_s11 = sshll.u32 %s716_s15, 1  ;;  %v313_v6 = vld [vmem:[%s701_s3] sm:$0xff]  ;;  %303 = vperm.xlu0 %512, %v299_v5   ;;  %s461_s27 = sshll.u32 %s716_s15, 3 }
  0x30   : > { %s232_s14 = scalar_lea.vmem %s698_s0, %s450_s11  ;;  %317 = vperm.xlu1 %513, %v313_v6   ;;  %s240_s30 = scalar_lea.vmem %s702_s4, %s461_s27 }
  0x31   : > { %v244_v2 = vld [vmem:[%s232_s14] sm:$0x3] }
  0x32   : > { %v256_v3 = vsel %vm254_vm1, %v244_v2, 0 }
  0x33   : > { %467 = vmatpush3.bf16.msra.mxu0 %v256_v3  ;;  %308 = vperm.xlu0 %512, %v300_v7  }
  0x34   : > { %322 = vperm.xlu1 %513, %v314_v8  }
  0x36   : > { %469 = vmatmul.mubr.msk.bf16.vlgmr.msra.gmra.mrb[0].mxu0 %vm250_vm2, %v514_v4 }
  0xae   : > { %v304_v9 = vpop.permute.xlu0 %303 }
  0xaf   : > { %v318_v10 = vpop.permute.xlu1 %317 }
  0xb2   : > { %v309_v14 = vpop.permute.xlu0 %308 }
  0xb3   : > { %v323_v19 = vpop.permute.xlu1 %322 }
 0x109   : > { %v292_v11 = vpop.f32.mrb[0].mxu0 }
 0x10a   : > { %v311_v12 = vmul.f32 %v304_v9, %v292_v11  ;;  %v470_v13 = vpop.f32.mrb[1].mxu0 }
 0x10b   : > { %v295_v15 = vpop.f32.mrb[2].mxu0 }
 0x10c   : > { %v325_v16 = vadd.f32 %v318_v10, %v311_v12  ;;  %v312_v17 = vmul.f32 %v309_v14, %v295_v15  ;;  %v471_v18 = vpop.f32.mrb[3].mxu0 }
 0x10e   : > { %v329_v20 = vmin.f32 %v325_v16, 0.0  ;;  %v326_v21 = vadd.f32 %v323_v19, %v312_v17  ;;  %vm327_vm3 = vcmp.gt.f32.partialorder %v325_v16, 0.0 }
 0x110   : > { %v331_v22 = vmul.f32 1.442695, %v329_v20  ;;  %v330_v23 = vmin.f32 %v326_v21, 0.0  ;;  %vm328_vm5 = vcmp.gt.f32.partialorder %v326_v21, 0.0 }
 0x112   : > { %515 = vpow2.f32 %v331_v22  ;;  %v333_v24 = vmul.f32 1.442695, %v330_v23 }
 0x114   : > { %517 = vpow2.f32 %v333_v24 }
 0x11c   : > { %v516_v25 = vpop.eup %515 }
 0x11d   : > { %v455_v26 = vadd.f32 -1.0, %v516_v25 }
 0x11e   : > { %v518_v27 = vpop.eup %517 }
 0x11f   : > { %v337_v28 = vsel %vm327_vm3, %v325_v16, %v455_v26  ;;  %v456_v29 = vadd.f32 -1.0, %v518_v27 }
 0x120   : > { %v462_v30 = vpack.c.bf16 %v337_v28, %v337_v28 }
 0x121   : > { %v338_v31 = vsel %vm328_vm5, %v326_v21, %v456_v29 }
 0x122   : > { %348 = vst.msk [vmem:[%s240_s30] sm:$0xf] %vm347_vm4, %v462_v30  ;;  %v463_v32 = vpack.c.bf16 %v338_v31, %v338_v31 }
 0x124   : > { %349 = vst.msk [vmem:[%s240_s30 + $0x4] sm:$0xf] %vm347_vm4, %v463_v32 }
 0x125 PF: > { %s15_s17 = sadd.s32 1, %s573_s17   ;;  %s711_s15 = smov %s569_s16 }
 0x126   : > { %p12_p4 = scmp.ge.s32.totalorder %s15_s17, 4   ;;  %s712_s16 = smov %s714_s19 }
 0x128   :  { %14 = sbr.rel (!%p12_p4) target bundleno = 2 (0x2), region = 71 }
 0x12f   :  { %377 = vsyncpa [#allocation3], 1 }
 0x130   :  { %379 = vsyncpa [#allocation3 + $0x1], 1 }

// kernel: up_transition_forward.3
= control target key start
LH: loop header
LB: loop body
LE: loop exit
PB: predicated region body
PF: predicated region fallthrough
CT: control target
= control target key end

     0   :  { %s8177_s18 = smov 0   ;;  %s8179_s19 = smov 0   ;;  %s9273_s0 = inlined_call_operand.vmem [shape: bf16[4,8,12,8,20], index: 0, kind: input, shape index: {}]   ;;  %s9274_s1 = inlined_call_operand.vmem [shape: bf16[5,5,4,20], index: 1, kind: input, shape index: {}]   ;;  %s9275_s2 = inlined_call_operand.vmem [shape: f32[4,1], index: 2, kind: input, shape index: {}]   ;;  %s9276_s3 = inlined_call_operand.vmem [shape: f32[4,1], index: 3, kind: input, shape index: {}]   ;;  %s9277_s4 = inlined_call_operand.vmem [shape: bf16[2,4,512], index: 4, kind: input, shape index: {}]   ;;  %s9278_s5 = inlined_call_operand.vmem [shape: f32[2,4,512], index: 5, kind: output, shape index: {}]  }
   0x1   :  { %s8181_s20 = smov 0   ;;  %s8183_s21 = smov 0  }
   0x2   :  { %s8185_s22 = smov 0  }
   0x3 LB: > { %s24_s23 = sadd.s32 1, %s8136_s20  ;;  %s27_s24 = sadd.s32 1, %s8140_s21  ;;  %s8144_s22 = sphi %s8185_s22, %s15_s22   ;;  %s8140_s21 = sphi %s8183_s21, %s9282_s21   ;;  %s8136_s20 = sphi %s8181_s20, %s9281_s20   ;;  %s8132_s19 = sphi %s8179_s19, %s9280_s19   ;;  %s8128_s18 = sphi %s8177_s18, %s9279_s18  }
   0x4   : > { %p25_p0 = scmp.ge.s32.totalorder %s24_s23, 2  ;;  %p5679_p1 = scmp.ge.s32.totalorder %s8144_s22, 1 }
   0x5   : > { %p226_p2 = scmp.lt.s32.totalorder %s8144_s22, 5 }
   0x6   : > { %s9284_s23 = smov (%p25_p0, %s24_s23), 0  ;;  %s9286_s24 = smov (!%p25_p0, %s27_s24), %s8140_s21 }
   0x7   : > { %p227_p3 = pnand %p5679_p1, %p226_p2  ;;  %p29_p4 = scmp.ge.s32.totalorder %s9286_s24, 2 }
   0x8   : > { %s5680_s25 = sshll.u32 (!%p227_p3), %s8132_s19, 1  ;;  %vm447_vm0 = vcmask (!%p227_p3), 162816   ;;  %v8215_v0 = vld [vmem:[%s9274_s1 + $0x2] sm:$0x3] (!%p227_p3)  ;;  %v8220_v1 = vld [vmem:[%s9274_s1 + $0x18] sm:$0x3] (!%p227_p3) }
   0x9   : > { %s9288_s24 = smov (%p29_p4, %s9286_s24), 0  ;;  %230 = sbr.rel (%p227_p3) target bundleno = 1116 (0x45c), region = 40 }
   0xa   : > { %s270_s30 = sadd.s32 (!%p227_p3), %s8128_s18, %s5680_s25  ;;  %6927 = vmatprep.mubr.msk.bf16.mxu1 (!%p227_p3), %vm447_vm0, %v8215_v0  ;;  %7143 = vmatprep.mubr.msk.bf16.mxu0 (!%p227_p3), %vm447_vm0, %v8220_v1  ;;  %v8311_v58 = vld [vmem:[%s9274_s1] sm:$0x3] (!%p227_p3)  ;;  %v8318_v59 = vld [vmem:[%s9274_s1 + $0x1a] sm:$0x3] (!%p227_p3)  ;;  %s5682_s8 = sshll.u32 (!%p227_p3), %s8128_s18, 1 }
   0xb   : > { %p271_p5 = scmp.lt.s32.totalorder (!%p227_p3), %s270_s30, 3  ;;  %p279_p6 = scmp.lt.s32.totalorder (!%p227_p3), %s8132_s19, 1 }
   0xc   : > { %p281_p7 = scmp.lt.s32.totalorder (!%p227_p3), %s5682_s8, 3 }
  0x10   : > { %s9290_s30 = smov (!%p271_p5, %s270_s30), 3  ;;  %s9292_s19 = smov (!%p279_p6, %s8132_s19), 1 }
  0x11   : > { %s7655_s6 = smul.u32 384, %s9290_s30  ;;  %s9294_s8 = smov (!%p281_p7, %s5682_s8), 3 }
  0x13   : > { %s8230_s9 = scalar_lea.vmem %s9273_s0, %s7655_s6 }
  0x14   : > { %v7698_v2 = vld [vmem:[%s8230_s9 + $0x64] sm:$0xff]   ;;  %v7702_v7 = vld [vmem:[%s8230_s9 + $0x6c] sm:$0xff]   ;;  %v7706_v13 = vld [vmem:[%s8230_s9 + $0x74] sm:$0xff]  }
  0x15   : > { %v7699_v3 = vld [vmem:[%s8230_s9 + $0xc8] sm:$0xff]   ;;  %7455 = vmatprep.subr.msk.bf16.mxu1 %vm447_vm0, %v7698_v2  ;;  %v7703_v9 = vld [vmem:[%s8230_s9 + $0xd0] sm:$0xff]   ;;  %v7707_v15 = vld [vmem:[%s8230_s9 + $0xd8] sm:$0xff]  }
  0x16   : > { %v7700_v4 = vld [vmem:[%s8230_s9 + $0x4] sm:$0xff]   ;;  %7551 = vmatprep.subr.msk.bf16.mxu0 %vm447_vm0, %v7699_v3  ;;  %v7704_v10 = vld [vmem:[%s8230_s9 + $0xc] sm:$0xff]   ;;  %v7708_v16 = vld [vmem:[%s8230_s9 + $0x14] sm:$0xff]  }
  0x17   : > { %v7701_v5 = vld [vmem:[%s8230_s9 + $0x68] sm:$0xff]   ;;  %v452_v6 = vsel %vm447_vm0, %v7700_v4, 0  ;;  %v7705_v11 = vld [vmem:[%s8230_s9 + $0x70] sm:$0xff]   ;;  %v455_v12 = vsel %vm447_vm0, %v7704_v10, 0  ;;  %v7709_v17 = vld [vmem:[%s8230_s9 + $0x78] sm:$0xff]   ;;  %v458_v18 = vsel %vm447_vm0, %v7708_v16, 0 }
  0x18   : > { %6912 = vmatpush3.bf16.xpose.msra.mxu1 %v452_v6  ;;  %v2921_v8 = vsel %vm447_vm0, %v7701_v5, 0  ;;  %v2924_v14 = vsel %vm447_vm0, %v7705_v11, 0  ;;  %v7710_v19 = vld [vmem:[%s8230_s9 + $0x7c] sm:$0xff]   ;;  %v2927_v20 = vsel %vm447_vm0, %v7709_v17, 0  ;;  %v7714_v25 = vld [vmem:[%s8230_s9 + $0x94] sm:$0xff]   ;;  %v7722_v37 = vld [vmem:[%s8230_s9 + $0xa4] sm:$0xff]  }
  0x19   : > { %7128 = vmatpush3.bf16.xpose.msra.mxu0 %v2921_v8  ;;  %7456 = vmatprep.subr.msk.bf16.mxu1 %vm447_vm0, %v7702_v7  ;;  %v7711_v21 = vld [vmem:[%s8230_s9 + $0xe0] sm:$0xff]   ;;  %v7715_v27 = vld [vmem:[%s8230_s9 + $0xf8] sm:$0xff]   ;;  %v7723_v39 = vld [vmem:[%s8230_s9 + $0x108] sm:$0xff]  }
  0x1a   : > { %7552 = vmatprep.subr.msk.bf16.mxu0 %vm447_vm0, %v7703_v9  ;;  %v7712_v22 = vld [vmem:[%s8230_s9 + $0x1c] sm:$0xff]   ;;  %v7716_v28 = vld [vmem:[%s8230_s9 + $0x34] sm:$0xff]   ;;  %v7724_v40 = vld [vmem:[%s8230_s9 + $0x44] sm:$0xff]  }
  0x1b   : > { %v7713_v23 = vld [vmem:[%s8230_s9 + $0x80] sm:$0xff]   ;;  %v461_v24 = vsel %vm447_vm0, %v7712_v22, 0  ;;  %v7717_v29 = vld [vmem:[%s8230_s9 + $0x98] sm:$0xff]   ;;  %v464_v30 = vsel %vm447_vm0, %v7716_v28, 0  ;;  %v7725_v41 = vld [vmem:[%s8230_s9 + $0xa8] sm:$0xff]   ;;  %v470_v42 = vsel %vm447_vm0, %v7724_v40, 0 }
  0x1c   : > { %v2930_v26 = vsel %vm447_vm0, %v7713_v23, 0  ;;  %v7718_v31 = vld [vmem:[%s8230_s9 + $0x9c] sm:$0xff]   ;;  %v2933_v32 = vsel %vm447_vm0, %v7717_v29, 0  ;;  %v7726_v43 = vld [vmem:[%s8230_s9 + $0xac] sm:$0xff]   ;;  %v2939_v44 = vsel %vm447_vm0, %v7725_v41, 0  ;;  %v7735_v57 = vld [vmem:[%s8230_s9 + $0xd4] sm:$0xff]  }
  0x1d   : > { %v7719_v33 = vld [vmem:[%s8230_s9 + $0x100] sm:$0xff]   ;;  %v7727_v45 = vld [vmem:[%s8230_s9 + $0x110] sm:$0xff]   ;;  %v7734_v55 = vld [vmem:[%s8230_s9 + $0x68] sm:$0xff]  }
  0x1e   : > { %v7720_v34 = vld [vmem:[%s8230_s9 + $0x3c] sm:$0xff]   ;;  %v7728_v46 = vld [vmem:[%s8230_s9 + $0x4c] sm:$0xff]   ;;  %v7737_v61 = vld [vmem:[%s8230_s9 + $0x74] sm:$0xff]  }
  0x1f   : > { %v7721_v35 = vld [vmem:[%s8230_s9 + $0xa0] sm:$0xff]   ;;  %v467_v36 = vsel %vm447_vm0, %v7720_v34, 0  ;;  %v7729_v47 = vld [vmem:[%s8230_s9 + $0xb0] sm:$0xff]   ;;  %v473_v48 = vsel %vm447_vm0, %v7728_v46, 0  ;;  %v7736_v60 = vld [vmem:[%s8230_s9 + $0x8] sm:$0xff]  }
  0x20   : > { %6914 = vmatpush3.bf16.xpose.msra.mxu1 %v455_v12  ;;  %v2936_v38 = vsel %vm447_vm0, %v7721_v35, 0  ;;  %v7730_v49 = vld [vmem:[%s8230_s9 + $0x60] sm:$0xff]   ;;  %v2942_v50 = vsel %vm447_vm0, %v7729_v47, 0  ;;  %v7731_v51 = vld [vmem:[%s8230_s9 + $0xcc] sm:$0xff]   ;;  %v627_v62 = vsel %vm447_vm0, %v7736_v60, 0  ;;  %v7742_v5 = vld [vmem:[%s8230_s9 + $0x78] sm:$0xff]  }
  0x21   : > { %7130 = vmatpush3.bf16.xpose.msra.mxu0 %v2924_v14  ;;  %7457 = vmatprep.subr.msk.bf16.mxu1 %vm447_vm0, %v7706_v13  ;;  %v7732_v52 = vld [vmem:[%s8230_s9] sm:$0xff]   ;;  %v7733_v53 = vld [vmem:[%s8230_s9 + $0x6c] sm:$0xff]   ;;  %v7744_v8 = vld [vmem:[%s8230_s9 + $0x18] sm:$0xff]  }
  0x22   : > { %7553 = vmatprep.subr.msk.bf16.mxu0 %vm447_vm0, %v7707_v15  ;;  %v624_v54 = vsel %vm447_vm0, %v7732_v52, 0  ;;  %v3130_v56 = vsel %vm447_vm0, %v7733_v53, 0  ;;  %v7738_v63 = vld [vmem:[%s8230_s9 + $0x70] sm:$0xff]   ;;  %v7741_v3 = vld [vmem:[%s8230_s9 + $0x7c] sm:$0xff]   ;;  %v7743_v7 = vld [vmem:[%s8230_s9 + $0xe4] sm:$0xff]   ;;  %v633_v10 = vsel %vm447_vm0, %v7744_v8, 0 }
  0x23   : > { %v7740_v2 = vld [vmem:[%s8230_s9 + $0x10] sm:$0xff]   ;;  %v3136_v6 = vsel %vm447_vm0, %v7741_v3, 0  ;;  %v7745_v9 = vld [vmem:[%s8230_s9 + $0x84] sm:$0xff]   ;;  %v7747_v13 = vld [vmem:[%s8230_s9 + $0xfc] sm:$0xff]  }
  0x24   : > { %v630_v4 = vsel %vm447_vm0, %v7740_v2, 0  ;;  %v7746_v11 = vld [vmem:[%s8230_s9 + $0x90] sm:$0xff]   ;;  %v3139_v12 = vsel %vm447_vm0, %v7745_v9, 0  ;;  %v7749_v15 = vld [vmem:[%s8230_s9 + $0x9c] sm:$0xff]   ;;  %v7758_v29 = vld [vmem:[%s8230_s9 + $0xa8] sm:$0xff]  }
  0x25   : > { %v7748_v14 = vld [vmem:[%s8230_s9 + $0x30] sm:$0xff]   ;;  %v7750_v17 = vld [vmem:[%s8230_s9 + $0x98] sm:$0xff]   ;;  %v7754_v23 = vld [vmem:[%s8230_s9 + $0xa0] sm:$0xff]  }
  0x26   : > { %v636_v16 = vsel %vm447_vm0, %v7748_v14, 0  ;;  %v7762_v35 = vld [vmem:[%s8230_s9 + $0x68] sm:$0xff]   ;;  %v7768_v46 = vld [vmem:[%s8230_s9 + $0x10] sm:$0xff]   ;;  %v7769_v47 = vld [vmem:[%s8230_s9 + $0x78] sm:$0xff]  }
  0x27   : > { %v7772_v52 = vld [vmem:[%s8230_s9 + $0x18] sm:$0xff]   ;;  %v7773_v53 = vld [vmem:[%s8230_s9 + $0x80] sm:$0xff]   ;;  %v7786_v9 = vld [vmem:[%s8230_s9 + $0xa8] sm:$0xff]  }
  0x28   : > { %6916 = vmatpush3.bf16.xpose.msra.mxu1 %v458_v18  ;;  %v3142_v18 = vsel %vm447_vm0, %v7749_v15, 0  ;;  %v7782_v3 = vld [vmem:[%s8230_s9 + $0xa0] sm:$0xff]   ;;  %v7790_v15 = vld [vmem:[%s8230_s9 + $0xb0] sm:$0xff]  }
  0x29   : > { %7132 = vmatpush3.bf16.xpose.msra.mxu0 %v2927_v20  ;;  %7458 = vmatprep.subr.msk.bf16.mxu1 %vm447_vm0, %v7710_v19  ;;  %v7751_v19 = vld [vmem:[%s8230_s9 + $0x104] sm:$0xff]   ;;  %v7752_v20 = vld [vmem:[%s8230_s9 + $0x38] sm:$0xff]  }
  0x2a   : > { %7554 = vmatprep.subr.msk.bf16.mxu0 %vm447_vm0, %v7711_v21  ;;  %v7753_v21 = vld [vmem:[%s8230_s9 + $0xa4] sm:$0xff]   ;;  %v639_v22 = vsel %vm447_vm0, %v7752_v20, 0  ;;  %v7794_v20 = vld [vmem:[%s8230_s9 + $0x6c] sm:$0xff]  }
  0x30   : > { %6918 = vmatpush3.bf16.xpose.msra.mxu1 %v461_v24  ;;  %v3145_v24 = vsel %vm447_vm0, %v7753_v21, 0 }
  0x31   : > { %7134 = vmatpush3.bf16.xpose.msra.mxu0 %v2930_v26  ;;  %7459 = vmatprep.subr.msk.bf16.mxu1 %vm447_vm0, %v7714_v25  ;;  %v7755_v25 = vld [vmem:[%s8230_s9 + $0x10c] sm:$0xff]   ;;  %v7756_v26 = vld [vmem:[%s8230_s9 + $0x40] sm:$0xff]  }
  0x32   : > { %7555 = vmatprep.subr.msk.bf16.mxu0 %vm447_vm0, %v7715_v27  ;;  %v7757_v27 = vld [vmem:[%s8230_s9 + $0xac] sm:$0xff]   ;;  %v642_v28 = vsel %vm447_vm0, %v7756_v26, 0 }
  0x33   : > { %v7797_v26 = vld [vmem:[%s8230_s9 + $0x90] sm:$0xff]  }
  0x38   : > { %6920 = vmatpush3.bf16.xpose.msra.mxu1 %v464_v30  ;;  %v3148_v30 = vsel %vm447_vm0, %v7757_v27, 0  ;;  %v7798_v27 = vld [vmem:[%s8230_s9 + $0x74] sm:$0xff]  }
  0x39   : > { %7136 = vmatpush3.bf16.xpose.msra.mxu0 %v2933_v32  ;;  %7460 = vmatprep.subr.msk.bf16.mxu1 %vm447_vm0, %v7718_v31  ;;  %v7759_v31 = vld [vmem:[%s8230_s9 + $0x114] sm:$0xff]   ;;  %v7760_v32 = vld [vmem:[%s8230_s9 + $0x48] sm:$0xff]  }
  0x3a   : > { %7556 = vmatprep.subr.msk.bf16.mxu0 %vm447_vm0, %v7719_v33  ;;  %v7761_v33 = vld [vmem:[%s8230_s9 + $0xb4] sm:$0xff]   ;;  %v645_v34 = vsel %vm447_vm0, %v7760_v32, 0  ;;  %v8483_v32 = vld [vmem:[%s9274_s1 + $0x1e] sm:$0x3] }
  0x40   : > { %6922 = vmatpush3.bf16.xpose.msra.mxu1 %v467_v36  ;;  %v3151_v36 = vsel %vm447_vm0, %v7761_v33, 0  ;;  %v7801_v33 = vld [vmem:[%s8230_s9 + $0x98] sm:$0xff]  }
  0x41   : > { %7138 = vmatpush3.bf16.xpose.msra.mxu0 %v2936_v38  ;;  %7461 = vmatprep.subr.msk.bf16.mxu1 %vm447_vm0, %v7722_v37  ;;  %v7763_v37 = vld [vmem:[%s8230_s9 + $0xd0] sm:$0xff]   ;;  %v7764_v38 = vld [vmem:[%s8230_s9 + $0x8] sm:$0xff]  }
  0x42   : > { %7557 = vmatprep.subr.msk.bf16.mxu0 %vm447_vm0, %v7723_v39  ;;  %v7765_v39 = vld [vmem:[%s8230_s9 + $0x70] sm:$0xff]   ;;  %v831_v40 = vsel %vm447_vm0, %v7764_v38, 0  ;;  %v7804_v38 = vld [vmem:[%s8230_s9 + $0x1c] sm:$0xff]  }
  0x43   : > { %v3339_v41 = vsel %vm447_vm0, %v7765_v39, 0  ;;  %v7805_v39 = vld [vmem:[%s8230_s9 + $0xa0] sm:$0xff]  }
  0x48   : > { %6924 = vmatpush3.bf16.xpose.msra.mxu1 %v470_v42  ;;  %v7766_v42 = vld [vmem:[%s8230_s9 + $0x70] sm:$0xff]  }
  0x49   : > { %7140 = vmatpush3.bf16.xpose.msra.mxu0 %v2939_v44  ;;  %7462 = vmatprep.subr.msk.bf16.mxu1 %vm447_vm0, %v7726_v43  ;;  %v7767_v43 = vld [vmem:[%s8230_s9 + $0xd8] sm:$0xff]   ;;  %v8393_v44 = vld [vmem:[%s9274_s1 + $0x4] sm:$0x3] }
  0x4a   : > { %7558 = vmatprep.subr.msk.bf16.mxu0 %vm447_vm0, %v7727_v45  ;;  %v8400_v45 = vld [vmem:[%s9274_s1 + $0x1c] sm:$0x3] }
  0x50   : > { %6926 = vmatpush3.bf16.xpose.msra.mxu1 %v473_v48  ;;  %v834_v48 = vsel %vm447_vm0, %v7768_v46, 0 }
  0x51   : > { %7142 = vmatpush3.bf16.xpose.msra.mxu0 %v2942_v50  ;;  %7463 = vmatprep.subr.msk.bf16.mxu1 %vm447_vm0, %v7730_v49  ;;  %v7770_v49 = vld [vmem:[%s8230_s9 + $0x78] sm:$0xff]   ;;  %v3342_v50 = vsel %vm447_vm0, %v7769_v47, 0 }
  0x52   : > { %7559 = vmatprep.subr.msk.bf16.mxu0 %vm447_vm0, %v7731_v51  ;;  %v7771_v51 = vld [vmem:[%s8230_s9 + $0xe0] sm:$0xff]  }
  0x53   : > { %v7810_v47 = vld [vmem:[%s8230_s9 + $0x9c] sm:$0xff]  }
  0x57   : > { %6928 = vmatmul.mubr.msk.bf16.vlgmr.msra.gmra.mrb[0].mxu1 %vm447_vm0, %v8215_v0  ;;  %v3133_v0 = vsel %vm447_vm0, %v7737_v61, 0  ;;  %v7778_v61 = vld [vmem:[%s8230_s9 + $0x98] sm:$0xff]  }
  0x58   : > { %6930 = vmatpush3.bf16.xpose.msra.mxu1 %v624_v54  ;;  %7144 = vmatmul.mubr.msk.bf16.vlgmr.msra.gmra.mrb[0].mxu0 %vm447_vm0, %v8220_v1  ;;  %v7739_v1 = vld [vmem:[%s8230_s9 + $0xdc] sm:$0xff]   ;;  %v837_v54 = vsel %vm447_vm0, %v7772_v52, 0 }
  0x59   : > { %7146 = vmatpush3.bf16.xpose.msra.mxu0 %v3130_v56  ;;  %7464 = vmatprep.subr.msk.bf16.mxu1 %vm447_vm0, %v7734_v55  ;;  %v7774_v55 = vld [vmem:[%s8230_s9 + $0x80] sm:$0xff]   ;;  %v3345_v56 = vsel %vm447_vm0, %v7773_v53, 0 }
  0x5a   : > { %7560 = vmatprep.subr.msk.bf16.mxu0 %vm447_vm0, %v7735_v57  ;;  %6945 = vmatprep.mubr.msk.bf16.mxu1 %vm447_vm0, %v8311_v58  ;;  %v7775_v57 = vld [vmem:[%s8230_s9 + $0xe8] sm:$0xff]  }
  0x5b   : > { %7161 = vmatprep.mubr.msk.bf16.mxu0 %vm447_vm0, %v8318_v59  ;;  %v7814_v53 = vld [vmem:[%s8230_s9 + $0xa4] sm:$0xff]  }
  0x60   : > { %6932 = vmatpush3.bf16.xpose.msra.mxu1 %v627_v62 }
  0x61   : > { %7148 = vmatpush3.bf16.xpose.msra.mxu0 %v3133_v0  ;;  %7465 = vmatprep.subr.msk.bf16.mxu1 %vm447_vm0, %v7738_v63  ;;  %v7779_v63 = vld [vmem:[%s8230_s9 + $0x100] sm:$0xff]   ;;  %v7780_v0 = vld [vmem:[%s8230_s9 + $0x38] sm:$0xff]  }
  0x62   : > { %7561 = vmatprep.subr.msk.bf16.mxu0 %vm447_vm0, %v7739_v1  ;;  %v7781_v1 = vld [vmem:[%s8230_s9 + $0xa0] sm:$0xff]   ;;  %v843_v2 = vsel %vm447_vm0, %v7780_v0, 0 }
  0x68   : > { %6934 = vmatpush3.bf16.xpose.msra.mxu1 %v630_v4  ;;  %v3351_v4 = vsel %vm447_vm0, %v7781_v1, 0  ;;  %v7822_v1 = vld [vmem:[%s8230_s9 + $0xb4] sm:$0xff]  }
  0x69   : > { %7150 = vmatpush3.bf16.xpose.msra.mxu0 %v3136_v6  ;;  %7466 = vmatprep.subr.msk.bf16.mxu1 %vm447_vm0, %v7742_v5  ;;  %v7783_v5 = vld [vmem:[%s8230_s9 + $0x108] sm:$0xff]   ;;  %v7784_v6 = vld [vmem:[%s8230_s9 + $0x40] sm:$0xff]  }
  0x6a   : > { %7562 = vmatprep.subr.msk.bf16.mxu0 %vm447_vm0, %v7743_v7  ;;  %v7785_v7 = vld [vmem:[%s8230_s9 + $0xa8] sm:$0xff]   ;;  %v846_v8 = vsel %vm447_vm0, %v7784_v6, 0  ;;  %v7826_v6 = vld [vmem:[%s8230_s9 + $0x70] sm:$0xff]  }
  0x70   : > { %6936 = vmatpush3.bf16.xpose.msra.mxu1 %v633_v10  ;;  %v3354_v10 = vsel %vm447_vm0, %v7785_v7, 0 }
  0x71   : > { %7152 = vmatpush3.bf16.xpose.msra.mxu0 %v3139_v12  ;;  %7467 = vmatprep.subr.msk.bf16.mxu1 %vm447_vm0, %v7746_v11  ;;  %v7787_v11 = vld [vmem:[%s8230_s9 + $0x110] sm:$0xff]   ;;  %v7788_v12 = vld [vmem:[%s8230_s9 + $0x48] sm:$0xff]  }
  0x72   : > { %7563 = vmatprep.subr.msk.bf16.mxu0 %vm447_vm0, %v7747_v13  ;;  %v7789_v13 = vld [vmem:[%s8230_s9 + $0xb0] sm:$0xff]   ;;  %v849_v14 = vsel %vm447_vm0, %v7788_v12, 0 }
  0x73   : > { %v7829_v12 = vld [vmem:[%s8230_s9 + $0x94] sm:$0xff]  }
  0x78   : > { %6938 = vmatpush3.bf16.xpose.msra.mxu1 %v636_v16  ;;  %v3357_v16 = vsel %vm447_vm0, %v7789_v13, 0  ;;  %v7830_v13 = vld [vmem:[%s8230_s9 + $0x78] sm:$0xff]  }
  0x79   : > { %7154 = vmatpush3.bf16.xpose.msra.mxu0 %v3142_v18  ;;  %7468 = vmatprep.subr.msk.bf16.mxu1 %vm447_vm0, %v7750_v17  ;;  %v7791_v17 = vld [vmem:[%s8230_s9 + $0x118] sm:$0xff]   ;;  %v7792_v18 = vld [vmem:[%s8230_s9 + $0x50] sm:$0xff]  }
  0x7a   : > { %7564 = vmatprep.subr.msk.bf16.mxu0 %vm447_vm0, %v7751_v19  ;;  %v7793_v19 = vld [vmem:[%s8230_s9 + $0xb8] sm:$0xff]   ;;  %v852_v21 = vsel %vm447_vm0, %v7792_v18, 0  ;;  %v8565_v18 = vld [vmem:[%s9274_s1 + $0x20] sm:$0x3] }
  0x80   : > { %6940 = vmatpush3.bf16.xpose.msra.mxu1 %v639_v22  ;;  %v7795_v22 = vld [vmem:[%s8230_s9 + $0xf0] sm:$0xff]  }
  0x81   : > { %7156 = vmatpush3.bf16.xpose.msra.mxu0 %v3145_v24  ;;  %7469 = vmatprep.subr.msk.bf16.mxu1 %vm447_vm0, %v7754_v23  ;;  %v3360_v23 = vsel %vm447_vm0, %v7793_v19, 0  ;;  %v7796_v24 = vld [vmem:[%s8230_s9 + $0xc] sm:$0xff]   ;;  %v7833_v19 = vld [vmem:[%s8230_s9 + $0x9c] sm:$0xff]  }
  0x82   : > { %7565 = vmatprep.subr.msk.bf16.mxu0 %vm447_vm0, %v7755_v25  ;;  %v1040_v25 = vsel %vm447_vm0, %v7796_v24, 0  ;;  %v7836_v24 = vld [vmem:[%s8230_s9 + $0x20] sm:$0xff]  }
  0x88   : > { %6942 = vmatpush3.bf16.xpose.msra.mxu1 %v642_v28  ;;  %v7799_v28 = vld [vmem:[%s8230_s9 + $0xf8] sm:$0xff]  }
  0x89   : > { %7158 = vmatpush3.bf16.xpose.msra.mxu0 %v3148_v30  ;;  %7470 = vmatprep.subr.msk.bf16.mxu1 %vm447_vm0, %v7758_v29  ;;  %v3548_v29 = vsel %vm447_vm0, %v7797_v26, 0  ;;  %v7800_v30 = vld [vmem:[%s8230_s9 + $0x14] sm:$0xff]   ;;  %v1255_v26 = vsel %vm447_vm0, %v7836_v24, 0 }
  0x8a   : > { %7566 = vmatprep.subr.msk.bf16.mxu0 %vm447_vm0, %v7759_v31  ;;  %v8474_v31 = vld [vmem:[%s9274_s1 + $0x6] sm:$0x3] }
  0x90   : > { %6944 = vmatpush3.bf16.xpose.msra.mxu1 %v645_v34  ;;  %v1043_v34 = vsel %vm447_vm0, %v7800_v30, 0  ;;  %v7840_v30 = vld [vmem:[%s8230_s9 + $0x28] sm:$0xff]  }
  0x91   : > { %7160 = vmatpush3.bf16.xpose.msra.mxu0 %v3151_v36  ;;  %7471 = vmatprep.subr.msk.bf16.mxu1 %vm447_vm0, %v7762_v35  ;;  %v7802_v35 = vld [vmem:[%s8230_s9 + $0x7c] sm:$0xff]   ;;  %v3551_v36 = vsel %vm447_vm0, %v7801_v33, 0 }
  0x92   : > { %7567 = vmatprep.subr.msk.bf16.mxu0 %vm447_vm0, %v7763_v37  ;;  %v7803_v37 = vld [vmem:[%s8230_s9 + $0x100] sm:$0xff]  }
  0x93   : > { %v7842_v33 = vld [vmem:[%s8230_s9 + $0xa0] sm:$0xff]  }
  0x97   : > { %6946 = vmatmul.mubr.msk.bf16.vlgmr.msra.gmra.mrb[0].mxu1 %vm447_vm0, %v8311_v58  ;;  %v7776_v58 = vld [vmem:[%s8230_s9 + $0x20] sm:$0xff]  }
  0x98   : > { %6948 = vmatpush3.bf16.xpose.msra.mxu1 %v831_v40  ;;  %7162 = vmatmul.mubr.msk.bf16.vlgmr.msra.gmra.mrb[0].mxu0 %vm447_vm0, %v8318_v59  ;;  %v7777_v59 = vld [vmem:[%s8230_s9 + $0x88] sm:$0xff]   ;;  %v840_v60 = vsel %vm447_vm0, %v7776_v58, 0  ;;  %v1046_v40 = vsel %vm447_vm0, %v7804_v38, 0 }
  0x99   : > { %7164 = vmatpush3.bf16.xpose.msra.mxu0 %v3339_v41  ;;  %7472 = vmatprep.subr.msk.bf16.mxu1 %vm447_vm0, %v7766_v42  ;;  %v3348_v62 = vsel %vm447_vm0, %v7777_v59, 0  ;;  %v7806_v41 = vld [vmem:[%s8230_s9 + $0x84] sm:$0xff]   ;;  %v3554_v42 = vsel %vm447_vm0, %v7805_v39, 0  ;;  %v7818_v59 = vld [vmem:[%s8230_s9 + $0xac] sm:$0xff]  }
  0x9a   : > { %7568 = vmatprep.subr.msk.bf16.mxu0 %vm447_vm0, %v7767_v43  ;;  %6963 = vmatprep.mubr.msk.bf16.mxu1 %vm447_vm0, %v8393_v44  ;;  %v7807_v43 = vld [vmem:[%s8230_s9 + $0x108] sm:$0xff]  }
  0x9b   : > { %7179 = vmatprep.mubr.msk.bf16.mxu0 %vm447_vm0, %v8400_v45  ;;  %v7846_v39 = vld [vmem:[%s8230_s9 + $0xa8] sm:$0xff]  }
  0xa0   : > { %6950 = vmatpush3.bf16.xpose.msra.mxu1 %v834_v48 }
  0xa1   : > { %7166 = vmatpush3.bf16.xpose.msra.mxu0 %v3342_v50  ;;  %7473 = vmatprep.subr.msk.bf16.mxu1 %vm447_vm0, %v7770_v49  ;;  %v7811_v49 = vld [vmem:[%s8230_s9 + $0x120] sm:$0xff]  }
  0xa2   : > { %7569 = vmatprep.subr.msk.bf16.mxu0 %vm447_vm0, %v7771_v51  ;;  %v7812_v50 = vld [vmem:[%s8230_s9 + $0x3c] sm:$0xff]  }
  0xa3   : > { %v7813_v51 = vld [vmem:[%s8230_s9 + $0xc0] sm:$0xff]   ;;  %v1052_v52 = vsel %vm447_vm0, %v7812_v50, 0 }
  0xa8   : > { %6952 = vmatpush3.bf16.xpose.msra.mxu1 %v837_v54  ;;  %v3560_v54 = vsel %vm447_vm0, %v7813_v51, 0  ;;  %v7854_v51 = vld [vmem:[%s8230_s9 + $0xb8] sm:$0xff]  }
  0xa9   : > { %7168 = vmatpush3.bf16.xpose.msra.mxu0 %v3345_v56  ;;  %7474 = vmatprep.subr.msk.bf16.mxu1 %vm447_vm0, %v7774_v55  ;;  %v7815_v55 = vld [vmem:[%s8230_s9 + $0x128] sm:$0xff]  }
  0xaa   : > { %7570 = vmatprep.subr.msk.bf16.mxu0 %vm447_vm0, %v7775_v57  ;;  %v7816_v56 = vld [vmem:[%s8230_s9 + $0x44] sm:$0xff]  }
  0xab   : > { %v7817_v57 = vld [vmem:[%s8230_s9 + $0xc8] sm:$0xff]   ;;  %v1055_v58 = vsel %vm447_vm0, %v7816_v56, 0  ;;  %v7858_v56 = vld [vmem:[%s8230_s9 + $0x90] sm:$0xff]  }
  0xb0   : > { %6954 = vmatpush3.bf16.xpose.msra.mxu1 %v840_v60  ;;  %v3563_v60 = vsel %vm447_vm0, %v7817_v57, 0 }
  0xb1   : > { %7170 = vmatpush3.bf16.xpose.msra.mxu0 %v3348_v62  ;;  %7475 = vmatprep.subr.msk.bf16.mxu1 %vm447_vm0, %v7778_v61  ;;  %v7819_v61 = vld [vmem:[%s8230_s9 + $0x130] sm:$0xff]  }
  0xb2   : > { %7571 = vmatprep.subr.msk.bf16.mxu0 %vm447_vm0, %v7779_v63  ;;  %v7820_v62 = vld [vmem:[%s8230_s9 + $0x4c] sm:$0xff]  }
  0xb3   : > { %v7821_v63 = vld [vmem:[%s8230_s9 + $0xd0] sm:$0xff]   ;;  %v1058_v0 = vsel %vm447_vm0, %v7820_v62, 0  ;;  %v7861_v62 = vld [vmem:[%s8230_s9 + $0x98] sm:$0xff]  }
  0xb8   : > { %6956 = vmatpush3.bf16.xpose.msra.mxu1 %v843_v2  ;;  %v3566_v2 = vsel %vm447_vm0, %v7821_v63, 0  ;;  %v7862_v63 = vld [vmem:[%s8230_s9 + $0x98] sm:$0xff]  }
  0xb9   : > { %7172 = vmatpush3.bf16.xpose.msra.mxu0 %v3351_v4  ;;  %7476 = vmatprep.subr.msk.bf16.mxu1 %vm447_vm0, %v7782_v3  ;;  %v7823_v3 = vld [vmem:[%s8230_s9 + $0x138] sm:$0xff]  }
  0xba   : > { %7572 = vmatprep.subr.msk.bf16.mxu0 %vm447_vm0, %v7783_v5  ;;  %v7824_v4 = vld [vmem:[%s8230_s9 + $0x54] sm:$0xff]  }
  0xbb   : > { %v7825_v5 = vld [vmem:[%s8230_s9 + $0xd8] sm:$0xff]   ;;  %v1061_v7 = vsel %vm447_vm0, %v7824_v4, 0  ;;  %v8647_v4 = vld [vmem:[%s9274_s1 + $0x22] sm:$0x3] }
  0xc0   : > { %6958 = vmatpush3.bf16.xpose.msra.mxu1 %v846_v8  ;;  %v7827_v8 = vld [vmem:[%s8230_s9 + $0xf4] sm:$0xff]  }
  0xc1   : > { %7174 = vmatpush3.bf16.xpose.msra.mxu0 %v3354_v10  ;;  %7477 = vmatprep.subr.msk.bf16.mxu1 %vm447_vm0, %v7786_v9  ;;  %v3569_v9 = vsel %vm447_vm0, %v7825_v5, 0  ;;  %v7828_v10 = vld [vmem:[%s8230_s9 + $0x10] sm:$0xff]   ;;  %v7865_v5 = vld [vmem:[%s8230_s9 + $0xa0] sm:$0xff]  }
  0xc2   : > { %7573 = vmatprep.subr.msk.bf16.mxu0 %vm447_vm0, %v7787_v11  ;;  %v1249_v11 = vsel %vm447_vm0, %v7828_v10, 0  ;;  %v7868_v10 = vld [vmem:[%s8230_s9 + $0x40] sm:$0xff]  }
  0xc8   : > { %6960 = vmatpush3.bf16.xpose.msra.mxu1 %v849_v14  ;;  %v7831_v14 = vld [vmem:[%s8230_s9 + $0xfc] sm:$0xff]  }
  0xc9   : > { %7176 = vmatpush3.bf16.xpose.msra.mxu0 %v3357_v16  ;;  %7478 = vmatprep.subr.msk.bf16.mxu1 %vm447_vm0, %v7790_v15  ;;  %v3757_v15 = vsel %vm447_vm0, %v7829_v12, 0  ;;  %v7832_v16 = vld [vmem:[%s8230_s9 + $0x18] sm:$0xff]   ;;  %v1464_v12 = vsel %vm447_vm0, %v7868_v10, 0 }
  0xca   : > { %7574 = vmatprep.subr.msk.bf16.mxu0 %vm447_vm0, %v7791_v17  ;;  %v8556_v17 = vld [vmem:[%s9274_s1 + $0x8] sm:$0x3] }
  0xd0   : > { %6962 = vmatpush3.bf16.xpose.msra.mxu1 %v852_v21  ;;  %v7834_v21 = vld [vmem:[%s8230_s9 + $0x80] sm:$0xff]  }
  0xd1   : > { %7178 = vmatpush3.bf16.xpose.msra.mxu0 %v3360_v23  ;;  %7479 = vmatprep.subr.msk.bf16.mxu1 %vm447_vm0, %v7794_v20  ;;  %v1252_v20 = vsel %vm447_vm0, %v7832_v16, 0  ;;  %v7835_v23 = vld [vmem:[%s8230_s9 + $0x104] sm:$0xff]  }
  0xd2   : > { %7575 = vmatprep.subr.msk.bf16.mxu0 %vm447_vm0, %v7795_v22  ;;  %v3760_v22 = vsel %vm447_vm0, %v7833_v19, 0  ;;  %v7872_v16 = vld [vmem:[%s8230_s9 + $0x48] sm:$0xff]   ;;  %v7874_v19 = vld [vmem:[%s8230_s9 + $0xc0] sm:$0xff]  }
  0xd7   : > { %6964 = vmatmul.mubr.msk.bf16.vlgmr.msra.gmra.mrb[0].mxu1 %vm447_vm0, %v8393_v44  ;;  %v7808_v44 = vld [vmem:[%s8230_s9 + $0x24] sm:$0xff]  }
  0xd8   : > { %6966 = vmatpush3.bf16.xpose.msra.mxu1 %v1040_v25  ;;  %7180 = vmatmul.mubr.msk.bf16.vlgmr.msra.gmra.mrb[0].mxu0 %vm447_vm0, %v8400_v45  ;;  %v7809_v45 = vld [vmem:[%s8230_s9 + $0xa8] sm:$0xff]   ;;  %v1049_v46 = vsel %vm447_vm0, %v7808_v44, 0 }
  0xd9   : > { %7182 = vmatpush3.bf16.xpose.msra.mxu0 %v3548_v29  ;;  %7480 = vmatprep.subr.msk.bf16.mxu1 %vm447_vm0, %v7798_v27  ;;  %v3557_v48 = vsel %vm447_vm0, %v7809_v45, 0  ;;  %v7837_v25 = vld [vmem:[%s8230_s9 + $0xa4] sm:$0xff]   ;;  %v7839_v29 = vld [vmem:[%s8230_s9 + $0x10c] sm:$0xff]  }
  0xda   : > { %7576 = vmatprep.subr.msk.bf16.mxu0 %vm447_vm0, %v7799_v28  ;;  %6981 = vmatprep.mubr.msk.bf16.mxu1 %vm447_vm0, %v8474_v31  ;;  %v7838_v27 = vld [vmem:[%s8230_s9 + $0x88] sm:$0xff]   ;;  %v3763_v28 = vsel %vm447_vm0, %v7837_v25, 0  ;;  %v7850_v45 = vld [vmem:[%s8230_s9 + $0xb0] sm:$0xff]  }
  0xdb   : > { %7197 = vmatprep.mubr.msk.bf16.mxu0 %vm447_vm0, %v8483_v32  ;;  %v7878_v25 = vld [vmem:[%s8230_s9 + $0xc8] sm:$0xff]  }
  0xe0   : > { %6968 = vmatpush3.bf16.xpose.msra.mxu1 %v1043_v34 }
  0xe1   : > { %7184 = vmatpush3.bf16.xpose.msra.mxu0 %v3551_v36  ;;  %7481 = vmatprep.subr.msk.bf16.mxu1 %vm447_vm0, %v7802_v35  ;;  %v7843_v35 = vld [vmem:[%s8230_s9 + $0x124] sm:$0xff]  }
  0xe2   : > { %7577 = vmatprep.subr.msk.bf16.mxu0 %vm447_vm0, %v7803_v37  ;;  %v7844_v36 = vld [vmem:[%s8230_s9 + $0x40] sm:$0xff]  }
  0xe3   : > { %v7845_v37 = vld [vmem:[%s8230_s9 + $0xc4] sm:$0xff]   ;;  %v1261_v38 = vsel %vm447_vm0, %v7844_v36, 0 }
  0xe8   : > { %6970 = vmatpush3.bf16.xpose.msra.mxu1 %v1046_v40  ;;  %v3769_v40 = vsel %vm447_vm0, %v7845_v37, 0  ;;  %v7886_v37 = vld [vmem:[%s8230_s9 + $0xd8] sm:$0xff]  }
  0xe9   : > { %7186 = vmatpush3.bf16.xpose.msra.mxu0 %v3554_v42  ;;  %7482 = vmatprep.subr.msk.bf16.mxu1 %vm447_vm0, %v7806_v41  ;;  %v7847_v41 = vld [vmem:[%s8230_s9 + $0x12c] sm:$0xff]  }
  0xea   : > { %7578 = vmatprep.subr.msk.bf16.mxu0 %vm447_vm0, %v7807_v43  ;;  %v7848_v42 = vld [vmem:[%s8230_s9 + $0x48] sm:$0xff]  }
  0xeb   : > { %v7849_v43 = vld [vmem:[%s8230_s9 + $0xcc] sm:$0xff]   ;;  %v1264_v44 = vsel %vm447_vm0, %v7848_v42, 0 }
  0xf0   : > { %6972 = vmatpush3.bf16.xpose.msra.mxu1 %v1049_v46  ;;  %v3772_v46 = vsel %vm447_vm0, %v7849_v43, 0  ;;  %v7890_v43 = vld [vmem:[%s8230_s9 + $0x94] sm:$0xff]  }
  0xf1   : > { %7188 = vmatpush3.bf16.xpose.msra.mxu0 %v3557_v48  ;;  %7483 = vmatprep.subr.msk.bf16.mxu1 %vm447_vm0, %v7810_v47  ;;  %v7851_v47 = vld [vmem:[%s8230_s9 + $0x134] sm:$0xff]  }
  0xf2   : > { %7579 = vmatprep.subr.msk.bf16.mxu0 %vm447_vm0, %v7811_v49  ;;  %v7852_v48 = vld [vmem:[%s8230_s9 + $0x50] sm:$0xff]  }
  0xf3   : > { %v7853_v49 = vld [vmem:[%s8230_s9 + $0xd4] sm:$0xff]   ;;  %v1267_v50 = vsel %vm447_vm0, %v7852_v48, 0 }
  0xf8   : > { %6974 = vmatpush3.bf16.xpose.msra.mxu1 %v1052_v52  ;;  %v3775_v52 = vsel %vm447_vm0, %v7853_v49, 0  ;;  %v7894_v49 = vld [vmem:[%s8230_s9 + $0x9c] sm:$0xff]  }
  0xf9   : > { %7190 = vmatpush3.bf16.xpose.msra.mxu0 %v3560_v54  ;;  %7484 = vmatprep.subr.msk.bf16.mxu1 %vm447_vm0, %v7814_v53  ;;  %v7855_v53 = vld [vmem:[%s8230_s9 + $0x13c] sm:$0xff]  }
  0xfa   : > { %7580 = vmatprep.subr.msk.bf16.mxu0 %vm447_vm0, %v7815_v55  ;;  %v7856_v54 = vld [vmem:[%s8230_s9 + $0x58] sm:$0xff]  }
  0xfb   : > { %v7857_v55 = vld [vmem:[%s8230_s9 + $0xdc] sm:$0xff]   ;;  %v1270_v57 = vsel %vm447_vm0, %v7856_v54, 0 }
  0xfc   : > { %v7896_v54 = vld [vmem:[%s8230_s9 + $0x3c] sm:$0xff]  }
 0x100   : > { %6976 = vmatpush3.bf16.xpose.msra.mxu1 %v1055_v58  ;;  %v7859_v58 = vld [vmem:[%s8230_s9 + $0xf8] sm:$0xff]  }
 0x101   : > { %7192 = vmatpush3.bf16.xpose.msra.mxu0 %v3563_v60  ;;  %7485 = vmatprep.subr.msk.bf16.mxu1 %vm447_vm0, %v7818_v59  ;;  %v3778_v59 = vsel %vm447_vm0, %v7857_v55, 0  ;;  %v7860_v60 = vld [vmem:[%s8230_s9 + $0x30] sm:$0xff]   ;;  %v7897_v55 = vld [vmem:[%s8230_s9 + $0xa4] sm:$0xff]  }
 0x102   : > { %7581 = vmatprep.subr.msk.bf16.mxu0 %vm447_vm0, %v7819_v61  ;;  %v1458_v61 = vsel %vm447_vm0, %v7860_v60, 0  ;;  %v7900_v60 = vld [vmem:[%s8230_s9 + $0x44] sm:$0xff]  }
 0x108   : > { %6978 = vmatpush3.bf16.xpose.msra.mxu1 %v1058_v0  ;;  %v7863_v0 = vld [vmem:[%s8230_s9 + $0x100] sm:$0xff]  }
 0x109   : > { %7194 = vmatpush3.bf16.xpose.msra.mxu0 %v3566_v2  ;;  %7486 = vmatprep.subr.msk.bf16.mxu1 %vm447_vm0, %v7822_v1  ;;  %v3966_v1 = vsel %vm447_vm0, %v7861_v62, 0  ;;  %v7864_v2 = vld [vmem:[%s8230_s9 + $0x38] sm:$0xff]   ;;  %v1673_v62 = vsel %vm447_vm0, %v7900_v60, 0 }
 0x10a   : > { %7582 = vmatprep.subr.msk.bf16.mxu0 %vm447_vm0, %v7823_v3  ;;  %v8638_v3 = vld [vmem:[%s9274_s1 + $0xa] sm:$0x3] }
 0x110   : > { %6980 = vmatpush3.bf16.xpose.msra.mxu1 %v1061_v7  ;;  %v7866_v7 = vld [vmem:[%s8230_s9 + $0xa0] sm:$0xff]  }
 0x111   : > { %7196 = vmatpush3.bf16.xpose.msra.mxu0 %v3569_v9  ;;  %7487 = vmatprep.subr.msk.bf16.mxu1 %vm447_vm0, %v7826_v6  ;;  %v1461_v6 = vsel %vm447_vm0, %v7864_v2, 0  ;;  %v7867_v9 = vld [vmem:[%s8230_s9 + $0x108] sm:$0xff]  }
 0x112   : > { %7583 = vmatprep.subr.msk.bf16.mxu0 %vm447_vm0, %v7827_v8  ;;  %v3969_v8 = vsel %vm447_vm0, %v7865_v5, 0  ;;  %v7904_v2 = vld [vmem:[%s8230_s9 + $0x4c] sm:$0xff]   ;;  %v7906_v5 = vld [vmem:[%s8230_s9 + $0xc4] sm:$0xff]  }
 0x117   : > { %6982 = vmatmul.mubr.msk.bf16.vlgmr.msra.gmra.mrb[0].mxu1 %vm447_vm0, %v8474_v31  ;;  %v7841_v31 = vld [vmem:[%s8230_s9 + $0xac] sm:$0xff]  }
 0x118   : > { %6984 = vmatpush3.bf16.xpose.msra.mxu1 %v1249_v11  ;;  %7198 = vmatmul.mubr.msk.bf16.vlgmr.msra.gmra.mrb[0].mxu0 %vm447_vm0, %v8483_v32  ;;  %v1258_v32 = vsel %vm447_vm0, %v7840_v30, 0  ;;  %v3766_v34 = vsel %vm447_vm0, %v7841_v31, 0  ;;  %v7869_v11 = vld [vmem:[%s8230_s9 + $0xa8] sm:$0xff]   ;;  %v7882_v31 = vld [vmem:[%s8230_s9 + $0xd0] sm:$0xff]  }
 0x119   : > { %7200 = vmatpush3.bf16.xpose.msra.mxu0 %v3757_v15  ;;  %7488 = vmatprep.subr.msk.bf16.mxu1 %vm447_vm0, %v7830_v13  ;;  %v7870_v13 = vld [vmem:[%s8230_s9 + $0xa8] sm:$0xff]   ;;  %v7871_v15 = vld [vmem:[%s8230_s9 + $0x110] sm:$0xff]  }
 0x11a   : > { %7584 = vmatprep.subr.msk.bf16.mxu0 %vm447_vm0, %v7831_v14  ;;  %6999 = vmatprep.mubr.msk.bf16.mxu1 %vm447_vm0, %v8556_v17  ;;  %v3972_v14 = vsel %vm447_vm0, %v7869_v11, 0  ;;  %v7910_v11 = vld [vmem:[%s8230_s9 + $0xcc] sm:$0xff]  }
 0x11b   : > { %7215 = vmatprep.mubr.msk.bf16.mxu0 %vm447_vm0, %v8565_v18 }
 0x120   : > { %6986 = vmatpush3.bf16.xpose.msra.mxu1 %v1252_v20 }
 0x121   : > { %7202 = vmatpush3.bf16.xpose.msra.mxu0 %v3760_v22  ;;  %7489 = vmatprep.subr.msk.bf16.mxu1 %vm447_vm0, %v7834_v21  ;;  %v7875_v21 = vld [vmem:[%s8230_s9 + $0x128] sm:$0xff]   ;;  %v7876_v22 = vld [vmem:[%s8230_s9 + $0x60] sm:$0xff]  }
 0x122   : > { %7585 = vmatprep.subr.msk.bf16.mxu0 %vm447_vm0, %v7835_v23  ;;  %v7877_v23 = vld [vmem:[%s8230_s9 + $0xc8] sm:$0xff]   ;;  %v1470_v24 = vsel %vm447_vm0, %v7876_v22, 0 }
 0x128   : > { %6988 = vmatpush3.bf16.xpose.msra.mxu1 %v1255_v26  ;;  %v3978_v26 = vsel %vm447_vm0, %v7877_v23, 0  ;;  %v7918_v23 = vld [vmem:[%s8230_s9 + $0xdc] sm:$0xff]  }
 0x129   : > { %7204 = vmatpush3.bf16.xpose.msra.mxu0 %v3763_v28  ;;  %7490 = vmatprep.subr.msk.bf16.mxu1 %vm447_vm0, %v7838_v27  ;;  %v7879_v27 = vld [vmem:[%s8230_s9 + $0x130] sm:$0xff]   ;;  %v7880_v28 = vld [vmem:[%s8230_s9 + $0x68] sm:$0xff]  }
 0x12a   : > { %7586 = vmatprep.subr.msk.bf16.mxu0 %vm447_vm0, %v7839_v29  ;;  %v7881_v29 = vld [vmem:[%s8230_s9 + $0xd0] sm:$0xff]   ;;  %v1473_v30 = vsel %vm447_vm0, %v7880_v28, 0 }
 0x130   : > { %6990 = vmatpush3.bf16.xpose.msra.mxu1 %v1258_v32  ;;  %v3981_v32 = vsel %vm447_vm0, %v7881_v29, 0  ;;  %v7922_v29 = vld [vmem:[%s8230_s9 + $0x98] sm:$0xff]  }
 0x131   : > { %7206 = vmatpush3.bf16.xpose.msra.mxu0 %v3766_v34  ;;  %7491 = vmatprep.subr.msk.bf16.mxu1 %vm447_vm0, %v7842_v33  ;;  %v7883_v33 = vld [vmem:[%s8230_s9 + $0x138] sm:$0xff]   ;;  %v7884_v34 = vld [vmem:[%s8230_s9 + $0x70] sm:$0xff]  }
 0x132   : > { %7587 = vmatprep.subr.msk.bf16.mxu0 %vm447_vm0, %v7843_v35  ;;  %v7885_v35 = vld [vmem:[%s8230_s9 + $0xd8] sm:$0xff]   ;;  %v1476_v36 = vsel %vm447_vm0, %v7884_v34, 0 }
 0x138   : > { %6992 = vmatpush3.bf16.xpose.msra.mxu1 %v1261_v38  ;;  %v3984_v38 = vsel %vm447_vm0, %v7885_v35, 0  ;;  %v7926_v35 = vld [vmem:[%s8230_s9 + $0xa0] sm:$0xff]  }
 0x139   : > { %7208 = vmatpush3.bf16.xpose.msra.mxu0 %v3769_v40  ;;  %7492 = vmatprep.subr.msk.bf16.mxu1 %vm447_vm0, %v7846_v39  ;;  %v7887_v39 = vld [vmem:[%s8230_s9 + $0x140] sm:$0xff]   ;;  %v7888_v40 = vld [vmem:[%s8230_s9 + $0x78] sm:$0xff]  }
 0x13a   : > { %7588 = vmatprep.subr.msk.bf16.mxu0 %vm447_vm0, %v7847_v41  ;;  %v7889_v41 = vld [vmem:[%s8230_s9 + $0xe0] sm:$0xff]   ;;  %v1479_v42 = vsel %vm447_vm0, %v7888_v40, 0 }
 0x13b   : > { %v7928_v40 = vld [vmem:[%s8230_s9 + $0x40] sm:$0xff]  }
 0x140   : > { %6994 = vmatpush3.bf16.xpose.msra.mxu1 %v1264_v44  ;;  %v3987_v44 = vsel %vm447_vm0, %v7889_v41, 0  ;;  %v7929_v41 = vld [vmem:[%s8230_s9 + $0xa8] sm:$0xff]  }
 0x141   : > { %7210 = vmatpush3.bf16.xpose.msra.mxu0 %v3772_v46  ;;  %7493 = vmatprep.subr.msk.bf16.mxu1 %vm447_vm0, %v7850_v45  ;;  %v7891_v45 = vld [vmem:[%s8230_s9 + $0xfc] sm:$0xff]   ;;  %v7892_v46 = vld [vmem:[%s8230_s9 + $0x34] sm:$0xff]  }
 0x142   : > { %7589 = vmatprep.subr.msk.bf16.mxu0 %vm447_vm0, %v7851_v47  ;;  %v7893_v47 = vld [vmem:[%s8230_s9 + $0x9c] sm:$0xff]   ;;  %v1667_v48 = vsel %vm447_vm0, %v7892_v46, 0  ;;  %v7932_v46 = vld [vmem:[%s8230_s9 + $0x48] sm:$0xff]  }
 0x148   : > { %6996 = vmatpush3.bf16.xpose.msra.mxu1 %v1267_v50  ;;  %v4175_v50 = vsel %vm447_vm0, %v7893_v47, 0  ;;  %v7933_v47 = vld [vmem:[%s8230_s9 + $0xb0] sm:$0xff]  }
 0x149   : > { %7212 = vmatpush3.bf16.xpose.msra.mxu0 %v3775_v52  ;;  %7494 = vmatprep.subr.msk.bf16.mxu1 %vm447_vm0, %v7854_v51  ;;  %v7895_v51 = vld [vmem:[%s8230_s9 + $0x104] sm:$0xff]   ;;  %v8721_v52 = vld [vmem:[%s9274_s1 + $0xc] sm:$0x3] }
 0x14a   : > { %7590 = vmatprep.subr.msk.bf16.mxu0 %vm447_vm0, %v7855_v53  ;;  %v8728_v53 = vld [vmem:[%s9274_s1 + $0x24] sm:$0x3] }
 0x150   : > { %6998 = vmatpush3.bf16.xpose.msra.mxu1 %v1270_v57  ;;  %v7898_v57 = vld [vmem:[%s8230_s9 + $0xa4] sm:$0xff]  }
 0x151   : > { %7214 = vmatpush3.bf16.xpose.msra.mxu0 %v3778_v59  ;;  %7495 = vmatprep.subr.msk.bf16.mxu1 %vm447_vm0, %v7858_v56  ;;  %v1670_v56 = vsel %vm447_vm0, %v7896_v54, 0  ;;  %v7899_v59 = vld [vmem:[%s8230_s9 + $0x10c] sm:$0xff]  }
 0x152   : > { %7591 = vmatprep.subr.msk.bf16.mxu0 %vm447_vm0, %v7859_v58  ;;  %v4178_v58 = vsel %vm447_vm0, %v7897_v55, 0  ;;  %v7938_v55 = vld [vmem:[%s8230_s9 + $0xc8] sm:$0xff]  }
 0x157   : > { %7000 = vmatmul.mubr.msk.bf16.vlgmr.msra.gmra.mrb[0].mxu1 %vm447_vm0, %v8556_v17  ;;  %v7873_v17 = vld [vmem:[%s8230_s9 + $0xb0] sm:$0xff]  }
 0x158   : > { %7002 = vmatpush3.bf16.xpose.msra.mxu1 %v1458_v61  ;;  %7216 = vmatmul.mubr.msk.bf16.vlgmr.msra.gmra.mrb[0].mxu0 %vm447_vm0, %v8565_v18  ;;  %v1467_v18 = vsel %vm447_vm0, %v7872_v16, 0  ;;  %v3975_v20 = vsel %vm447_vm0, %v7873_v17, 0  ;;  %v7901_v61 = vld [vmem:[%s8230_s9 + $0xac] sm:$0xff]   ;;  %v7914_v17 = vld [vmem:[%s8230_s9 + $0xd4] sm:$0xff]  }
 0x159   : > { %7218 = vmatpush3.bf16.xpose.msra.mxu0 %v3966_v1  ;;  %7496 = vmatprep.subr.msk.bf16.mxu1 %vm447_vm0, %v7862_v63  ;;  %v7902_v63 = vld [vmem:[%s8230_s9 + $0xac] sm:$0xff]   ;;  %v7903_v1 = vld [vmem:[%s8230_s9 + $0x114] sm:$0xff]  }
 0x15a   : > { %7592 = vmatprep.subr.msk.bf16.mxu0 %vm447_vm0, %v7863_v0  ;;  %7017 = vmatprep.mubr.msk.bf16.mxu1 %vm447_vm0, %v8638_v3  ;;  %v4181_v0 = vsel %vm447_vm0, %v7901_v61, 0  ;;  %v7942_v61 = vld [vmem:[%s8230_s9 + $0xd0] sm:$0xff]  }
 0x15b   : > { %7233 = vmatprep.mubr.msk.bf16.mxu0 %vm447_vm0, %v8647_v4 }
 0x160   : > { %7004 = vmatpush3.bf16.xpose.msra.mxu1 %v1461_v6 }
 0x161   : > { %7220 = vmatpush3.bf16.xpose.msra.mxu0 %v3969_v8  ;;  %7497 = vmatprep.subr.msk.bf16.mxu1 %vm447_vm0, %v7866_v7  ;;  %v7907_v7 = vld [vmem:[%s8230_s9 + $0x12c] sm:$0xff]   ;;  %v7908_v8 = vld [vmem:[%s8230_s9 + $0x64] sm:$0xff]  }
 0x162   : > { %7593 = vmatprep.subr.msk.bf16.mxu0 %vm447_vm0, %v7867_v9  ;;  %v7909_v9 = vld [vmem:[%s8230_s9 + $0xcc] sm:$0xff]   ;;  %v1679_v10 = vsel %vm447_vm0, %v7908_v8, 0 }
 0x168   : > { %7006 = vmatpush3.bf16.xpose.msra.mxu1 %v1464_v12  ;;  %v4187_v12 = vsel %vm447_vm0, %v7909_v9, 0  ;;  %v7950_v9 = vld [vmem:[%s8230_s9 + $0xe0] sm:$0xff]  }
 0x169   : > { %7222 = vmatpush3.bf16.xpose.msra.mxu0 %v3972_v14  ;;  %7498 = vmatprep.subr.msk.bf16.mxu1 %vm447_vm0, %v7870_v13  ;;  %v7911_v13 = vld [vmem:[%s8230_s9 + $0x134] sm:$0xff]   ;;  %v7912_v14 = vld [vmem:[%s8230_s9 + $0x6c] sm:$0xff]  }
 0x16a   : > { %7594 = vmatprep.subr.msk.bf16.mxu0 %vm447_vm0, %v7871_v15  ;;  %v7913_v15 = vld [vmem:[%s8230_s9 + $0xd4] sm:$0xff]   ;;  %v1682_v16 = vsel %vm447_vm0, %v7912_v14, 0 }
 0x170   : > { %7008 = vmatpush3.bf16.xpose.msra.mxu1 %v1467_v18  ;;  %v4190_v18 = vsel %vm447_vm0, %v7913_v15, 0  ;;  %v7954_v15 = vld [vmem:[%s8230_s9 + $0x9c] sm:$0xff]  }
 0x171   : > { %7224 = vmatpush3.bf16.xpose.msra.mxu0 %v3975_v20  ;;  %7499 = vmatprep.subr.msk.bf16.mxu1 %vm447_vm0, %v7874_v19  ;;  %v7915_v19 = vld [vmem:[%s8230_s9 + $0x13c] sm:$0xff]   ;;  %v7916_v20 = vld [vmem:[%s8230_s9 + $0x74] sm:$0xff]  }
 0x172   : > { %7595 = vmatprep.subr.msk.bf16.mxu0 %vm447_vm0, %v7875_v21  ;;  %v7917_v21 = vld [vmem:[%s8230_s9 + $0xdc] sm:$0xff]   ;;  %v1685_v22 = vsel %vm447_vm0, %v7916_v20, 0 }
 0x178   : > { %7010 = vmatpush3.bf16.xpose.msra.mxu1 %v1470_v24  ;;  %v4193_v24 = vsel %vm447_vm0, %v7917_v21, 0  ;;  %v7958_v21 = vld [vmem:[%s8230_s9 + $0xa4] sm:$0xff]  }
 0x179   : > { %7226 = vmatpush3.bf16.xpose.msra.mxu0 %v3978_v26  ;;  %7500 = vmatprep.subr.msk.bf16.mxu1 %vm447_vm0, %v7878_v25  ;;  %v7919_v25 = vld [vmem:[%s8230_s9 + $0x144] sm:$0xff]   ;;  %v7920_v26 = vld [vmem:[%s8230_s9 + $0x7c] sm:$0xff]  }
 0x17a   : > { %7596 = vmatprep.subr.msk.bf16.mxu0 %vm447_vm0, %v7879_v27  ;;  %v7921_v27 = vld [vmem:[%s8230_s9 + $0xe4] sm:$0xff]   ;;  %v1688_v28 = vsel %vm447_vm0, %v7920_v26, 0 }
 0x17b   : > { %v7960_v26 = vld [vmem:[%s8230_s9 + $0x44] sm:$0xff]  }
 0x180   : > { %7012 = vmatpush3.bf16.xpose.msra.mxu1 %v1473_v30  ;;  %v4196_v30 = vsel %vm447_vm0, %v7921_v27, 0  ;;  %v7961_v27 = vld [vmem:[%s8230_s9 + $0xc8] sm:$0xff]  }
 0x181   : > { %7228 = vmatpush3.bf16.xpose.msra.mxu0 %v3981_v32  ;;  %7501 = vmatprep.subr.msk.bf16.mxu1 %vm447_vm0, %v7882_v31  ;;  %v7923_v31 = vld [vmem:[%s8230_s9 + $0x100] sm:$0xff]   ;;  %v7924_v32 = vld [vmem:[%s8230_s9 + $0x38] sm:$0xff]  }
 0x182   : > { %7597 = vmatprep.subr.msk.bf16.mxu0 %vm447_vm0, %v7883_v33  ;;  %v7925_v33 = vld [vmem:[%s8230_s9 + $0xa0] sm:$0xff]   ;;  %v1876_v34 = vsel %vm447_vm0, %v7924_v32, 0  ;;  %v7964_v32 = vld [vmem:[%s8230_s9 + $0x4c] sm:$0xff]  }
 0x188   : > { %7014 = vmatpush3.bf16.xpose.msra.mxu1 %v1476_v36  ;;  %v4384_v36 = vsel %vm447_vm0, %v7925_v33, 0  ;;  %v7965_v33 = vld [vmem:[%s8230_s9 + $0xd0] sm:$0xff]  }
 0x189   : > { %7230 = vmatpush3.bf16.xpose.msra.mxu0 %v3984_v38  ;;  %7502 = vmatprep.subr.msk.bf16.mxu1 %vm447_vm0, %v7886_v37  ;;  %v7927_v37 = vld [vmem:[%s8230_s9 + $0x108] sm:$0xff]  }
 0x18a   : > { %7598 = vmatprep.subr.msk.bf16.mxu0 %vm447_vm0, %v7887_v39  ;;  %v8803_v38 = vld [vmem:[%s9274_s1 + $0xe] sm:$0x3]  ;;  %v8810_v39 = vld [vmem:[%s9274_s1 + $0x26] sm:$0x3] }
 0x190   : > { %7016 = vmatpush3.bf16.xpose.msra.mxu1 %v1479_v42  ;;  %v1879_v42 = vsel %vm447_vm0, %v7928_v40, 0 }
 0x191   : > { %7232 = vmatpush3.bf16.xpose.msra.mxu0 %v3987_v44  ;;  %7503 = vmatprep.subr.msk.bf16.mxu1 %vm447_vm0, %v7890_v43  ;;  %v7930_v43 = vld [vmem:[%s8230_s9 + $0xa8] sm:$0xff]   ;;  %v4387_v44 = vsel %vm447_vm0, %v7929_v41, 0 }
 0x192   : > { %7599 = vmatprep.subr.msk.bf16.mxu0 %vm447_vm0, %v7891_v45  ;;  %v7931_v45 = vld [vmem:[%s8230_s9 + $0x110] sm:$0xff]  }
 0x193   : > { %v7970_v41 = vld [vmem:[%s8230_s9 + $0xcc] sm:$0xff]  }
 0x197   : > { %7018 = vmatmul.mubr.msk.bf16.vlgmr.msra.gmra.mrb[0].mxu1 %vm447_vm0, %v8638_v3  ;;  %v7905_v3 = vld [vmem:[%s8230_s9 + $0xb4] sm:$0xff]  }
 0x198   : > { %7020 = vmatpush3.bf16.xpose.msra.mxu1 %v1667_v48  ;;  %7234 = vmatmul.mubr.msk.bf16.vlgmr.msra.gmra.mrb[0].mxu0 %vm447_vm0, %v8647_v4  ;;  %v1676_v4 = vsel %vm447_vm0, %v7904_v2, 0  ;;  %v4184_v6 = vsel %vm447_vm0, %v7905_v3, 0  ;;  %v1882_v48 = vsel %vm447_vm0, %v7932_v46, 0  ;;  %v7946_v3 = vld [vmem:[%s8230_s9 + $0xd8] sm:$0xff]  }
 0x199   : > { %7236 = vmatpush3.bf16.xpose.msra.mxu0 %v4175_v50  ;;  %7504 = vmatprep.subr.msk.bf16.mxu1 %vm447_vm0, %v7894_v49  ;;  %v7934_v49 = vld [vmem:[%s8230_s9 + $0xb0] sm:$0xff]   ;;  %v4390_v50 = vsel %vm447_vm0, %v7933_v47, 0 }
 0x19a   : > { %7600 = vmatprep.subr.msk.bf16.mxu0 %vm447_vm0, %v7895_v51  ;;  %7035 = vmatprep.mubr.msk.bf16.mxu1 %vm447_vm0, %v8721_v52  ;;  %v7935_v51 = vld [vmem:[%s8230_s9 + $0x118] sm:$0xff]  }
 0x19b   : > { %7251 = vmatprep.mubr.msk.bf16.mxu0 %vm447_vm0, %v8728_v53  ;;  %v7974_v47 = vld [vmem:[%s8230_s9 + $0xd4] sm:$0xff]  }
 0x1a0   : > { %7022 = vmatpush3.bf16.xpose.msra.mxu1 %v1670_v56 }
 0x1a1   : > { %7238 = vmatpush3.bf16.xpose.msra.mxu0 %v4178_v58  ;;  %7505 = vmatprep.subr.msk.bf16.mxu1 %vm447_vm0, %v7898_v57  ;;  %v7939_v57 = vld [vmem:[%s8230_s9 + $0x130] sm:$0xff]   ;;  %v7940_v58 = vld [vmem:[%s8230_s9 + $0x68] sm:$0xff]  }
 0x1a2   : > { %7601 = vmatprep.subr.msk.bf16.mxu0 %vm447_vm0, %v7899_v59  ;;  %v7941_v59 = vld [vmem:[%s8230_s9 + $0xd0] sm:$0xff]   ;;  %v1888_v60 = vsel %vm447_vm0, %v7940_v58, 0 }
 0x1a8   : > { %7024 = vmatpush3.bf16.xpose.msra.mxu1 %v1673_v62  ;;  %v4396_v62 = vsel %vm447_vm0, %v7941_v59, 0  ;;  %v7982_v59 = vld [vmem:[%s8230_s9 + $0xe4] sm:$0xff]  }
 0x1a9   : > { %7240 = vmatpush3.bf16.xpose.msra.mxu0 %v4181_v0  ;;  %7506 = vmatprep.subr.msk.bf16.mxu1 %vm447_vm0, %v7902_v63  ;;  %v7943_v63 = vld [vmem:[%s8230_s9 + $0x138] sm:$0xff]   ;;  %v7944_v0 = vld [vmem:[%s8230_s9 + $0x70] sm:$0xff]  }
 0x1aa   : > { %7602 = vmatprep.subr.msk.bf16.mxu0 %vm447_vm0, %v7903_v1  ;;  %v7945_v1 = vld [vmem:[%s8230_s9 + $0xd8] sm:$0xff]   ;;  %v1891_v2 = vsel %vm447_vm0, %v7944_v0, 0 }
 0x1b0   : > { %7026 = vmatpush3.bf16.xpose.msra.mxu1 %v1676_v4  ;;  %v4399_v4 = vsel %vm447_vm0, %v7945_v1, 0  ;;  %v7986_v1 = vld [vmem:[%s8230_s9 + $0xa0] sm:$0xff]  }
 0x1b1   : > { %7242 = vmatpush3.bf16.xpose.msra.mxu0 %v4184_v6  ;;  %7507 = vmatprep.subr.msk.bf16.mxu1 %vm447_vm0, %v7906_v5  ;;  %v7947_v5 = vld [vmem:[%s8230_s9 + $0x140] sm:$0xff]   ;;  %v7948_v6 = vld [vmem:[%s8230_s9 + $0x78] sm:$0xff]  }
 0x1b2   : > { %7603 = vmatprep.subr.msk.bf16.mxu0 %vm447_vm0, %v7907_v7  ;;  %v7949_v7 = vld [vmem:[%s8230_s9 + $0xe0] sm:$0xff]   ;;  %v1894_v8 = vsel %vm447_vm0, %v7948_v6, 0 }
 0x1b8   : > { %7028 = vmatpush3.bf16.xpose.msra.mxu1 %v1679_v10  ;;  %v4402_v10 = vsel %vm447_vm0, %v7949_v7, 0  ;;  %v7990_v7 = vld [vmem:[%s8230_s9 + $0xa8] sm:$0xff]  }
 0x1b9   : > { %7244 = vmatpush3.bf16.xpose.msra.mxu0 %v4187_v12  ;;  %7508 = vmatprep.subr.msk.bf16.mxu1 %vm447_vm0, %v7910_v11  ;;  %v7951_v11 = vld [vmem:[%s8230_s9 + $0x148] sm:$0xff]   ;;  %v7952_v12 = vld [vmem:[%s8230_s9 + $0x80] sm:$0xff]  }
 0x1ba   : > { %7604 = vmatprep.subr.msk.bf16.mxu0 %vm447_vm0, %v7911_v13  ;;  %v7953_v13 = vld [vmem:[%s8230_s9 + $0xe8] sm:$0xff]   ;;  %v1897_v14 = vsel %vm447_vm0, %v7952_v12, 0 }
 0x1bb   : > { %v7992_v12 = vld [vmem:[%s8230_s9 + $0x48] sm:$0xff]  }
 0x1c0   : > { %7030 = vmatpush3.bf16.xpose.msra.mxu1 %v1682_v16  ;;  %v4405_v16 = vsel %vm447_vm0, %v7953_v13, 0  ;;  %v7993_v13 = vld [vmem:[%s8230_s9 + $0xcc] sm:$0xff]  }
 0x1c1   : > { %7246 = vmatpush3.bf16.xpose.msra.mxu0 %v4190_v18  ;;  %7509 = vmatprep.subr.msk.bf16.mxu1 %vm447_vm0, %v7914_v17  ;;  %v7955_v17 = vld [vmem:[%s8230_s9 + $0x120] sm:$0xff]  }
 0x1c2   : > { %7605 = vmatprep.subr.msk.bf16.mxu0 %vm447_vm0, %v7915_v19  ;;  %v7956_v18 = vld [vmem:[%s8230_s9 + $0x3c] sm:$0xff]  }
 0x1c3   : > { %v7957_v19 = vld [vmem:[%s8230_s9 + $0xc0] sm:$0xff]   ;;  %v2085_v20 = vsel %vm447_vm0, %v7956_v18, 0  ;;  %v7996_v18 = vld [vmem:[%s8230_s9 + $0x50] sm:$0xff]  }
 0x1c8   : > { %7032 = vmatpush3.bf16.xpose.msra.mxu1 %v1685_v22  ;;  %v4593_v22 = vsel %vm447_vm0, %v7957_v19, 0  ;;  %v7997_v19 = vld [vmem:[%s8230_s9 + $0xd4] sm:$0xff]  }
 0x1c9   : > { %7248 = vmatpush3.bf16.xpose.msra.mxu0 %v4193_v24  ;;  %7510 = vmatprep.subr.msk.bf16.mxu1 %vm447_vm0, %v7918_v23  ;;  %v7959_v23 = vld [vmem:[%s8230_s9 + $0x128] sm:$0xff]   ;;  %v8885_v24 = vld [vmem:[%s9274_s1 + $0x10] sm:$0x3] }
 0x1ca   : > { %7606 = vmatprep.subr.msk.bf16.mxu0 %vm447_vm0, %v7919_v25  ;;  %v8892_v25 = vld [vmem:[%s9274_s1 + $0x28] sm:$0x3] }
 0x1d0   : > { %7034 = vmatpush3.bf16.xpose.msra.mxu1 %v1688_v28  ;;  %v2088_v28 = vsel %vm447_vm0, %v7960_v26, 0 }
 0x1d1   : > { %7250 = vmatpush3.bf16.xpose.msra.mxu0 %v4196_v30  ;;  %7511 = vmatprep.subr.msk.bf16.mxu1 %vm447_vm0, %v7922_v29  ;;  %v7962_v29 = vld [vmem:[%s8230_s9 + $0xac] sm:$0xff]   ;;  %v4596_v30 = vsel %vm447_vm0, %v7961_v27, 0 }
 0x1d2   : > { %7607 = vmatprep.subr.msk.bf16.mxu0 %vm447_vm0, %v7923_v31  ;;  %v7963_v31 = vld [vmem:[%s8230_s9 + $0x130] sm:$0xff]  }
 0x1d3   : > { %v8002_v27 = vld [vmem:[%s8230_s9 + $0xd0] sm:$0xff]  }
 0x1d7   : > { %7036 = vmatmul.mubr.msk.bf16.vlgmr.msra.gmra.mrb[0].mxu1 %vm447_vm0, %v8721_v52  ;;  %v7936_v52 = vld [vmem:[%s8230_s9 + $0x50] sm:$0xff]  }
 0x1d8   : > { %7038 = vmatpush3.bf16.xpose.msra.mxu1 %v1876_v34  ;;  %7252 = vmatmul.mubr.msk.bf16.vlgmr.msra.gmra.mrb[0].mxu0 %vm447_vm0, %v8728_v53  ;;  %v7937_v53 = vld [vmem:[%s8230_s9 + $0xb8] sm:$0xff]   ;;  %v1885_v54 = vsel %vm447_vm0, %v7936_v52, 0  ;;  %v2091_v34 = vsel %vm447_vm0, %v7964_v32, 0 }
 0x1d9   : > { %7254 = vmatpush3.bf16.xpose.msra.mxu0 %v4384_v36  ;;  %7512 = vmatprep.subr.msk.bf16.mxu1 %vm447_vm0, %v7926_v35  ;;  %v4393_v56 = vsel %vm447_vm0, %v7937_v53, 0  ;;  %v7966_v35 = vld [vmem:[%s8230_s9 + $0xb4] sm:$0xff]   ;;  %v4599_v36 = vsel %vm447_vm0, %v7965_v33, 0  ;;  %v7978_v53 = vld [vmem:[%s8230_s9 + $0xdc] sm:$0xff]  }
 0x1da   : > { %7608 = vmatprep.subr.msk.bf16.mxu0 %vm447_vm0, %v7927_v37  ;;  %7053 = vmatprep.mubr.msk.bf16.mxu1 %vm447_vm0, %v8803_v38  ;;  %v7967_v37 = vld [vmem:[%s8230_s9 + $0x138] sm:$0xff]  }
 0x1db   : > { %7269 = vmatprep.mubr.msk.bf16.mxu0 %vm447_vm0, %v8810_v39  ;;  %v8006_v33 = vld [vmem:[%s8230_s9 + $0xd8] sm:$0xff]  }
 0x1e0   : > { %7040 = vmatpush3.bf16.xpose.msra.mxu1 %v1879_v42 }
 0x1e1   : > { %7256 = vmatpush3.bf16.xpose.msra.mxu0 %v4387_v44  ;;  %7513 = vmatprep.subr.msk.bf16.mxu1 %vm447_vm0, %v7930_v43  ;;  %v7971_v43 = vld [vmem:[%s8230_s9 + $0x150] sm:$0xff]  }
 0x1e2   : > { %7609 = vmatprep.subr.msk.bf16.mxu0 %vm447_vm0, %v7931_v45  ;;  %v7972_v44 = vld [vmem:[%s8230_s9 + $0x6c] sm:$0xff]  }
 0x1e3   : > { %v7973_v45 = vld [vmem:[%s8230_s9 + $0xf0] sm:$0xff]   ;;  %v2097_v46 = vsel %vm447_vm0, %v7972_v44, 0 }
 0x1e8   : > { %7042 = vmatpush3.bf16.xpose.msra.mxu1 %v1882_v48  ;;  %v4605_v48 = vsel %vm447_vm0, %v7973_v45, 0  ;;  %v8014_v45 = vld [vmem:[%s8230_s9 + $0xe8] sm:$0xff]  }
 0x1e9   : > { %7258 = vmatpush3.bf16.xpose.msra.mxu0 %v4390_v50  ;;  %7514 = vmatprep.subr.msk.bf16.mxu1 %vm447_vm0, %v7934_v49  ;;  %v7975_v49 = vld [vmem:[%s8230_s9 + $0x158] sm:$0xff]  }
 0x1ea   : > { %7610 = vmatprep.subr.msk.bf16.mxu0 %vm447_vm0, %v7935_v51  ;;  %v7976_v50 = vld [vmem:[%s8230_s9 + $0x74] sm:$0xff]  }
 0x1eb   : > { %v7977_v51 = vld [vmem:[%s8230_s9 + $0xf8] sm:$0xff]   ;;  %v2100_v52 = vsel %vm447_vm0, %v7976_v50, 0 }
 0x1f0   : > { %7044 = vmatpush3.bf16.xpose.msra.mxu1 %v1885_v54  ;;  %v4608_v54 = vsel %vm447_vm0, %v7977_v51, 0  ;;  %v8018_v51 = vld [vmem:[%s8230_s9 + $0xc0] sm:$0xff]  }
 0x1f1   : > { %7260 = vmatpush3.bf16.xpose.msra.mxu0 %v4393_v56  ;;  %7515 = vmatprep.subr.msk.bf16.mxu1 %vm447_vm0, %v7938_v55  ;;  %v7979_v55 = vld [vmem:[%s8230_s9 + $0x160] sm:$0xff]  }
 0x1f2   : > { %7611 = vmatprep.subr.msk.bf16.mxu0 %vm447_vm0, %v7939_v57  ;;  %v7980_v56 = vld [vmem:[%s8230_s9 + $0x7c] sm:$0xff]  }
 0x1f3   : > { %v7981_v57 = vld [vmem:[%s8230_s9 + $0x100] sm:$0xff]   ;;  %v2103_v58 = vsel %vm447_vm0, %v7980_v56, 0 }
 0x1f8   : > { %7046 = vmatpush3.bf16.xpose.msra.mxu1 %v1888_v60  ;;  %v4611_v60 = vsel %vm447_vm0, %v7981_v57, 0  ;;  %v8022_v57 = vld [vmem:[%s8230_s9 + $0xc8] sm:$0xff]  }
 0x1f9   : > { %7262 = vmatpush3.bf16.xpose.msra.mxu0 %v4396_v62  ;;  %7516 = vmatprep.subr.msk.bf16.mxu1 %vm447_vm0, %v7942_v61  ;;  %v7983_v61 = vld [vmem:[%s8230_s9 + $0x168] sm:$0xff]  }
 0x1fa   : > { %7612 = vmatprep.subr.msk.bf16.mxu0 %vm447_vm0, %v7943_v63  ;;  %v7984_v62 = vld [vmem:[%s8230_s9 + $0x84] sm:$0xff]  }
 0x1fb   : > { %v7985_v63 = vld [vmem:[%s8230_s9 + $0x108] sm:$0xff]   ;;  %v2106_v0 = vsel %vm447_vm0, %v7984_v62, 0 }
 0x1fc   : > { %v8024_v62 = vld [vmem:[%s8230_s9 + $0x68] sm:$0xff]  }
 0x200   : > { %7048 = vmatpush3.bf16.xpose.msra.mxu1 %v1891_v2  ;;  %v4614_v2 = vsel %vm447_vm0, %v7985_v63, 0  ;;  %v8025_v63 = vld [vmem:[%s8230_s9 + $0xd0] sm:$0xff]  }
 0x201   : > { %7264 = vmatpush3.bf16.xpose.msra.mxu0 %v4399_v4  ;;  %7517 = vmatprep.subr.msk.bf16.mxu1 %vm447_vm0, %v7946_v3  ;;  %v7987_v3 = vld [vmem:[%s8230_s9 + $0x124] sm:$0xff]  }
 0x202   : > { %7613 = vmatprep.subr.msk.bf16.mxu0 %vm447_vm0, %v7947_v5  ;;  %v7988_v4 = vld [vmem:[%s8230_s9 + $0x40] sm:$0xff]  }
 0x203   : > { %v7989_v5 = vld [vmem:[%s8230_s9 + $0xc4] sm:$0xff]   ;;  %v2294_v6 = vsel %vm447_vm0, %v7988_v4, 0  ;;  %v8028_v4 = vld [vmem:[%s8230_s9 + $0x70] sm:$0xff]  }
 0x208   : > { %7050 = vmatpush3.bf16.xpose.msra.mxu1 %v1894_v8  ;;  %v4802_v8 = vsel %vm447_vm0, %v7989_v5, 0  ;;  %v8029_v5 = vld [vmem:[%s8230_s9 + $0xd8] sm:$0xff]  }
 0x209   : > { %7266 = vmatpush3.bf16.xpose.msra.mxu0 %v4402_v10  ;;  %7518 = vmatprep.subr.msk.bf16.mxu1 %vm447_vm0, %v7950_v9  ;;  %v7991_v9 = vld [vmem:[%s8230_s9 + $0x12c] sm:$0xff]  }
 0x20a   : > { %7614 = vmatprep.subr.msk.bf16.mxu0 %vm447_vm0, %v7951_v11  ;;  %v8967_v10 = vld [vmem:[%s9274_s1 + $0x12] sm:$0x3]  ;;  %v8974_v11 = vld [vmem:[%s9274_s1 + $0x2a] sm:$0x3] }
 0x210   : > { %7052 = vmatpush3.bf16.xpose.msra.mxu1 %v1897_v14  ;;  %v2297_v14 = vsel %vm447_vm0, %v7992_v12, 0 }
 0x211   : > { %7268 = vmatpush3.bf16.xpose.msra.mxu0 %v4405_v16  ;;  %7519 = vmatprep.subr.msk.bf16.mxu1 %vm447_vm0, %v7954_v15  ;;  %v7994_v15 = vld [vmem:[%s8230_s9 + $0xb0] sm:$0xff]   ;;  %v4805_v16 = vsel %vm447_vm0, %v7993_v13, 0 }
 0x212   : > { %7615 = vmatprep.subr.msk.bf16.mxu0 %vm447_vm0, %v7955_v17  ;;  %v7995_v17 = vld [vmem:[%s8230_s9 + $0x134] sm:$0xff]  }
 0x213   : > { %v8034_v13 = vld [vmem:[%s8230_s9 + $0xf0] sm:$0xff]  }
 0x217   : > { %7054 = vmatmul.mubr.msk.bf16.vlgmr.msra.gmra.mrb[0].mxu1 %vm447_vm0, %v8803_v38  ;;  %v7968_v38 = vld [vmem:[%s8230_s9 + $0x54] sm:$0xff]  }
 0x218   : > { %7056 = vmatpush3.bf16.xpose.msra.mxu1 %v2085_v20  ;;  %7270 = vmatmul.mubr.msk.bf16.vlgmr.msra.gmra.mrb[0].mxu0 %vm447_vm0, %v8810_v39  ;;  %v7969_v39 = vld [vmem:[%s8230_s9 + $0xd8] sm:$0xff]   ;;  %v2094_v40 = vsel %vm447_vm0, %v7968_v38, 0  ;;  %v2300_v20 = vsel %vm447_vm0, %v7996_v18, 0 }
 0x219   : > { %7272 = vmatpush3.bf16.xpose.msra.mxu0 %v4593_v22  ;;  %7520 = vmatprep.subr.msk.bf16.mxu1 %vm447_vm0, %v7958_v21  ;;  %v4602_v42 = vsel %vm447_vm0, %v7969_v39, 0  ;;  %v7998_v21 = vld [vmem:[%s8230_s9 + $0xb8] sm:$0xff]   ;;  %v4808_v22 = vsel %vm447_vm0, %v7997_v19, 0  ;;  %v8010_v39 = vld [vmem:[%s8230_s9 + $0xe0] sm:$0xff]  }
 0x21a   : > { %7616 = vmatprep.subr.msk.bf16.mxu0 %vm447_vm0, %v7959_v23  ;;  %7071 = vmatprep.mubr.msk.bf16.mxu1 %vm447_vm0, %v8885_v24  ;;  %v7999_v23 = vld [vmem:[%s8230_s9 + $0x13c] sm:$0xff]  }
 0x21b   : > { %7287 = vmatprep.mubr.msk.bf16.mxu0 %vm447_vm0, %v8892_v25  ;;  %v8038_v19 = vld [vmem:[%s8230_s9 + $0xf8] sm:$0xff]  }
 0x220   : > { %7058 = vmatpush3.bf16.xpose.msra.mxu1 %v2088_v28 }
 0x221   : > { %7274 = vmatpush3.bf16.xpose.msra.mxu0 %v4596_v30  ;;  %7521 = vmatprep.subr.msk.bf16.mxu1 %vm447_vm0, %v7962_v29  ;;  %v8003_v29 = vld [vmem:[%s8230_s9 + $0x154] sm:$0xff]  }
 0x222   : > { %7617 = vmatprep.subr.msk.bf16.mxu0 %vm447_vm0, %v7963_v31  ;;  %v8004_v30 = vld [vmem:[%s8230_s9 + $0x70] sm:$0xff]  }
 0x223   : > { %v8005_v31 = vld [vmem:[%s8230_s9 + $0xf4] sm:$0xff]   ;;  %v2306_v32 = vsel %vm447_vm0, %v8004_v30, 0 }
 0x228   : > { %7060 = vmatpush3.bf16.xpose.msra.mxu1 %v2091_v34  ;;  %v4814_v34 = vsel %vm447_vm0, %v8005_v31, 0  ;;  %v8046_v31 = vld [vmem:[%s8230_s9 + $0x108] sm:$0xff]  }
 0x229   : > { %7276 = vmatpush3.bf16.xpose.msra.mxu0 %v4599_v36  ;;  %7522 = vmatprep.subr.msk.bf16.mxu1 %vm447_vm0, %v7966_v35  ;;  %v8007_v35 = vld [vmem:[%s8230_s9 + $0x15c] sm:$0xff]  }
 0x22a   : > { %7618 = vmatprep.subr.msk.bf16.mxu0 %vm447_vm0, %v7967_v37  ;;  %v8008_v36 = vld [vmem:[%s8230_s9 + $0x78] sm:$0xff]  }
 0x22b   : > { %v8009_v37 = vld [vmem:[%s8230_s9 + $0xfc] sm:$0xff]   ;;  %v2309_v38 = vsel %vm447_vm0, %v8008_v36, 0 }
 0x230   : > { %7062 = vmatpush3.bf16.xpose.msra.mxu1 %v2094_v40  ;;  %v4817_v40 = vsel %vm447_vm0, %v8009_v37, 0  ;;  %v8050_v37 = vld [vmem:[%s8230_s9 + $0xc4] sm:$0xff]  }
 0x231   : > { %7278 = vmatpush3.bf16.xpose.msra.mxu0 %v4602_v42  ;;  %7523 = vmatprep.subr.msk.bf16.mxu1 %vm447_vm0, %v7970_v41  ;;  %v8011_v41 = vld [vmem:[%s8230_s9 + $0x164] sm:$0xff]  }
 0x232   : > { %7619 = vmatprep.subr.msk.bf16.mxu0 %vm447_vm0, %v7971_v43  ;;  %v8012_v42 = vld [vmem:[%s8230_s9 + $0x80] sm:$0xff]  }
 0x233   : > { %v8013_v43 = vld [vmem:[%s8230_s9 + $0x104] sm:$0xff]   ;;  %v2312_v44 = vsel %vm447_vm0, %v8012_v42, 0 }
 0x238   : > { %7064 = vmatpush3.bf16.xpose.msra.mxu1 %v2097_v46  ;;  %v4820_v46 = vsel %vm447_vm0, %v8013_v43, 0  ;;  %v8054_v43 = vld [vmem:[%s8230_s9 + $0xcc] sm:$0xff]  }
 0x239   : > { %7280 = vmatpush3.bf16.xpose.msra.mxu0 %v4605_v48  ;;  %7524 = vmatprep.subr.msk.bf16.mxu1 %vm447_vm0, %v7974_v47  ;;  %v8015_v47 = vld [vmem:[%s8230_s9 + $0x16c] sm:$0xff]  }
 0x23a   : > { %7620 = vmatprep.subr.msk.bf16.mxu0 %vm447_vm0, %v7975_v49  ;;  %v8016_v48 = vld [vmem:[%s8230_s9 + $0x88] sm:$0xff]  }
 0x23b   : > { %v8017_v49 = vld [vmem:[%s8230_s9 + $0x10c] sm:$0xff]   ;;  %v2315_v50 = vsel %vm447_vm0, %v8016_v48, 0 }
 0x23c   : > { %v8056_v48 = vld [vmem:[%s8230_s9 + $0x6c] sm:$0xff]  }
 0x240   : > { %7066 = vmatpush3.bf16.xpose.msra.mxu1 %v2100_v52  ;;  %v4823_v52 = vsel %vm447_vm0, %v8017_v49, 0  ;;  %v5519_v49 = vld [vmem:[%s9275_s2] sm:$0xf] }
 0x241   : > { %7282 = vmatpush3.bf16.xpose.msra.mxu0 %v4608_v54  ;;  %7525 = vmatprep.subr.msk.bf16.mxu1 %vm447_vm0, %v7978_v53  ;;  %v8019_v53 = vld [vmem:[%s8230_s9 + $0x128] sm:$0xff]   ;;  %v8020_v54 = vld [vmem:[%s8230_s9 + $0x60] sm:$0xff]  }
 0x242   : > { %7621 = vmatprep.subr.msk.bf16.mxu0 %vm447_vm0, %v7979_v55  ;;  %v8021_v55 = vld [vmem:[%s8230_s9 + $0xc8] sm:$0xff]   ;;  %v2503_v56 = vsel %vm447_vm0, %v8020_v54, 0  ;;  %v5527_v54 = vld [vmem:[%s9276_s3] sm:$0xf] }
 0x248   : > { %7068 = vmatpush3.bf16.xpose.msra.mxu1 %v2103_v58  ;;  %v5011_v58 = vsel %vm447_vm0, %v8021_v55, 0 }
 0x249   : > { %7284 = vmatpush3.bf16.xpose.msra.mxu0 %v4611_v60  ;;  %7526 = vmatprep.subr.msk.bf16.mxu1 %vm447_vm0, %v7982_v59  ;;  %v8023_v59 = vld [vmem:[%s8230_s9 + $0x130] sm:$0xff]  }
 0x24a   : > { %7622 = vmatprep.subr.msk.bf16.mxu0 %vm447_vm0, %v7983_v61  ;;  %v9049_v60 = vld [vmem:[%s9274_s1 + $0x14] sm:$0x3]  ;;  %v9056_v61 = vld [vmem:[%s9274_s1 + $0x2c] sm:$0x3] }
 0x250   : > { %7070 = vmatpush3.bf16.xpose.msra.mxu1 %v2106_v0  ;;  %v2506_v0 = vsel %vm447_vm0, %v8024_v62, 0  ;;  %v8063_v62 = vld [vmem:[%s8230_s9 + $0x144] sm:$0xff]  }
 0x251   : > { %7286 = vmatpush3.bf16.xpose.msra.mxu0 %v4614_v2  ;;  %7527 = vmatprep.subr.msk.bf16.mxu1 %vm447_vm0, %v7986_v1  ;;  %v8026_v1 = vld [vmem:[%s8230_s9 + $0xd0] sm:$0xff]   ;;  %v5014_v2 = vsel %vm447_vm0, %v8025_v63, 0  ;;  %v8064_v63 = vld [vmem:[%s8230_s9 + $0x7c] sm:$0xff]  }
 0x252   : > { %7623 = vmatprep.subr.msk.bf16.mxu0 %vm447_vm0, %v7987_v3  ;;  %v8027_v3 = vld [vmem:[%s8230_s9 + $0x138] sm:$0xff]  }
 0x257   : > { %7072 = vmatmul.mubr.msk.bf16.vlgmr.msra.gmra.mrb[0].mxu1 %vm447_vm0, %v8885_v24  ;;  %v8000_v24 = vld [vmem:[%s8230_s9 + $0x58] sm:$0xff]  }
 0x258   : > { %7074 = vmatpush3.bf16.xpose.msra.mxu1 %v2294_v6  ;;  %7288 = vmatmul.mubr.msk.bf16.vlgmr.msra.gmra.mrb[0].mxu0 %vm447_vm0, %v8892_v25  ;;  %v8001_v25 = vld [vmem:[%s8230_s9 + $0xdc] sm:$0xff]   ;;  %v2303_v26 = vsel %vm447_vm0, %v8000_v24, 0  ;;  %v2509_v6 = vsel %vm447_vm0, %v8028_v4, 0 }
 0x259   : > { %7290 = vmatpush3.bf16.xpose.msra.mxu0 %v4802_v8  ;;  %7528 = vmatprep.subr.msk.bf16.mxu1 %vm447_vm0, %v7990_v7  ;;  %v4811_v28 = vsel %vm447_vm0, %v8001_v25, 0  ;;  %v8030_v7 = vld [vmem:[%s8230_s9 + $0xd8] sm:$0xff]   ;;  %v5017_v8 = vsel %vm447_vm0, %v8029_v5, 0  ;;  %v8042_v25 = vld [vmem:[%s8230_s9 + $0x100] sm:$0xff]  }
 0x25a   : > { %7624 = vmatprep.subr.msk.bf16.mxu0 %vm447_vm0, %v7991_v9  ;;  %7089 = vmatprep.mubr.msk.bf16.mxu1 %vm447_vm0, %v8967_v10  ;;  %v8031_v9 = vld [vmem:[%s8230_s9 + $0x140] sm:$0xff]   ;;  %v8068_v5 = vld [vmem:[%s8230_s9 + $0x94] sm:$0xff]  }
 0x25b   : > { %7305 = vmatprep.mubr.msk.bf16.mxu0 %vm447_vm0, %v8974_v11  ;;  %v8067_v4 = vld [vmem:[%s8230_s9 + $0x15c] sm:$0xff]  }
 0x260   : > { %7076 = vmatpush3.bf16.xpose.msra.mxu1 %v2297_v14 }
 0x261   : > { %7292 = vmatpush3.bf16.xpose.msra.mxu0 %v4805_v16  ;;  %7529 = vmatprep.subr.msk.bf16.mxu1 %vm447_vm0, %v7994_v15  ;;  %v8035_v15 = vld [vmem:[%s8230_s9 + $0x158] sm:$0xff]   ;;  %v8036_v16 = vld [vmem:[%s8230_s9 + $0x90] sm:$0xff]  }
 0x262   : > { %7625 = vmatprep.subr.msk.bf16.mxu0 %vm447_vm0, %v7995_v17  ;;  %v8037_v17 = vld [vmem:[%s8230_s9 + $0xf8] sm:$0xff]   ;;  %v2515_v18 = vsel %vm447_vm0, %v8036_v16, 0  ;;  %v8075_v16 = vld [vmem:[%s8230_s9 + $0x16c] sm:$0xff]  }
 0x268   : > { %7078 = vmatpush3.bf16.xpose.msra.mxu1 %v2300_v20  ;;  %v5023_v20 = vsel %vm447_vm0, %v8037_v17, 0  ;;  %v8076_v17 = vld [vmem:[%s8230_s9 + $0xa4] sm:$0xff]  }
 0x269   : > { %7294 = vmatpush3.bf16.xpose.msra.mxu0 %v4808_v22  ;;  %7530 = vmatprep.subr.msk.bf16.mxu1 %vm447_vm0, %v7998_v21  ;;  %v8039_v21 = vld [vmem:[%s8230_s9 + $0x160] sm:$0xff]   ;;  %v8040_v22 = vld [vmem:[%s8230_s9 + $0x98] sm:$0xff]  }
 0x26a   : > { %7626 = vmatprep.subr.msk.bf16.mxu0 %vm447_vm0, %v7999_v23  ;;  %v8041_v23 = vld [vmem:[%s8230_s9 + $0x100] sm:$0xff]   ;;  %v2518_v24 = vsel %vm447_vm0, %v8040_v22, 0  ;;  %v8079_v22 = vld [vmem:[%s8230_s9 + $0x174] sm:$0xff]  }
 0x270   : > { %7080 = vmatpush3.bf16.xpose.msra.mxu1 %v2303_v26  ;;  %v5026_v26 = vsel %vm447_vm0, %v8041_v23, 0  ;;  %v8080_v23 = vld [vmem:[%s8230_s9 + $0xac] sm:$0xff]  }
 0x271   : > { %7296 = vmatpush3.bf16.xpose.msra.mxu0 %v4811_v28  ;;  %7531 = vmatprep.subr.msk.bf16.mxu1 %vm447_vm0, %v8002_v27  ;;  %v8043_v27 = vld [vmem:[%s8230_s9 + $0x168] sm:$0xff]   ;;  %v8044_v28 = vld [vmem:[%s8230_s9 + $0xa0] sm:$0xff]  }
 0x272   : > { %7627 = vmatprep.subr.msk.bf16.mxu0 %vm447_vm0, %v8003_v29  ;;  %v8045_v29 = vld [vmem:[%s8230_s9 + $0x108] sm:$0xff]   ;;  %v2521_v30 = vsel %vm447_vm0, %v8044_v28, 0  ;;  %v8083_v28 = vld [vmem:[%s8230_s9 + $0xd0] sm:$0xff]  }
 0x278   : > { %7082 = vmatpush3.bf16.xpose.msra.mxu1 %v2306_v32  ;;  %v5029_v32 = vsel %vm447_vm0, %v8045_v29, 0  ;;  %v5429_v29 = vsel %vm447_vm0, %v8083_v28, 0 }
 0x279   : > { %7298 = vmatpush3.bf16.xpose.msra.mxu0 %v4814_v34  ;;  %7532 = vmatprep.subr.msk.bf16.mxu1 %vm447_vm0, %v8006_v33  ;;  %v8047_v33 = vld [vmem:[%s8230_s9 + $0x170] sm:$0xff]   ;;  %v8048_v34 = vld [vmem:[%s8230_s9 + $0xa8] sm:$0xff]  }
 0x27a   : > { %7628 = vmatprep.subr.msk.bf16.mxu0 %vm447_vm0, %v8007_v35  ;;  %v8049_v35 = vld [vmem:[%s8230_s9 + $0x110] sm:$0xff]   ;;  %v2524_v36 = vsel %vm447_vm0, %v8048_v34, 0  ;;  %v8086_v34 = vld [vmem:[%s8230_s9 + $0x140] sm:$0xff]  }
 0x280   : > { %7084 = vmatpush3.bf16.xpose.msra.mxu1 %v2309_v38  ;;  %v5032_v38 = vsel %vm447_vm0, %v8049_v35, 0  ;;  %v8087_v35 = vld [vmem:[%s8230_s9 + $0xe0] sm:$0xff]  }
 0x281   : > { %7300 = vmatpush3.bf16.xpose.msra.mxu0 %v4817_v40  ;;  %7533 = vmatprep.subr.msk.bf16.mxu1 %vm447_vm0, %v8010_v39  ;;  %v8051_v39 = vld [vmem:[%s8230_s9 + $0x12c] sm:$0xff]   ;;  %v8052_v40 = vld [vmem:[%s8230_s9 + $0x64] sm:$0xff]  }
 0x282   : > { %7629 = vmatprep.subr.msk.bf16.mxu0 %vm447_vm0, %v8011_v41  ;;  %v8053_v41 = vld [vmem:[%s8230_s9 + $0xcc] sm:$0xff]   ;;  %v2712_v42 = vsel %vm447_vm0, %v8052_v40, 0  ;;  %v8090_v40 = vld [vmem:[%s8230_s9 + $0x160] sm:$0xff]  }
 0x288   : > { %7086 = vmatpush3.bf16.xpose.msra.mxu1 %v2312_v44  ;;  %v5220_v44 = vsel %vm447_vm0, %v8053_v41, 0  ;;  %v8091_v41 = vld [vmem:[%s8230_s9 + $0x100] sm:$0xff]  }
 0x289   : > { %7302 = vmatpush3.bf16.xpose.msra.mxu0 %v4820_v46  ;;  %7534 = vmatprep.subr.msk.bf16.mxu1 %vm447_vm0, %v8014_v45  ;;  %v8055_v45 = vld [vmem:[%s8230_s9 + $0x134] sm:$0xff]  }
 0x28a   : > { %7630 = vmatprep.subr.msk.bf16.mxu0 %vm447_vm0, %v8015_v47  ;;  %v9131_v46 = vld [vmem:[%s9274_s1 + $0x16] sm:$0x3]  ;;  %v9138_v47 = vld [vmem:[%s9274_s1 + $0x2e] sm:$0x3] }
 0x290   : > { %7088 = vmatpush3.bf16.xpose.msra.mxu1 %v2315_v50  ;;  %v8057_v50 = vld [vmem:[%s8230_s9 + $0xd4] sm:$0xff]  }
 0x291   : > { %7304 = vmatpush3.bf16.xpose.msra.mxu0 %v4823_v52  ;;  %7535 = vmatprep.subr.msk.bf16.mxu1 %vm447_vm0, %v8018_v51  ;;  %v8146_v51 = vmov 0   ;;  %v2715_v52 = vsel %vm447_vm0, %v8056_v48, 0  ;;  %v5223_v55 = vsel %vm447_vm0, %v8057_v50, 0  ;;  %v8097_v50 = vld [vmem:[%s8230_s9 + $0x118] sm:$0xff]  }
 0x292   : > { %7631 = vmatprep.subr.msk.bf16.mxu0 %vm447_vm0, %v8019_v53  ;;  %7697 = vset.pattern.permute.xlu0 %v8146_v51  ;;  %v8058_v53 = vld [vmem:[%s8230_s9 + $0xd4] sm:$0xff]   ;;  %v5450_v51 = vsel %vm447_vm0, %v8097_v50, 0 }
 0x293   : > { %5522 = vperm.xlu0 %7697, %v5519_v49   ;;  %v8096_v49 = vld [vmem:[%s8230_s9 + $0x178] sm:$0xff]  }
 0x297   : > { %7090 = vmatmul.mubr.msk.bf16.vlgmr.msra.gmra.mrb[0].mxu1 %vm447_vm0, %v8967_v10  ;;  %v8032_v10 = vld [vmem:[%s8230_s9 + $0x78] sm:$0xff]   ;;  %5530 = vperm.xlu0 %7697, %v5527_v54  }
 0x298   : > { %7092 = vmatpush3.bf16.xpose.msra.mxu1 %v2503_v56  ;;  %7306 = vmatmul.mubr.msk.bf16.vlgmr.msra.gmra.mrb[0].mxu0 %vm447_vm0, %v8974_v11  ;;  %v8033_v11 = vld [vmem:[%s8230_s9 + $0xe0] sm:$0xff]   ;;  %v2512_v12 = vsel %vm447_vm0, %v8032_v10, 0 }
 0x299   : > { %7308 = vmatpush3.bf16.xpose.msra.mxu0 %v5011_v58  ;;  %7536 = vmatprep.subr.msk.bf16.mxu1 %vm447_vm0, %v8022_v57  ;;  %v5020_v14 = vsel %vm447_vm0, %v8033_v11, 0  ;;  %v8059_v56 = vld [vmem:[%s8230_s9 + $0x13c] sm:$0xff]   ;;  %v8060_v57 = vld [vmem:[%s8230_s9 + $0x74] sm:$0xff]   ;;  %v8071_v10 = vld [vmem:[%s8230_s9 + $0x164] sm:$0xff]  }
 0x29a   : > { %7632 = vmatprep.subr.msk.bf16.mxu0 %vm447_vm0, %v8023_v59  ;;  %7107 = vmatprep.mubr.msk.bf16.mxu1 %vm447_vm0, %v9049_v60  ;;  %v8061_v58 = vld [vmem:[%s8230_s9 + $0xdc] sm:$0xff]   ;;  %v2718_v59 = vsel %vm447_vm0, %v8060_v57, 0 }
 0x29b   : > { %7323 = vmatprep.mubr.msk.bf16.mxu0 %vm447_vm0, %v9056_v61  ;;  %v8072_v11 = vld [vmem:[%s8230_s9 + $0x9c] sm:$0xff]  }
 0x2a0   : > { %7094 = vmatpush3.bf16.xpose.msra.mxu1 %v2506_v0  ;;  %v8065_v0 = vld [vmem:[%s8230_s9 + $0xe4] sm:$0xff]  }
 0x2a1   : > { %7310 = vmatpush3.bf16.xpose.msra.mxu0 %v5014_v2  ;;  %7537 = vmatprep.subr.msk.bf16.mxu1 %vm447_vm0, %v8026_v1  ;;  %v2721_v1 = vsel %vm447_vm0, %v8064_v63, 0  ;;  %v8066_v2 = vld [vmem:[%s8230_s9 + $0xf4] sm:$0xff]  }
 0x2a2   : > { %7633 = vmatprep.subr.msk.bf16.mxu0 %vm447_vm0, %v8027_v3  ;;  %v5229_v3 = vsel %vm447_vm0, %v8065_v0, 0 }
 0x2a8   : > { %7096 = vmatpush3.bf16.xpose.msra.mxu1 %v2509_v6  ;;  %v8069_v6 = vld [vmem:[%s8230_s9 + $0xfc] sm:$0xff]  }
 0x2a9   : > { %7312 = vmatpush3.bf16.xpose.msra.mxu0 %v5017_v8  ;;  %7538 = vmatprep.subr.msk.bf16.mxu1 %vm447_vm0, %v8030_v7  ;;  %v2724_v7 = vsel %vm447_vm0, %v8068_v5, 0  ;;  %v8070_v8 = vld [vmem:[%s8230_s9 + $0xfc] sm:$0xff]  }
 0x2aa   : > { %7634 = vmatprep.subr.msk.bf16.mxu0 %vm447_vm0, %v8031_v9  ;;  %v5232_v9 = vsel %vm447_vm0, %v8069_v6, 0 }
 0x2b0   : > { %7098 = vmatpush3.bf16.xpose.msra.mxu1 %v2512_v12  ;;  %v8073_v12 = vld [vmem:[%s8230_s9 + $0x104] sm:$0xff]  }
 0x2b1   : > { %7314 = vmatpush3.bf16.xpose.msra.mxu0 %v5020_v14  ;;  %7539 = vmatprep.subr.msk.bf16.mxu1 %vm447_vm0, %v8034_v13  ;;  %v2727_v13 = vsel %vm447_vm0, %v8072_v11, 0  ;;  %v8074_v14 = vld [vmem:[%s8230_s9 + $0x104] sm:$0xff]  }
 0x2b2   : > { %7635 = vmatprep.subr.msk.bf16.mxu0 %vm447_vm0, %v8035_v15  ;;  %v5235_v15 = vsel %vm447_vm0, %v8073_v12, 0 }
 0x2b8   : > { %7100 = vmatpush3.bf16.xpose.msra.mxu1 %v2515_v18  ;;  %v8077_v18 = vld [vmem:[%s8230_s9 + $0x10c] sm:$0xff]  }
 0x2b9   : > { %7316 = vmatpush3.bf16.xpose.msra.mxu0 %v5023_v20  ;;  %7540 = vmatprep.subr.msk.bf16.mxu1 %vm447_vm0, %v8038_v19  ;;  %v2730_v19 = vsel %vm447_vm0, %v8076_v17, 0  ;;  %v8078_v20 = vld [vmem:[%s8230_s9 + $0x10c] sm:$0xff]  }
 0x2ba   : > { %7636 = vmatprep.subr.msk.bf16.mxu0 %vm447_vm0, %v8039_v21  ;;  %v5238_v21 = vsel %vm447_vm0, %v8077_v18, 0 }
 0x2c0   : > { %7102 = vmatpush3.bf16.xpose.msra.mxu1 %v2518_v24  ;;  %v8081_v24 = vld [vmem:[%s8230_s9 + $0x114] sm:$0xff]  }
 0x2c1   : > { %7318 = vmatpush3.bf16.xpose.msra.mxu0 %v5026_v26  ;;  %7541 = vmatprep.subr.msk.bf16.mxu1 %vm447_vm0, %v8042_v25  ;;  %v2733_v25 = vsel %vm447_vm0, %v8080_v23, 0  ;;  %v5241_v26 = vsel %vm447_vm0, %v8081_v24, 0 }
 0x2c2   : > { %7637 = vmatprep.subr.msk.bf16.mxu0 %vm447_vm0, %v8043_v27  ;;  %v8082_v27 = vld [vmem:[%s8230_s9 + $0x130] sm:$0xff]  }
 0x2c8   : > { %7104 = vmatpush3.bf16.xpose.msra.mxu1 %v2521_v30  ;;  %v8084_v30 = vld [vmem:[%s8230_s9 + $0x138] sm:$0xff]  }
 0x2c9   : > { %7320 = vmatpush3.bf16.xpose.msra.mxu0 %v5029_v32  ;;  %7542 = vmatprep.subr.msk.bf16.mxu1 %vm447_vm0, %v8046_v31  ;;  %v6887_v31 = vld [vmem:[%s9274_s1 + $0x30] sm:$0x3]  ;;  %v8085_v32 = vld [vmem:[%s8230_s9 + $0xd8] sm:$0xff]  }
 0x2ca   : > { %7638 = vmatprep.subr.msk.bf16.mxu0 %vm447_vm0, %v8047_v33  ;;  %v5432_v33 = vsel %vm447_vm0, %v8085_v32, 0 }
 0x2d0   : > { %7106 = vmatpush3.bf16.xpose.msra.mxu1 %v2524_v36  ;;  %v5435_v36 = vsel %vm447_vm0, %v8087_v35, 0 }
 0x2d1   : > { %7322 = vmatpush3.bf16.xpose.msra.mxu0 %v5032_v38  ;;  %7543 = vmatprep.subr.msk.bf16.mxu1 %vm447_vm0, %v8050_v37  ;;  %v8088_v37 = vld [vmem:[%s8230_s9 + $0x148] sm:$0xff]  }
 0x2d2   : > { %7639 = vmatprep.subr.msk.bf16.mxu0 %vm447_vm0, %v8051_v39  ;;  %v8089_v38 = vld [vmem:[%s8230_s9 + $0xe8] sm:$0xff]  }
 0x2d3   : > { %v5438_v39 = vsel %vm447_vm0, %v8089_v38, 0 }
 0x2d7   : > { %7108 = vmatmul.mubr.msk.bf16.vlgmr.msra.gmra.mrb[0].mxu1 %vm447_vm0, %v9049_v60  ;;  %v8062_v60 = vld [vmem:[%s8230_s9 + $0xdc] sm:$0xff]  }
 0x2d8   : > { %7110 = vmatpush3.bf16.xpose.msra.mxu1 %v2712_v42  ;;  %7324 = vmatmul.mubr.msk.bf16.vlgmr.msra.gmra.mrb[0].mxu0 %vm447_vm0, %v9056_v61  ;;  %v5226_v61 = vsel %vm447_vm0, %v8061_v58, 0  ;;  %v5441_v42 = vsel %vm447_vm0, %v8091_v41, 0 }
 0x2d9   : > { %7326 = vmatpush3.bf16.xpose.msra.mxu0 %v5220_v44  ;;  %7544 = vmatprep.subr.msk.bf16.mxu1 %vm447_vm0, %v8054_v43  ;;  %v8092_v43 = vld [vmem:[%s8230_s9 + $0x168] sm:$0xff]  }
 0x2da   : > { %7640 = vmatprep.subr.msk.bf16.mxu0 %vm447_vm0, %v8055_v45  ;;  %7125 = vmatprep.mubr.msk.bf16.mxu1 %vm447_vm0, %v9131_v46  ;;  %v8093_v44 = vld [vmem:[%s8230_s9 + $0x108] sm:$0xff]  }
 0x2db   : > { %7341 = vmatprep.mubr.msk.bf16.mxu0 %vm447_vm0, %v9138_v47  ;;  %v5444_v45 = vsel %vm447_vm0, %v8093_v44, 0 }
 0x2e0   : > { %7112 = vmatpush3.bf16.xpose.msra.mxu1 %v2715_v52 }
 0x2e1   : > { %7328 = vmatpush3.bf16.xpose.msra.mxu0 %v5223_v55  ;;  %7545 = vmatprep.subr.msk.bf16.mxu1 %vm447_vm0, %v8058_v53 }
 0x2e2   : > { %7641 = vmatprep.subr.msk.bf16.mxu0 %vm447_vm0, %v8059_v56 }
 0x2e8   : > { %7114 = vmatpush3.bf16.xpose.msra.mxu1 %v2718_v59 }
 0x2e9   : > { %7330 = vmatpush3.bf16.xpose.msra.mxu0 %v5226_v61  ;;  %7546 = vmatprep.subr.msk.bf16.mxu1 %vm447_vm0, %v8062_v60 }
 0x2ea   : > { %7642 = vmatprep.subr.msk.bf16.mxu0 %vm447_vm0, %v8063_v62 }
 0x2f0   : > { %7116 = vmatpush3.bf16.xpose.msra.mxu1 %v2721_v1 }
 0x2f1   : > { %7332 = vmatpush3.bf16.xpose.msra.mxu0 %v5229_v3  ;;  %7547 = vmatprep.subr.msk.bf16.mxu1 %vm447_vm0, %v8066_v2 }
 0x2f2   : > { %7643 = vmatprep.subr.msk.bf16.mxu0 %vm447_vm0, %v8067_v4 }
 0x2f8   : > { %7118 = vmatpush3.bf16.xpose.msra.mxu1 %v2724_v7 }
 0x2f9   : > { %7334 = vmatpush3.bf16.xpose.msra.mxu0 %v5232_v9  ;;  %7548 = vmatprep.subr.msk.bf16.mxu1 %vm447_vm0, %v8070_v8 }
 0x2fa   : > { %7644 = vmatprep.subr.msk.bf16.mxu0 %vm447_vm0, %v8071_v10 }
 0x300   : > { %7120 = vmatpush3.bf16.xpose.msra.mxu1 %v2727_v13 }
 0x301   : > { %7336 = vmatpush3.bf16.xpose.msra.mxu0 %v5235_v15  ;;  %7549 = vmatprep.subr.msk.bf16.mxu1 %vm447_vm0, %v8074_v14 }
 0x302   : > { %7645 = vmatprep.subr.msk.bf16.mxu0 %vm447_vm0, %v8075_v16 }
 0x308   : > { %7122 = vmatpush3.bf16.xpose.msra.mxu1 %v2730_v19 }
 0x309   : > { %7338 = vmatpush3.bf16.xpose.msra.mxu0 %v5238_v21  ;;  %7550 = vmatprep.subr.msk.bf16.mxu1 %vm447_vm0, %v8078_v20 }
 0x30a   : > { %7646 = vmatprep.subr.msk.bf16.mxu0 %vm447_vm0, %v8079_v22 }
 0x310   : > { %7124 = vmatpush3.bf16.xpose.msra.mxu1 %v2733_v25 }
 0x311   : > { %7340 = vmatpush3.bf16.xpose.msra.mxu0 %v5241_v26 }
 0x312   : > { %7647 = vmatprep.subr.msk.bf16.mxu0 %vm447_vm0, %v8082_v27  ;;  %v5523_v56 = vpop.permute.xlu0 %5522 }
 0x316   : > { %v5531_v0 = vpop.permute.xlu0 %5530 }
 0x317   : > { %7126 = vmatmul.mubr.msk.bf16.vlgmr.msra.gmra.mrb[0].mxu1 %vm447_vm0, %v9131_v46  ;;  %v8094_v46 = vld [vmem:[%s8230_s9 + $0x170] sm:$0xff]  }
 0x318   : > { %7342 = vmatmul.mubr.msk.bf16.vlgmr.msra.gmra.mrb[0].mxu0 %vm447_vm0, %v9138_v47  ;;  %v8095_v47 = vld [vmem:[%s8230_s9 + $0x110] sm:$0xff]   ;;  %s5683_s9 = sshll.u32 %s9292_s19, 2 }
 0x319   : > { %7344 = vmatpush3.bf16.xpose.msra.mxu0 %v5429_v29  ;;  %7359 = vmatprep.mubr.msk.bf16.mxu0 %vm447_vm0, %v6887_v31  ;;  %v5447_v48 = vsel %vm447_vm0, %v8095_v47, 0  ;;  %s9248_s10 = sadd.s32 %s5683_s9, %s9294_s8 }
 0x31a   : > { %7648 = vmatprep.subr.msk.bf16.mxu0 %vm447_vm0, %v8084_v30  ;;  %s5684_s18 = sshll.u32 %s9248_s10, 1  ;;  %s5687_s19 = sshll.u32 %s9248_s10, 2 }
 0x31b   : > { %s286_s13 = scalar_lea.vmem %s9277_s4, %s5684_s18  ;;  %s296_s16 = scalar_lea.vmem %s9278_s5, %s5687_s19 }
 0x31c   : > { %v5547_v8 = vld [vmem:[%s286_s13] sm:$0xf] }
 0x31d   : > { %v5548_v9 = vunpack.c.l.bf16 %v5547_v8 }
 0x31f   : > { %v5550_v13 = vcombine.high %v5548_v9, %v5548_v9 }
 0x321   : > { %7346 = vmatpush3.bf16.xpose.msra.mxu0 %v5432_v33 }
 0x322   : > { %7649 = vmatprep.subr.msk.bf16.mxu0 %vm447_vm0, %v8086_v34 }
 0x329   : > { %7348 = vmatpush3.bf16.xpose.msra.mxu0 %v5435_v36 }
 0x32a   : > { %7650 = vmatprep.subr.msk.bf16.mxu0 %vm447_vm0, %v8088_v37 }
 0x331   : > { %7350 = vmatpush3.bf16.xpose.msra.mxu0 %v5438_v39 }
 0x332   : > { %7651 = vmatprep.subr.msk.bf16.mxu0 %vm447_vm0, %v8090_v40 }
 0x339   : > { %7352 = vmatpush3.bf16.xpose.msra.mxu0 %v5441_v42 }
 0x33a   : > { %7652 = vmatprep.subr.msk.bf16.mxu0 %vm447_vm0, %v8092_v43 }
 0x341   : > { %7354 = vmatpush3.bf16.xpose.msra.mxu0 %v5444_v45 }
 0x342   : > { %7653 = vmatprep.subr.msk.bf16.mxu0 %vm447_vm0, %v8094_v46 }
 0x349   : > { %7356 = vmatpush3.bf16.xpose.msra.mxu0 %v5447_v48 }
 0x34a   : > { %7654 = vmatprep.subr.msk.bf16.mxu0 %vm447_vm0, %v8096_v49 }
 0x351   : > { %7358 = vmatpush3.bf16.xpose.msra.mxu0 %v5450_v51 }
 0x358   : > { %7360 = vmatmul.mubr.msk.bf16.vlgmr.msra.gmra.mrb[0].mxu0 %vm447_vm0, %v6887_v31 }
 0x3ea   : > { %v2793_v52 = vpop.f32.mrb[0].mxu1 }
 0x3eb   : > { %v2795_v53 = vpop.f32.mrb[1].mxu1 }
 0x3ec   : > { %v2797_v54 = vpop.f32.mrb[2].mxu1 }
 0x3ed   : > { %v2798_v55 = vpop.f32.mrb[3].mxu1 }
 0x42b   : > { %v5510_v57 = vpop.f32.mrb[0].mxu0 }
 0x42c   : > { %v7361_v58 = vadd.f32 %v5510_v57, %v2793_v52  ;;  %v5512_v59 = vpop.f32.mrb[1].mxu0 }
 0x42d   : > { %v7362_v60 = vadd.f32 %v5512_v59, %v2795_v53  ;;  %v5514_v61 = vpop.f32.mrb[2].mxu0 }
 0x42e   : > { %v5525_v62 = vmul.f32 %v7361_v58, %v5523_v56  ;;  %v5515_v63 = vpop.f32.mrb[3].mxu0 }
 0x42f   : > { %v5526_v1 = vmul.f32 %v7362_v60, %v5523_v56 }
 0x430   : > { %v5533_v2 = vadd.f32 %v5531_v0, %v5525_v62 }
 0x431   : > { %v5534_v3 = vadd.f32 %v5531_v0, %v5526_v1 }
 0x432   : > { %v5537_v4 = vmin.f32 %v5533_v2, 0.0  ;;  %vm5535_vm1 = vcmp.gt.f32.partialorder %v5533_v2, 0.0 }
 0x433   : > { %v5538_v5 = vmin.f32 %v5534_v3, 0.0  ;;  %vm5536_vm2 = vcmp.gt.f32.partialorder %v5534_v3, 0.0 }
 0x434   : > { %v5539_v6 = vmul.f32 1.442695, %v5537_v4 }
 0x435   : > { %v5541_v7 = vmul.f32 1.442695, %v5538_v5 }
 0x436   : > { %8098 = vpow2.f32 %v5539_v6 }
 0x437   : > { %8100 = vpow2.f32 %v5541_v7 }
 0x440   : > { %v8099_v10 = vpop.eup %8098 }
 0x441   : > { %v8101_v11 = vpop.eup %8100  ;;  %v6905_v12 = vadd.f32 -1.0, %v8099_v10 }
 0x442   : > { %v6906_v14 = vadd.f32 -1.0, %v8101_v11 }
 0x443   : > { %v5545_v15 = vsel %vm5535_vm1, %v5533_v2, %v6905_v12 }
 0x444   : > { %v5552_v16 = vadd.f32 %v5548_v9, %v5545_v15  ;;  %v5546_v17 = vsel %vm5536_vm2, %v5534_v3, %v6906_v14 }
 0x445   : > { %v5553_v18 = vadd.f32 %v5550_v13, %v5546_v17 }
 0x446   : > { %v5556_v19 = vmin.f32 %v5552_v16, 0.0  ;;  %vm5554_vm3 = vcmp.gt.f32.partialorder %v5552_v16, 0.0 }
 0x447   : > { %v5557_v20 = vmin.f32 %v5553_v18, 0.0  ;;  %vm5555_vm4 = vcmp.gt.f32.partialorder %v5553_v18, 0.0 }
 0x448   : > { %v5558_v21 = vmul.f32 1.442695, %v5556_v19 }
 0x449   : > { %v5560_v22 = vmul.f32 1.442695, %v5557_v20 }
 0x44a   : > { %8102 = vpow2.f32 %v5558_v21 }
 0x44b   : > { %8104 = vpow2.f32 %v5560_v22 }
 0x454   : > { %v8103_v23 = vpop.eup %8102 }
 0x455   : > { %v8105_v24 = vpop.eup %8104  ;;  %v6907_v25 = vadd.f32 -1.0, %v8103_v23 }
 0x456   : > { %v6908_v26 = vadd.f32 -1.0, %v8105_v24 }
 0x457   : > { %v5564_v27 = vsel %vm5554_vm3, %v5552_v16, %v6907_v25 }
 0x458   : > { %v5565_v28 = vsel %vm5555_vm4, %v5553_v18, %v6908_v26 }
 0x459   : > { %v5568_v29 = vcombine.low %v5564_v27, %v5565_v28 }
 0x45b   : > { %5570 = vst [vmem:[%s296_s16] sm:$0xff] %v5568_v29 }
 0x45c PF: > { %s15_s22 = sadd.s32 1, %s8144_s22   ;;  %s9279_s18 = smov %s8136_s20 }
 0x45d   : > { %p12_p8 = scmp.ge.s32.totalorder %s15_s22, 6   ;;  %s9280_s19 = smov %s8140_s21 }
 0x45e   : > { %s9281_s20 = smov %s9284_s23  ;;  %s9282_s21 = smov %s9288_s24 }
 0x45f   :  { %14 = sbr.rel (!%p12_p8) target bundleno = 3 (0x3), region = 121 }

</bundles_post_ra>
